<compile_context>
chip_gen: v6e
topology: v6e:2x2x1
jax: 0.10.0
libtpu: 0.0.40
codegen_flags: <defaults>
</compile_context>

<pallas_src>
import math
import functools

import jax
import jax.numpy as jnp
from jax.experimental import pallas as pl
from jax.experimental.pallas import tpu as pltpu


# ----------------------------------------------------------------------------
# Kernel (one grid step == one encoder layer)
# ----------------------------------------------------------------------------
def _layer_norm(x, w, b, eps=1e-5):
    mu = jnp.mean(x, axis=-1, keepdims=True)
    var = jnp.mean((x - mu) ** 2, axis=-1, keepdims=True)
    return (x - mu) * jax.lax.rsqrt(var + eps) * w + b


def fused_layer_kernel(
        x_in_ref, we_ref, be_ref, pe_ref,
        wq_ref, bq_ref, wk_ref, bk_ref, wv_ref, bv_ref, wo_ref, bo_ref,
        ln1w_ref, ln1b_ref, w1_ref, b1_ref, w2_ref, b2_ref, ln2w_ref, ln2b_ref,
        wfc_ref, bfc_ref,
        o_ref,
        x_scr,
        *, batch, seq_len, num_heads, head_dim):
    BL = batch * seq_len
    hidden = num_heads * head_dim
    scale = 1.0 / math.sqrt(head_dim)
    li = pl.program_id(0)

    # ---- step 0: embedding + positional encoding -> persistent VMEM scratch ----
    @pl.when(li == 0)
    def _embed():
        x0 = jnp.dot(x_in_ref[...], we_ref[...],
                     preferred_element_type=jnp.float32)
        x_scr[...] = x0 + be_ref[...] + pe_ref[...]

    x = x_scr[...]                                           # (B*L, hidden) f32

    # ---- multi-head self-attention (per-head weights: no lane slicing) ----
    attn = bo_ref[0]                                         # (1, hidden), broadcasts
    for h in range(num_heads):
        qh = jnp.dot(x, wq_ref[h], preferred_element_type=jnp.float32) + bq_ref[h]
        kh = jnp.dot(x, wk_ref[h], preferred_element_type=jnp.float32) + bk_ref[h]
        vh = jnp.dot(x, wv_ref[h], preferred_element_type=jnp.float32) + bv_ref[h]
        # (B*L, hd) -> (B, L, hd): leading-dim split, lane layout untouched.
        qh = (qh * scale).reshape(batch, seq_len, head_dim)  # fold 1/sqrt(hd) into q
        kh = kh.reshape(batch, seq_len, head_dim)
        vh = vh.reshape(batch, seq_len, head_dim)
        s = jnp.einsum('bld,bmd->blm', qh, kh,
                       preferred_element_type=jnp.float32)
        s = s - jnp.max(s, axis=-1, keepdims=True)
        p = jnp.exp(s)
        p = p * pl.reciprocal(jnp.sum(p, axis=-1, keepdims=True), approx=True)
        ctx = jnp.einsum('blm,bmd->bld', p, vh,
                         preferred_element_type=jnp.float32)
        attn = attn + jnp.dot(ctx.reshape(BL, head_dim), wo_ref[h],
                              preferred_element_type=jnp.float32)

    # ---- residual + LayerNorm1 (post-norm, PyTorch norm_first=False) ----
    y = _layer_norm(x + attn, ln1w_ref[0], ln1b_ref[0])

    # ---- feed-forward (ReLU, PyTorch default activation) ----
    h1 = jnp.dot(y, w1_ref[0], preferred_element_type=jnp.float32) + b1_ref[0]
    h1 = jnp.maximum(h1, 0.0)
    h2 = jnp.dot(h1, w2_ref[0], preferred_element_type=jnp.float32) + b2_ref[0]

    # ---- residual + LayerNorm2, write back for next layer ----
    xn = _layer_norm(y + h2, ln2w_ref[0], ln2b_ref[0])
    x_scr[...] = xn

    # ---- last step: AdaptiveAvgPool1d(1) over sequence + final FC ----
    @pl.when(li == pl.num_programs(0) - 1)
    def _head():
        pooled = jnp.mean(xn.reshape(batch, seq_len, hidden), axis=1)   # (B, hidden)
        out = jnp.dot(pooled, wfc_ref[...], preferred_element_type=jnp.float32)
        o_ref[...] = (out + bfc_ref[...]).astype(o_ref.dtype)


# ----------------------------------------------------------------------------
# Wrapper
# ----------------------------------------------------------------------------
@functools.partial(jax.jit, static_argnames=("num_heads", "output_dim"))
def video_transformer_forward(x, params, num_heads, output_dim):
    b, c, l, hh, ww = x.shape
    in_dim = c * hh * ww
    hidden = params["w_e"].shape[1]
    head_dim = hidden // num_heads
    num_layers = params["w1"].shape[0]
    ffn = params["w1"].shape[2]
    out_pad = params["w_fc_pad"].shape[1]
    bl = b * l

    # glue layout (matches torch.permute + reshape): (b,c,l,h,w) -> (b*l, c*h*w)
    x2d = jnp.transpose(x, (0, 2, 1, 3, 4)).reshape(bl, in_dim)
    pe_rows = jnp.tile(params["pe"][:l], (b, 1))              # (b*l, hidden)

    kernel = functools.partial(
        fused_layer_kernel,
        batch=b, seq_len=l, num_heads=num_heads, head_dim=head_dim)

    # Per-layer weights are blocked along the leading (layer) axis; everything
    # else uses a constant index_map and is DMA'd once (Pallas skips re-fetch
    # when the block index does not change).
    const2 = lambda i: (0, 0)
    lay3 = lambda i: (i, 0, 0)

    in_specs = [
        pl.BlockSpec((bl, in_dim), const2),                              # x2d
        pl.BlockSpec((in_dim, hidden), const2),                          # w_e
        pl.BlockSpec((1, hidden), const2),                               # b_e
        pl.BlockSpec((bl, hidden), const2),                              # pe_rows
        pl.BlockSpec((num_heads, hidden, head_dim), lay3),               # wq
        pl.BlockSpec((num_heads, 1, head_dim), lay3),                    # bq
        pl.BlockSpec((num_heads, hidden, head_dim), lay3),               # wk
        pl.BlockSpec((num_heads, 1, head_dim), lay3),                    # bk
        pl.BlockSpec((num_heads, hidden, head_dim), lay3),               # wv
        pl.BlockSpec((num_heads, 1, head_dim), lay3),                    # bv
        pl.BlockSpec((num_heads, head_dim, hidden), lay3),               # wo
        pl.BlockSpec((1, 1, hidden), lay3),                              # bo
        pl.BlockSpec((1, 1, hidden), lay3),                              # ln1_w
        pl.BlockSpec((1, 1, hidden), lay3),                              # ln1_b
        pl.BlockSpec((1, hidden, ffn), lay3),                            # w1
        pl.BlockSpec((1, 1, ffn), lay3),                                 # b1
        pl.BlockSpec((1, ffn, hidden), lay3),                            # w2
        pl.BlockSpec((1, 1, hidden), lay3),                              # b2
        pl.BlockSpec((1, 1, hidden), lay3),                              # ln2_w
        pl.BlockSpec((1, 1, hidden), lay3),                              # ln2_b
        pl.BlockSpec((hidden, out_pad), const2),                         # w_fc_pad
        pl.BlockSpec((1, out_pad), const2),                              # b_fc_pad
    ]

    grid_spec = pltpu.PrefetchScalarGridSpec(
        num_scalar_prefetch=0,
        grid=(num_layers,),
        in_specs=in_specs,
        out_specs=pl.BlockSpec((b, out_pad), const2),
        scratch_shapes=[pltpu.VMEM((bl, hidden), jnp.float32)],
    )

    out_padded = pl.pallas_call(
        kernel,
        out_shape=jax.ShapeDtypeStruct((b, out_pad), jnp.float32),
        grid_spec=grid_spec,
        compiler_params=pltpu.CompilerParams(
            dimension_semantics=("arbitrary",),
            vmem_limit_bytes=32 * 1024 * 1024),
    )(x2d, params["w_e"], params["b_e"], pe_rows,
      params["wq"], params["bq"], params["wk"], params["bk"],
      params["wv"], params["bv"], params["wo"], params["bo"],
      params["ln1_w"], params["ln1_b"], params["w1"], params["b1"],
      params["w2"], params["b2"], params["ln2_w"], params["ln2_b"],
      params["w_fc_pad"], params["b_fc_pad"])
    return out_padded[:, :output_dim]


# ----------------------------------------------------------------------------
# Deterministic parameter / positional-encoding construction
# ----------------------------------------------------------------------------
def make_positional_encoding(seq_len, hidden_dim):
    position = jnp.arange(seq_len, dtype=jnp.float32)[:, None]
    div_term = jnp.exp(jnp.arange(0, hidden_dim, 2, dtype=jnp.float32)
                       * (-math.log(10000.0) / hidden_dim))
    pe = jnp.zeros((seq_len, hidden_dim), dtype=jnp.float32)
    pe = pe.at[:, 0::2].set(jnp.sin(position * div_term))
    pe = pe.at[:, 1::2].set(jnp.cos(position * div_term))
    return pe


def init_params(key, input_dim, hidden_dim, num_heads, num_layers, output_dim,
                seq_len, dim_feedforward=2048, out_pad=128):
    head_dim = hidden_dim // num_heads

    def dense(k, fan_in, shape):
        return jax.random.normal(k, shape, jnp.float32) / math.sqrt(fan_in)

    keys = jax.random.split(key, 2 + num_layers)

    wq, wk, wv, wo, w1, w2 = [], [], [], [], [], []
    for li in range(num_layers):
        lk = jax.random.split(keys[2 + li], 6)
        wq.append(dense(lk[0], hidden_dim, (hidden_dim, hidden_dim)))
        wk.append(dense(lk[1], hidden_dim, (hidden_dim, hidden_dim)))
        wv.append(dense(lk[2], hidden_dim, (hidden_dim, hidden_dim)))
        wo.append(dense(lk[3], hidden_dim, (hidden_dim, hidden_dim)))
        w1.append(dense(lk[4], hidden_dim, (hidden_dim, dim_feedforward)))
        w2.append(dense(lk[5], dim_feedforward, (dim_feedforward, hidden_dim)))

    def split_heads_in(w_list):
        # (NL, H, H) -> (NL*nh, H, hd): split the output (lane) axis per head.
        w = jnp.stack(w_list).reshape(num_layers, hidden_dim, num_heads, head_dim)
        w = jnp.swapaxes(w, 1, 2)                    # (NL, nh, H, hd)
        return w.reshape(num_layers * num_heads, hidden_dim, head_dim)

    def split_heads_out(w_list):
        # (NL, H, H) -> (NL*nh, hd, H): split the input (row) axis per head.
        w = jnp.stack(w_list).reshape(num_layers, num_heads, head_dim, hidden_dim)
        return w.reshape(num_layers * num_heads, head_dim, hidden_dim)

    w_fc = dense(keys[1], hidden_dim, (hidden_dim, output_dim))
    w_fc_pad = (jnp.zeros((hidden_dim, out_pad), jnp.float32)
                .at[:, :output_dim].set(w_fc))

    params = {
        "w_e": dense(keys[0], input_dim, (input_dim, hidden_dim)),
        "b_e": jnp.zeros((1, hidden_dim), jnp.float32),
        "pe": make_positional_encoding(seq_len, hidden_dim),
        "wq": split_heads_in(wq),
        "bq": jnp.zeros((num_layers * num_heads, 1, head_dim), jnp.float32),
        "wk": split_heads_in(wk),
        "bk": jnp.zeros((num_layers * num_heads, 1, head_dim), jnp.float32),
        "wv": split_heads_in(wv),
        "bv": jnp.zeros((num_layers * num_heads, 1, head_dim), jnp.float32),
        "wo": split_heads_out(wo),
        "bo": jnp.zeros((num_layers, 1, hidden_dim), jnp.float32),
        "ln1_w": jnp.ones((num_layers, 1, hidden_dim), jnp.float32),
        "ln1_b": jnp.zeros((num_layers, 1, hidden_dim), jnp.float32),
        "w1": jnp.stack(w1),
        "b1": jnp.zeros((num_layers, 1, dim_feedforward), jnp.float32),
        "w2": jnp.stack(w2),
        "b2": jnp.zeros((num_layers, 1, hidden_dim), jnp.float32),
        "ln2_w": jnp.ones((num_layers, 1, hidden_dim), jnp.float32),
        "ln2_b": jnp.zeros((num_layers, 1, hidden_dim), jnp.float32),
        "w_fc_pad": w_fc_pad,
        "b_fc_pad": jnp.zeros((1, out_pad), jnp.float32),
    }
    return params


# ----------------------------------------------------------------------------
if __name__ == "__main__":
    # Shapes consistent with the module: x (b, c, l, h, w) = (2, 4, 8, 16, 16)
    B, C, L, HH, WW = 2, 4, 8, 16, 16
    INPUT_DIM = C * HH * WW          # 1024
    HIDDEN = 32
    NUM_HEADS = 4
    NUM_LAYERS = 2
    OUTPUT_DIM = 10
    FFN = 2048                       # nn.TransformerEncoderLayer default

    key = jax.random.PRNGKey(0)
    kx, kp = jax.random.split(key)
    x = jax.random.normal(kx, (B, C, L, HH, WW), jnp.float32)
    params = init_params(kp, INPUT_DIM, HIDDEN, NUM_HEADS, NUM_LAYERS,
                         OUTPUT_DIM, L, FFN)

    out = video_transformer_forward(x, params, NUM_HEADS, OUTPUT_DIM)
    out = jax.block_until_ready(out)
    assert out.shape == (B, OUTPUT_DIM) and out.dtype == jnp.float32
    print("KERNEL_OK")
</pallas_src>

<mosaic_0001>
module attributes {stable_mosaic.version = 11 : i64} {
  func.func @fused_layer_kernel(%arg0: i32, %arg1: memref<16x1024xf32, #tpu.memory_space<vmem>>, %arg2: memref<1024x32xf32, #tpu.memory_space<vmem>>, %arg3: memref<1x32xf32, #tpu.memory_space<vmem>>, %arg4: memref<16x32xf32, #tpu.memory_space<vmem>>, %arg5: memref<4x32x8xf32, #tpu.memory_space<vmem>>, %arg6: memref<4x1x8xf32, #tpu.memory_space<vmem>>, %arg7: memref<4x32x8xf32, #tpu.memory_space<vmem>>, %arg8: memref<4x1x8xf32, #tpu.memory_space<vmem>>, %arg9: memref<4x32x8xf32, #tpu.memory_space<vmem>>, %arg10: memref<4x1x8xf32, #tpu.memory_space<vmem>>, %arg11: memref<4x8x32xf32, #tpu.memory_space<vmem>>, %arg12: memref<1x1x32xf32, #tpu.memory_space<vmem>>, %arg13: memref<1x1x32xf32, #tpu.memory_space<vmem>>, %arg14: memref<1x1x32xf32, #tpu.memory_space<vmem>>, %arg15: memref<1x32x2048xf32, #tpu.memory_space<vmem>>, %arg16: memref<1x1x2048xf32, #tpu.memory_space<vmem>>, %arg17: memref<1x2048x32xf32, #tpu.memory_space<vmem>>, %arg18: memref<1x1x32xf32, #tpu.memory_space<vmem>>, %arg19: memref<1x1x32xf32, #tpu.memory_space<vmem>>, %arg20: memref<1x1x32xf32, #tpu.memory_space<vmem>>, %arg21: memref<32x128xf32, #tpu.memory_space<vmem>>, %arg22: memref<1x128xf32, #tpu.memory_space<vmem>>, %arg23: memref<2x128xf32, #tpu.memory_space<vmem>>, %arg24: memref<16x32xf32, #tpu.memory_space<vmem>>) attributes {dimension_semantics = [#tpu.dimension_semantics<arbitrary>], iteration_bounds = array<i64: 2>, scalar_prefetch = 0 : i64, scratch_operands = 1 : i64, tpu.core_type = #tpu.core_type<tc>, window_params = [{pipeline_mode = #tpu.pipeline_mode<synchronous>, transform_indices = @transform_0, window_bounds = array<i64: 16, 1024>}, {pipeline_mode = #tpu.pipeline_mode<synchronous>, transform_indices = @transform_1, window_bounds = array<i64: 1024, 32>}, {pipeline_mode = #tpu.pipeline_mode<synchronous>, transform_indices = @transform_2, window_bounds = array<i64: 1, 32>}, {pipeline_mode = #tpu.pipeline_mode<synchronous>, transform_indices = @transform_3, window_bounds = array<i64: 16, 32>}, {transform_indices = @transform_4, window_bounds = array<i64: 4, 32, 8>}, {transform_indices = @transform_5, window_bounds = array<i64: 4, 1, 8>}, {transform_indices = @transform_6, window_bounds = array<i64: 4, 32, 8>}, {transform_indices = @transform_7, window_bounds = array<i64: 4, 1, 8>}, {transform_indices = @transform_8, window_bounds = array<i64: 4, 32, 8>}, {transform_indices = @transform_9, window_bounds = array<i64: 4, 1, 8>}, {transform_indices = @transform_10, window_bounds = array<i64: 4, 8, 32>}, {transform_indices = @transform_11, window_bounds = array<i64: 1, 1, 32>}, {transform_indices = @transform_12, window_bounds = array<i64: 1, 1, 32>}, {transform_indices = @transform_13, window_bounds = array<i64: 1, 1, 32>}, {transform_indices = @transform_14, window_bounds = array<i64: 1, 32, 2048>}, {transform_indices = @transform_15, window_bounds = array<i64: 1, 1, 2048>}, {transform_indices = @transform_16, window_bounds = array<i64: 1, 2048, 32>}, {transform_indices = @transform_17, window_bounds = array<i64: 1, 1, 32>}, {transform_indices = @transform_18, window_bounds = array<i64: 1, 1, 32>}, {transform_indices = @transform_19, window_bounds = array<i64: 1, 1, 32>}, {pipeline_mode = #tpu.pipeline_mode<synchronous>, transform_indices = @transform_20, window_bounds = array<i64: 32, 128>}, {pipeline_mode = #tpu.pipeline_mode<synchronous>, transform_indices = @transform_21, window_bounds = array<i64: 1, 128>}, {pipeline_mode = #tpu.pipeline_mode<synchronous>, transform_indices = @transform_22, window_bounds = array<i64: 2, 128>}]} {
    %c0_i32 = arith.constant 0 : i32
    %0 = arith.cmpi eq, %arg0, %c0_i32 : i32
    %1 = arith.extui %0 : i1 to i32
    %c0_i32_0 = arith.constant 0 : i32
    %2 = arith.cmpi ne, %1, %c0_i32_0 : i32
    scf.if %2 {
      %c0_161 = arith.constant 0 : index
      %c0_162 = arith.constant 0 : index
      %253 = vector.load %arg1[%c0_161, %c0_162] : memref<16x1024xf32, #tpu.memory_space<vmem>>, vector<16x1024xf32>
      %c0_163 = arith.constant 0 : index
      %c0_164 = arith.constant 0 : index
      %254 = vector.load %arg2[%c0_163, %c0_164] : memref<1024x32xf32, #tpu.memory_space<vmem>>, vector<1024x32xf32>
      %cst_165 = arith.constant dense<0.000000e+00> : vector<16x32xf32>
      %255 = tpu.matmul %253, %254, %cst_165 {dimension_numbers = #tpu.dot_dimension_numbers<[1], [0], [0], [1], [0, 0, 1, 1], [], []>} : vector<16x1024xf32>, vector<1024x32xf32>, vector<16x32xf32> -> vector<16x32xf32>
      %c0_166 = arith.constant 0 : index
      %c0_167 = arith.constant 0 : index
      %256 = vector.load %arg3[%c0_166, %c0_167] : memref<1x32xf32, #tpu.memory_space<vmem>>, vector<1x32xf32>
      %257 = vector.broadcast %256 : vector<1x32xf32> to vector<16x32xf32>
      %258 = arith.addf %255, %257 : vector<16x32xf32>
      %c0_168 = arith.constant 0 : index
      %c0_169 = arith.constant 0 : index
      %259 = vector.load %arg4[%c0_168, %c0_169] : memref<16x32xf32, #tpu.memory_space<vmem>>, vector<16x32xf32>
      %260 = arith.addf %258, %259 : vector<16x32xf32>
      %c0_170 = arith.constant 0 : index
      %c0_171 = arith.constant 0 : index
      %261 = vector.load %arg24[%c0_170, %c0_171] : memref<16x32xf32, #tpu.memory_space<vmem>>, vector<16x32xf32>
      tpu.vector_store %arg24[%c0_170, %c0_171], %260 {strides = array<i32>} : memref<16x32xf32, #tpu.memory_space<vmem>>, vector<16x32xf32>,
    } else {
    }
    %c0 = arith.constant 0 : index
    %c0_1 = arith.constant 0 : index
    %3 = vector.load %arg24[%c0, %c0_1] : memref<16x32xf32, #tpu.memory_space<vmem>>, vector<16x32xf32>
    %c0_2 = arith.constant 0 : index
    %c0_3 = arith.constant 0 : index
    %c0_4 = arith.constant 0 : index
    %4 = vector.load %arg12[%c0_2, %c0_3, %c0_4] : memref<1x1x32xf32, #tpu.memory_space<vmem>>, vector<1x1x32xf32>
    %5 = vector.shape_cast %4 : vector<1x1x32xf32> to vector<1x32xf32>
    %c0_5 = arith.constant 0 : index
    %c0_6 = arith.constant 0 : index
    %c0_7 = arith.constant 0 : index
    %6 = vector.load %arg5[%c0_5, %c0_6, %c0_7] : memref<4x32x8xf32, #tpu.memory_space<vmem>>, vector<1x32x8xf32>
    %7 = vector.shape_cast %6 : vector<1x32x8xf32> to vector<32x8xf32>
    %cst = arith.constant dense<0.000000e+00> : vector<16x8xf32>
    %8 = tpu.matmul %3, %7, %cst {dimension_numbers = #tpu.dot_dimension_numbers<[1], [0], [0], [1], [0, 0, 1, 1], [], []>} : vector<16x32xf32>, vector<32x8xf32>, vector<16x8xf32> -> vector<16x8xf32>
    %c0_8 = arith.constant 0 : index
    %c0_9 = arith.constant 0 : index
    %c0_10 = arith.constant 0 : index
    %9 = vector.load %arg6[%c0_8, %c0_9, %c0_10] : memref<4x1x8xf32, #tpu.memory_space<vmem>>, vector<1x1x8xf32>
    %10 = vector.shape_cast %9 : vector<1x1x8xf32> to vector<1x8xf32>
    %11 = vector.broadcast %10 : vector<1x8xf32> to vector<16x8xf32>
    %12 = arith.addf %8, %11 : vector<16x8xf32>
    %c0_11 = arith.constant 0 : index
    %c0_12 = arith.constant 0 : index
    %c0_13 = arith.constant 0 : index
    %13 = vector.load %arg7[%c0_11, %c0_12, %c0_13] : memref<4x32x8xf32, #tpu.memory_space<vmem>>, vector<1x32x8xf32>
    %14 = vector.shape_cast %13 : vector<1x32x8xf32> to vector<32x8xf32>
    %cst_14 = arith.constant dense<0.000000e+00> : vector<16x8xf32>
    %15 = tpu.matmul %3, %14, %cst_14 {dimension_numbers = #tpu.dot_dimension_numbers<[1], [0], [0], [1], [0, 0, 1, 1], [], []>} : vector<16x32xf32>, vector<32x8xf32>, vector<16x8xf32> -> vector<16x8xf32>
    %c0_15 = arith.constant 0 : index
    %c0_16 = arith.constant 0 : index
    %c0_17 = arith.constant 0 : index
    %16 = vector.load %arg8[%c0_15, %c0_16, %c0_17] : memref<4x1x8xf32, #tpu.memory_space<vmem>>, vector<1x1x8xf32>
    %17 = vector.shape_cast %16 : vector<1x1x8xf32> to vector<1x8xf32>
    %18 = vector.broadcast %17 : vector<1x8xf32> to vector<16x8xf32>
    %19 = arith.addf %15, %18 : vector<16x8xf32>
    %c0_18 = arith.constant 0 : index
    %c0_19 = arith.constant 0 : index
    %c0_20 = arith.constant 0 : index
    %20 = vector.load %arg9[%c0_18, %c0_19, %c0_20] : memref<4x32x8xf32, #tpu.memory_space<vmem>>, vector<1x32x8xf32>
    %21 = vector.shape_cast %20 : vector<1x32x8xf32> to vector<32x8xf32>
    %cst_21 = arith.constant dense<0.000000e+00> : vector<16x8xf32>
    %22 = tpu.matmul %3, %21, %cst_21 {dimension_numbers = #tpu.dot_dimension_numbers<[1], [0], [0], [1], [0, 0, 1, 1], [], []>} : vector<16x32xf32>, vector<32x8xf32>, vector<16x8xf32> -> vector<16x8xf32>
    %c0_22 = arith.constant 0 : index
    %c0_23 = arith.constant 0 : index
    %c0_24 = arith.constant 0 : index
    %23 = vector.load %arg10[%c0_22, %c0_23, %c0_24] : memref<4x1x8xf32, #tpu.memory_space<vmem>>, vector<1x1x8xf32>
    %24 = vector.shape_cast %23 : vector<1x1x8xf32> to vector<1x8xf32>
    %25 = vector.broadcast %24 : vector<1x8xf32> to vector<16x8xf32>
    %26 = arith.addf %22, %25 : vector<16x8xf32>
    %cst_25 = arith.constant 0.353553385 : f32
    %27 = vector.broadcast %cst_25 : f32 to vector<16x8xf32>
    %28 = arith.mulf %12, %27 : vector<16x8xf32>
    %29 = vector.shape_cast %28 : vector<16x8xf32> to vector<2x8x8xf32>
    %30 = vector.shape_cast %19 : vector<16x8xf32> to vector<2x8x8xf32>
    %31 = vector.shape_cast %26 : vector<16x8xf32> to vector<2x8x8xf32>
    "tpu.trace_start"() <{level = 10 : i32, message = "bld,bmd->blm"}> : () -> ()
    %cst_26 = arith.constant dense<0.000000e+00> : vector<2x8x8xf32>
    %32 = tpu.matmul %29, %30, %cst_26 {dimension_numbers = #tpu.dot_dimension_numbers<[2], [2], [1], [1], [0, 0, 0, 1, 1, 1], [0], [0]>} : vector<2x8x8xf32>, vector<2x8x8xf32>, vector<2x8x8xf32> -> vector<2x8x8xf32>
    "tpu.trace_stop"() : () -> ()
    %cst_27 = arith.constant dense<0xFF800000> : vector<2x8xf32>
    %33 = vector.multi_reduction <maximumf>, %32, %cst_27 [2] : vector<2x8x8xf32> to vector<2x8xf32>
    %34 = vector.shape_cast %33 : vector<2x8xf32> to vector<2x8x1xf32>
    %35 = vector.broadcast %34 : vector<2x8x1xf32> to vector<2x8x8xf32>
    %36 = arith.subf %32, %35 : vector<2x8x8xf32>
    %37 = math.exp %36 : vector<2x8x8xf32>
    %cst_28 = arith.constant dense<0.000000e+00> : vector<2x8xf32>
    %38 = vector.multi_reduction <add>, %37, %cst_28 [2] : vector<2x8x8xf32> to vector<2x8xf32>
    %39 = vector.shape_cast %38 : vector<2x8xf32> to vector<2x8x1xf32>
    %40 = tpu.reciprocal %39 {approx = true} : vector<2x8x1xf32> -> vector<2x8x1xf32>
    %41 = vector.broadcast %40 : vector<2x8x1xf32> to vector<2x8x8xf32>
    %42 = arith.mulf %37, %41 : vector<2x8x8xf32>
    "tpu.trace_start"() <{level = 10 : i32, message = "blm,bmd->bld"}> : () -> ()
    %cst_29 = arith.constant dense<0.000000e+00> : vector<2x8x8xf32>
    %43 = tpu.matmul %42, %31, %cst_29 {dimension_numbers = #tpu.dot_dimension_numbers<[2], [1], [1], [2], [0, 0, 0, 1, 1, 2], [0], [0]>} : vector<2x8x8xf32>, vector<2x8x8xf32>, vector<2x8x8xf32> -> vector<2x8x8xf32>
    "tpu.trace_stop"() : () -> ()
    %44 = vector.shape_cast %43 : vector<2x8x8xf32> to vector<16x8xf32>
    %c0_30 = arith.constant 0 : index
    %c0_31 = arith.constant 0 : index
    %c0_32 = arith.constant 0 : index
    %45 = vector.load %arg11[%c0_30, %c0_31, %c0_32] : memref<4x8x32xf32, #tpu.memory_space<vmem>>, vector<1x8x32xf32>
    %46 = vector.shape_cast %45 : vector<1x8x32xf32> to vector<8x32xf32>
    %cst_33 = arith.constant dense<0.000000e+00> : vector<16x32xf32>
    %47 = tpu.matmul %44, %46, %cst_33 {dimension_numbers = #tpu.dot_dimension_numbers<[1], [0], [0], [1], [0, 0, 1, 1], [], []>} : vector<16x8xf32>, vector<8x32xf32>, vector<16x32xf32> -> vector<16x32xf32>
    %48 = vector.broadcast %5 : vector<1x32xf32> to vector<16x32xf32>
    %49 = arith.addf %48, %47 : vector<16x32xf32>
    %c1 = arith.constant 1 : index
    %c0_34 = arith.constant 0 : index
    %c0_35 = arith.constant 0 : index
    %50 = vector.load %arg5[%c1, %c0_34, %c0_35] : memref<4x32x8xf32, #tpu.memory_space<vmem>>, vector<1x32x8xf32>
    %51 = vector.shape_cast %50 : vector<1x32x8xf32> to vector<32x8xf32>
    %cst_36 = arith.constant dense<0.000000e+00> : vector<16x8xf32>
    %52 = tpu.matmul %3, %51, %cst_36 {dimension_numbers = #tpu.dot_dimension_numbers<[1], [0], [0], [1], [0, 0, 1, 1], [], []>} : vector<16x32xf32>, vector<32x8xf32>, vector<16x8xf32> -> vector<16x8xf32>
    %c1_37 = arith.constant 1 : index
    %c0_38 = arith.constant 0 : index
    %c0_39 = arith.constant 0 : index
    %53 = vector.load %arg6[%c1_37, %c0_38, %c0_39] : memref<4x1x8xf32, #tpu.memory_space<vmem>>, vector<1x1x8xf32>
    %54 = vector.shape_cast %53 : vector<1x1x8xf32> to vector<1x8xf32>
    %55 = vector.broadcast %54 : vector<1x8xf32> to vector<16x8xf32>
    %56 = arith.addf %52, %55 : vector<16x8xf32>
    %c1_40 = arith.constant 1 : index
    %c0_41 = arith.constant 0 : index
    %c0_42 = arith.constant 0 : index
    %57 = vector.load %arg7[%c1_40, %c0_41, %c0_42] : memref<4x32x8xf32, #tpu.memory_space<vmem>>, vector<1x32x8xf32>
    %58 = vector.shape_cast %57 : vector<1x32x8xf32> to vector<32x8xf32>
    %cst_43 = arith.constant dense<0.000000e+00> : vector<16x8xf32>
    %59 = tpu.matmul %3, %58, %cst_43 {dimension_numbers = #tpu.dot_dimension_numbers<[1], [0], [0], [1], [0, 0, 1, 1], [], []>} : vector<16x32xf32>, vector<32x8xf32>, vector<16x8xf32> -> vector<16x8xf32>
    %c1_44 = arith.constant 1 : index
    %c0_45 = arith.constant 0 : index
    %c0_46 = arith.constant 0 : index
    %60 = vector.load %arg8[%c1_44, %c0_45, %c0_46] : memref<4x1x8xf32, #tpu.memory_space<vmem>>, vector<1x1x8xf32>
    %61 = vector.shape_cast %60 : vector<1x1x8xf32> to vector<1x8xf32>
    %62 = vector.broadcast %61 : vector<1x8xf32> to vector<16x8xf32>
    %63 = arith.addf %59, %62 : vector<16x8xf32>
    %c1_47 = arith.constant 1 : index
    %c0_48 = arith.constant 0 : index
    %c0_49 = arith.constant 0 : index
    %64 = vector.load %arg9[%c1_47, %c0_48, %c0_49] : memref<4x32x8xf32, #tpu.memory_space<vmem>>, vector<1x32x8xf32>
    %65 = vector.shape_cast %64 : vector<1x32x8xf32> to vector<32x8xf32>
    %cst_50 = arith.constant dense<0.000000e+00> : vector<16x8xf32>
    %66 = tpu.matmul %3, %65, %cst_50 {dimension_numbers = #tpu.dot_dimension_numbers<[1], [0], [0], [1], [0, 0, 1, 1], [], []>} : vector<16x32xf32>, vector<32x8xf32>, vector<16x8xf32> -> vector<16x8xf32>
    %c1_51 = arith.constant 1 : index
    %c0_52 = arith.constant 0 : index
    %c0_53 = arith.constant 0 : index
    %67 = vector.load %arg10[%c1_51, %c0_52, %c0_53] : memref<4x1x8xf32, #tpu.memory_space<vmem>>, vector<1x1x8xf32>
    %68 = vector.shape_cast %67 : vector<1x1x8xf32> to vector<1x8xf32>
    %69 = vector.broadcast %68 : vector<1x8xf32> to vector<16x8xf32>
    %70 = arith.addf %66, %69 : vector<16x8xf32>
    %cst_54 = arith.constant 0.353553385 : f32
    %71 = vector.broadcast %cst_54 : f32 to vector<16x8xf32>
    %72 = arith.mulf %56, %71 : vector<16x8xf32>
    %73 = vector.shape_cast %72 : vector<16x8xf32> to vector<2x8x8xf32>
    %74 = vector.shape_cast %63 : vector<16x8xf32> to vector<2x8x8xf32>
    %75 = vector.shape_cast %70 : vector<16x8xf32> to vector<2x8x8xf32>
    "tpu.trace_start"() <{level = 10 : i32, message = "bld,bmd->blm"}> : () -> ()
    %cst_55 = arith.constant dense<0.000000e+00> : vector<2x8x8xf32>
    %76 = tpu.matmul %73, %74, %cst_55 {dimension_numbers = #tpu.dot_dimension_numbers<[2], [2], [1], [1], [0, 0, 0, 1, 1, 1], [0], [0]>} : vector<2x8x8xf32>, vector<2x8x8xf32>, vector<2x8x8xf32> -> vector<2x8x8xf32>
    "tpu.trace_stop"() : () -> ()
    %cst_56 = arith.constant dense<0xFF800000> : vector<2x8xf32>
    %77 = vector.multi_reduction <maximumf>, %76, %cst_56 [2] : vector<2x8x8xf32> to vector<2x8xf32>
    %78 = vector.shape_cast %77 : vector<2x8xf32> to vector<2x8x1xf32>
    %79 = vector.broadcast %78 : vector<2x8x1xf32> to vector<2x8x8xf32>
    %80 = arith.subf %76, %79 : vector<2x8x8xf32>
    %81 = math.exp %80 : vector<2x8x8xf32>
    %cst_57 = arith.constant dense<0.000000e+00> : vector<2x8xf32>
    %82 = vector.multi_reduction <add>, %81, %cst_57 [2] : vector<2x8x8xf32> to vector<2x8xf32>
    %83 = vector.shape_cast %82 : vector<2x8xf32> to vector<2x8x1xf32>
    %84 = tpu.reciprocal %83 {approx = true} : vector<2x8x1xf32> -> vector<2x8x1xf32>
    %85 = vector.broadcast %84 : vector<2x8x1xf32> to vector<2x8x8xf32>
    %86 = arith.mulf %81, %85 : vector<2x8x8xf32>
    "tpu.trace_start"() <{level = 10 : i32, message = "blm,bmd->bld"}> : () -> ()
    %cst_58 = arith.constant dense<0.000000e+00> : vector<2x8x8xf32>
    %87 = tpu.matmul %86, %75, %cst_58 {dimension_numbers = #tpu.dot_dimension_numbers<[2], [1], [1], [2], [0, 0, 0, 1, 1, 2], [0], [0]>} : vector<2x8x8xf32>, vector<2x8x8xf32>, vector<2x8x8xf32> -> vector<2x8x8xf32>
    "tpu.trace_stop"() : () -> ()
    %88 = vector.shape_cast %87 : vector<2x8x8xf32> to vector<16x8xf32>
    %c1_59 = arith.constant 1 : index
    %c0_60 = arith.constant 0 : index
    %c0_61 = arith.constant 0 : index
    %89 = vector.load %arg11[%c1_59, %c0_60, %c0_61] : memref<4x8x32xf32, #tpu.memory_space<vmem>>, vector<1x8x32xf32>
    %90 = vector.shape_cast %89 : vector<1x8x32xf32> to vector<8x32xf32>
    %cst_62 = arith.constant dense<0.000000e+00> : vector<16x32xf32>
    %91 = tpu.matmul %88, %90, %cst_62 {dimension_numbers = #tpu.dot_dimension_numbers<[1], [0], [0], [1], [0, 0, 1, 1], [], []>} : vector<16x8xf32>, vector<8x32xf32>, vector<16x32xf32> -> vector<16x32xf32>
    %92 = arith.addf %49, %91 : vector<16x32xf32>
    %c2 = arith.constant 2 : index
    %c0_63 = arith.constant 0 : index
    %c0_64 = arith.constant 0 : index
    %93 = vector.load %arg5[%c2, %c0_63, %c0_64] : memref<4x32x8xf32, #tpu.memory_space<vmem>>, vector<1x32x8xf32>
    %94 = vector.shape_cast %93 : vector<1x32x8xf32> to vector<32x8xf32>
    %cst_65 = arith.constant dense<0.000000e+00> : vector<16x8xf32>
    %95 = tpu.matmul %3, %94, %cst_65 {dimension_numbers = #tpu.dot_dimension_numbers<[1], [0], [0], [1], [0, 0, 1, 1], [], []>} : vector<16x32xf32>, vector<32x8xf32>, vector<16x8xf32> -> vector<16x8xf32>
    %c2_66 = arith.constant 2 : index
    %c0_67 = arith.constant 0 : index
    %c0_68 = arith.constant 0 : index
    %96 = vector.load %arg6[%c2_66, %c0_67, %c0_68] : memref<4x1x8xf32, #tpu.memory_space<vmem>>, vector<1x1x8xf32>
    %97 = vector.shape_cast %96 : vector<1x1x8xf32> to vector<1x8xf32>
    %98 = vector.broadcast %97 : vector<1x8xf32> to vector<16x8xf32>
    %99 = arith.addf %95, %98 : vector<16x8xf32>
    %c2_69 = arith.constant 2 : index
    %c0_70 = arith.constant 0 : index
    %c0_71 = arith.constant 0 : index
    %100 = vector.load %arg7[%c2_69, %c0_70, %c0_71] : memref<4x32x8xf32, #tpu.memory_space<vmem>>, vector<1x32x8xf32>
    %101 = vector.shape_cast %100 : vector<1x32x8xf32> to vector<32x8xf32>
    %cst_72 = arith.constant dense<0.000000e+00> : vector<16x8xf32>
    %102 = tpu.matmul %3, %101, %cst_72 {dimension_numbers = #tpu.dot_dimension_numbers<[1], [0], [0], [1], [0, 0, 1, 1], [], []>} : vector<16x32xf32>, vector<32x8xf32>, vector<16x8xf32> -> vector<16x8xf32>
    %c2_73 = arith.constant 2 : index
    %c0_74 = arith.constant 0 : index
    %c0_75 = arith.constant 0 : index
    %103 = vector.load %arg8[%c2_73, %c0_74, %c0_75] : memref<4x1x8xf32, #tpu.memory_space<vmem>>, vector<1x1x8xf32>
    %104 = vector.shape_cast %103 : vector<1x1x8xf32> to vector<1x8xf32>
    %105 = vector.broadcast %104 : vector<1x8xf32> to vector<16x8xf32>
    %106 = arith.addf %102, %105 : vector<16x8xf32>
    %c2_76 = arith.constant 2 : index
    %c0_77 = arith.constant 0 : index
    %c0_78 = arith.constant 0 : index
    %107 = vector.load %arg9[%c2_76, %c0_77, %c0_78] : memref<4x32x8xf32, #tpu.memory_space<vmem>>, vector<1x32x8xf32>
    %108 = vector.shape_cast %107 : vector<1x32x8xf32> to vector<32x8xf32>
    %cst_79 = arith.constant dense<0.000000e+00> : vector<16x8xf32>
    %109 = tpu.matmul %3, %108, %cst_79 {dimension_numbers = #tpu.dot_dimension_numbers<[1], [0], [0], [1], [0, 0, 1, 1], [], []>} : vector<16x32xf32>, vector<32x8xf32>, vector<16x8xf32> -> vector<16x8xf32>
    %c2_80 = arith.constant 2 : index
    %c0_81 = arith.constant 0 : index
    %c0_82 = arith.constant 0 : index
    %110 = vector.load %arg10[%c2_80, %c0_81, %c0_82] : memref<4x1x8xf32, #tpu.memory_space<vmem>>, vector<1x1x8xf32>
    %111 = vector.shape_cast %110 : vector<1x1x8xf32> to vector<1x8xf32>
    %112 = vector.broadcast %111 : vector<1x8xf32> to vector<16x8xf32>
    %113 = arith.addf %109, %112 : vector<16x8xf32>
    %cst_83 = arith.constant 0.353553385 : f32
    %114 = vector.broadcast %cst_83 : f32 to vector<16x8xf32>
    %115 = arith.mulf %99, %114 : vector<16x8xf32>
    %116 = vector.shape_cast %115 : vector<16x8xf32> to vector<2x8x8xf32>
    %117 = vector.shape_cast %106 : vector<16x8xf32> to vector<2x8x8xf32>
    %118 = vector.shape_cast %113 : vector<16x8xf32> to vector<2x8x8xf32>
    "tpu.trace_start"() <{level = 10 : i32, message = "bld,bmd->blm"}> : () -> ()
    %cst_84 = arith.constant dense<0.000000e+00> : vector<2x8x8xf32>
    %119 = tpu.matmul %116, %117, %cst_84 {dimension_numbers = #tpu.dot_dimension_numbers<[2], [2], [1], [1], [0, 0, 0, 1, 1, 1], [0], [0]>} : vector<2x8x8xf32>, vector<2x8x8xf32>, vector<2x8x8xf32> -> vector<2x8x8xf32>
    "tpu.trace_stop"() : () -> ()
    %cst_85 = arith.constant dense<0xFF800000> : vector<2x8xf32>
    %120 = vector.multi_reduction <maximumf>, %119, %cst_85 [2] : vector<2x8x8xf32> to vector<2x8xf32>
    %121 = vector.shape_cast %120 : vector<2x8xf32> to vector<2x8x1xf32>
    %122 = vector.broadcast %121 : vector<2x8x1xf32> to vector<2x8x8xf32>
    %123 = arith.subf %119, %122 : vector<2x8x8xf32>
    %124 = math.exp %123 : vector<2x8x8xf32>
    %cst_86 = arith.constant dense<0.000000e+00> : vector<2x8xf32>
    %125 = vector.multi_reduction <add>, %124, %cst_86 [2] : vector<2x8x8xf32> to vector<2x8xf32>
    %126 = vector.shape_cast %125 : vector<2x8xf32> to vector<2x8x1xf32>
    %127 = tpu.reciprocal %126 {approx = true} : vector<2x8x1xf32> -> vector<2x8x1xf32>
    %128 = vector.broadcast %127 : vector<2x8x1xf32> to vector<2x8x8xf32>
    %129 = arith.mulf %124, %128 : vector<2x8x8xf32>
    "tpu.trace_start"() <{level = 10 : i32, message = "blm,bmd->bld"}> : () -> ()
    %cst_87 = arith.constant dense<0.000000e+00> : vector<2x8x8xf32>
    %130 = tpu.matmul %129, %118, %cst_87 {dimension_numbers = #tpu.dot_dimension_numbers<[2], [1], [1], [2], [0, 0, 0, 1, 1, 2], [0], [0]>} : vector<2x8x8xf32>, vector<2x8x8xf32>, vector<2x8x8xf32> -> vector<2x8x8xf32>
    "tpu.trace_stop"() : () -> ()
    %131 = vector.shape_cast %130 : vector<2x8x8xf32> to vector<16x8xf32>
    %c2_88 = arith.constant 2 : index
    %c0_89 = arith.constant 0 : index
    %c0_90 = arith.constant 0 : index
    %132 = vector.load %arg11[%c2_88, %c0_89, %c0_90] : memref<4x8x32xf32, #tpu.memory_space<vmem>>, vector<1x8x32xf32>
    %133 = vector.shape_cast %132 : vector<1x8x32xf32> to vector<8x32xf32>
    %cst_91 = arith.constant dense<0.000000e+00> : vector<16x32xf32>
    %134 = tpu.matmul %131, %133, %cst_91 {dimension_numbers = #tpu.dot_dimension_numbers<[1], [0], [0], [1], [0, 0, 1, 1], [], []>} : vector<16x8xf32>, vector<8x32xf32>, vector<16x32xf32> -> vector<16x32xf32>
    %135 = arith.addf %92, %134 : vector<16x32xf32>
    %c3 = arith.constant 3 : index
    %c0_92 = arith.constant 0 : index
    %c0_93 = arith.constant 0 : index
    %136 = vector.load %arg5[%c3, %c0_92, %c0_93] : memref<4x32x8xf32, #tpu.memory_space<vmem>>, vector<1x32x8xf32>
    %137 = vector.shape_cast %136 : vector<1x32x8xf32> to vector<32x8xf32>
    %cst_94 = arith.constant dense<0.000000e+00> : vector<16x8xf32>
    %138 = tpu.matmul %3, %137, %cst_94 {dimension_numbers = #tpu.dot_dimension_numbers<[1], [0], [0], [1], [0, 0, 1, 1], [], []>} : vector<16x32xf32>, vector<32x8xf32>, vector<16x8xf32> -> vector<16x8xf32>
    %c3_95 = arith.constant 3 : index
    %c0_96 = arith.constant 0 : index
    %c0_97 = arith.constant 0 : index
    %139 = vector.load %arg6[%c3_95, %c0_96, %c0_97] : memref<4x1x8xf32, #tpu.memory_space<vmem>>, vector<1x1x8xf32>
    %140 = vector.shape_cast %139 : vector<1x1x8xf32> to vector<1x8xf32>
    %141 = vector.broadcast %140 : vector<1x8xf32> to vector<16x8xf32>
    %142 = arith.addf %138, %141 : vector<16x8xf32>
    %c3_98 = arith.constant 3 : index
    %c0_99 = arith.constant 0 : index
    %c0_100 = arith.constant 0 : index
    %143 = vector.load %arg7[%c3_98, %c0_99, %c0_100] : memref<4x32x8xf32, #tpu.memory_space<vmem>>, vector<1x32x8xf32>
    %144 = vector.shape_cast %143 : vector<1x32x8xf32> to vector<32x8xf32>
    %cst_101 = arith.constant dense<0.000000e+00> : vector<16x8xf32>
    %145 = tpu.matmul %3, %144, %cst_101 {dimension_numbers = #tpu.dot_dimension_numbers<[1], [0], [0], [1], [0, 0, 1, 1], [], []>} : vector<16x32xf32>, vector<32x8xf32>, vector<16x8xf32> -> vector<16x8xf32>
    %c3_102 = arith.constant 3 : index
    %c0_103 = arith.constant 0 : index
    %c0_104 = arith.constant 0 : index
    %146 = vector.load %arg8[%c3_102, %c0_103, %c0_104] : memref<4x1x8xf32, #tpu.memory_space<vmem>>, vector<1x1x8xf32>
    %147 = vector.shape_cast %146 : vector<1x1x8xf32> to vector<1x8xf32>
    %148 = vector.broadcast %147 : vector<1x8xf32> to vector<16x8xf32>
    %149 = arith.addf %145, %148 : vector<16x8xf32>
    %c3_105 = arith.constant 3 : index
    %c0_106 = arith.constant 0 : index
    %c0_107 = arith.constant 0 : index
    %150 = vector.load %arg9[%c3_105, %c0_106, %c0_107] : memref<4x32x8xf32, #tpu.memory_space<vmem>>, vector<1x32x8xf32>
    %151 = vector.shape_cast %150 : vector<1x32x8xf32> to vector<32x8xf32>
    %cst_108 = arith.constant dense<0.000000e+00> : vector<16x8xf32>
    %152 = tpu.matmul %3, %151, %cst_108 {dimension_numbers = #tpu.dot_dimension_numbers<[1], [0], [0], [1], [0, 0, 1, 1], [], []>} : vector<16x32xf32>, vector<32x8xf32>, vector<16x8xf32> -> vector<16x8xf32>
    %c3_109 = arith.constant 3 : index
    %c0_110 = arith.constant 0 : index
    %c0_111 = arith.constant 0 : index
    %153 = vector.load %arg10[%c3_109, %c0_110, %c0_111] : memref<4x1x8xf32, #tpu.memory_space<vmem>>, vector<1x1x8xf32>
    %154 = vector.shape_cast %153 : vector<1x1x8xf32> to vector<1x8xf32>
    %155 = vector.broadcast %154 : vector<1x8xf32> to vector<16x8xf32>
    %156 = arith.addf %152, %155 : vector<16x8xf32>
    %cst_112 = arith.constant 0.353553385 : f32
    %157 = vector.broadcast %cst_112 : f32 to vector<16x8xf32>
    %158 = arith.mulf %142, %157 : vector<16x8xf32>
    %159 = vector.shape_cast %158 : vector<16x8xf32> to vector<2x8x8xf32>
    %160 = vector.shape_cast %149 : vector<16x8xf32> to vector<2x8x8xf32>
    %161 = vector.shape_cast %156 : vector<16x8xf32> to vector<2x8x8xf32>
    "tpu.trace_start"() <{level = 10 : i32, message = "bld,bmd->blm"}> : () -> ()
    %cst_113 = arith.constant dense<0.000000e+00> : vector<2x8x8xf32>
    %162 = tpu.matmul %159, %160, %cst_113 {dimension_numbers = #tpu.dot_dimension_numbers<[2], [2], [1], [1], [0, 0, 0, 1, 1, 1], [0], [0]>} : vector<2x8x8xf32>, vector<2x8x8xf32>, vector<2x8x8xf32> -> vector<2x8x8xf32>
    "tpu.trace_stop"() : () -> ()
    %cst_114 = arith.constant dense<0xFF800000> : vector<2x8xf32>
    %163 = vector.multi_reduction <maximumf>, %162, %cst_114 [2] : vector<2x8x8xf32> to vector<2x8xf32>
    %164 = vector.shape_cast %163 : vector<2x8xf32> to vector<2x8x1xf32>
    %165 = vector.broadcast %164 : vector<2x8x1xf32> to vector<2x8x8xf32>
    %166 = arith.subf %162, %165 : vector<2x8x8xf32>
    %167 = math.exp %166 : vector<2x8x8xf32>
    %cst_115 = arith.constant dense<0.000000e+00> : vector<2x8xf32>
    %168 = vector.multi_reduction <add>, %167, %cst_115 [2] : vector<2x8x8xf32> to vector<2x8xf32>
    %169 = vector.shape_cast %168 : vector<2x8xf32> to vector<2x8x1xf32>
    %170 = tpu.reciprocal %169 {approx = true} : vector<2x8x1xf32> -> vector<2x8x1xf32>
    %171 = vector.broadcast %170 : vector<2x8x1xf32> to vector<2x8x8xf32>
    %172 = arith.mulf %167, %171 : vector<2x8x8xf32>
    "tpu.trace_start"() <{level = 10 : i32, message = "blm,bmd->bld"}> : () -> ()
    %cst_116 = arith.constant dense<0.000000e+00> : vector<2x8x8xf32>
    %173 = tpu.matmul %172, %161, %cst_116 {dimension_numbers = #tpu.dot_dimension_numbers<[2], [1], [1], [2], [0, 0, 0, 1, 1, 2], [0], [0]>} : vector<2x8x8xf32>, vector<2x8x8xf32>, vector<2x8x8xf32> -> vector<2x8x8xf32>
    "tpu.trace_stop"() : () -> ()
    %174 = vector.shape_cast %173 : vector<2x8x8xf32> to vector<16x8xf32>
    %c3_117 = arith.constant 3 : index
    %c0_118 = arith.constant 0 : index
    %c0_119 = arith.constant 0 : index
    %175 = vector.load %arg11[%c3_117, %c0_118, %c0_119] : memref<4x8x32xf32, #tpu.memory_space<vmem>>, vector<1x8x32xf32>
    %176 = vector.shape_cast %175 : vector<1x8x32xf32> to vector<8x32xf32>
    %cst_120 = arith.constant dense<0.000000e+00> : vector<16x32xf32>
    %177 = tpu.matmul %174, %176, %cst_120 {dimension_numbers = #tpu.dot_dimension_numbers<[1], [0], [0], [1], [0, 0, 1, 1], [], []>} : vector<16x8xf32>, vector<8x32xf32>, vector<16x32xf32> -> vector<16x32xf32>
    %178 = arith.addf %135, %177 : vector<16x32xf32>
    %179 = arith.addf %3, %178 : vector<16x32xf32>
    %c0_121 = arith.constant 0 : index
    %c0_122 = arith.constant 0 : index
    %c0_123 = arith.constant 0 : index
    %180 = vector.load %arg13[%c0_121, %c0_122, %c0_123] : memref<1x1x32xf32, #tpu.memory_space<vmem>>, vector<1x1x32xf32>
    %181 = vector.shape_cast %180 : vector<1x1x32xf32> to vector<1x32xf32>
    %c0_124 = arith.constant 0 : index
    %c0_125 = arith.constant 0 : index
    %c0_126 = arith.constant 0 : index
    %182 = vector.load %arg14[%c0_124, %c0_125, %c0_126] : memref<1x1x32xf32, #tpu.memory_space<vmem>>, vector<1x1x32xf32>
    %183 = vector.shape_cast %182 : vector<1x1x32xf32> to vector<1x32xf32>
    %cst_127 = arith.constant dense<0.000000e+00> : vector<16xf32>
    %184 = vector.multi_reduction <add>, %179, %cst_127 [1] : vector<16x32xf32> to vector<16xf32>
    %185 = vector.shape_cast %184 : vector<16xf32> to vector<16x1xf32>
    %cst_128 = arith.constant 3.200000e+01 : f32
    %186 = vector.broadcast %cst_128 : f32 to vector<16x1xf32>
    %187 = arith.divf %185, %186 : vector<16x1xf32>
    %188 = vector.broadcast %187 : vector<16x1xf32> to vector<16x32xf32>
    %189 = arith.subf %179, %188 : vector<16x32xf32>
    %190 = arith.mulf %189, %189 : vector<16x32xf32>
    %cst_129 = arith.constant dense<0.000000e+00> : vector<16xf32>
    %191 = vector.multi_reduction <add>, %190, %cst_129 [1] : vector<16x32xf32> to vector<16xf32>
    %192 = vector.shape_cast %191 : vector<16xf32> to vector<16x1xf32>
    %cst_130 = arith.constant 3.200000e+01 : f32
    %193 = vector.broadcast %cst_130 : f32 to vector<16x1xf32>
    %194 = arith.divf %192, %193 : vector<16x1xf32>
    %195 = vector.broadcast %187 : vector<16x1xf32> to vector<16x32xf32>
    %196 = arith.subf %179, %195 : vector<16x32xf32>
    %cst_131 = arith.constant 9.99999974E-6 : f32
    %197 = vector.broadcast %cst_131 : f32 to vector<16x1xf32>
    %198 = arith.addf %194, %197 : vector<16x1xf32>
    %199 = math.rsqrt %198 : vector<16x1xf32>
    %200 = vector.broadcast %199 : vector<16x1xf32> to vector<16x32xf32>
    %201 = arith.mulf %196, %200 : vector<16x32xf32>
    %202 = vector.broadcast %181 : vector<1x32xf32> to vector<16x32xf32>
    %203 = arith.mulf %201, %202 : vector<16x32xf32>
    %204 = vector.broadcast %183 : vector<1x32xf32> to vector<16x32xf32>
    %205 = arith.addf %203, %204 : vector<16x32xf32>
    %c0_132 = arith.constant 0 : index
    %c0_133 = arith.constant 0 : index
    %c0_134 = arith.constant 0 : index
    %206 = vector.load %arg15[%c0_132, %c0_133, %c0_134] : memref<1x32x2048xf32, #tpu.memory_space<vmem>>, vector<1x32x2048xf32>
    %207 = vector.shape_cast %206 : vector<1x32x2048xf32> to vector<32x2048xf32>
    %cst_135 = arith.constant dense<0.000000e+00> : vector<16x2048xf32>
    %208 = tpu.matmul %205, %207, %cst_135 {dimension_numbers = #tpu.dot_dimension_numbers<[1], [0], [0], [1], [0, 0, 1, 1], [], []>} : vector<16x32xf32>, vector<32x2048xf32>, vector<16x2048xf32> -> vector<16x2048xf32>
    %c0_136 = arith.constant 0 : index
    %c0_137 = arith.constant 0 : index
    %c0_138 = arith.constant 0 : index
    %209 = vector.load %arg16[%c0_136, %c0_137, %c0_138] : memref<1x1x2048xf32, #tpu.memory_space<vmem>>, vector<1x1x2048xf32>
    %210 = vector.shape_cast %209 : vector<1x1x2048xf32> to vector<1x2048xf32>
    %211 = vector.broadcast %210 : vector<1x2048xf32> to vector<16x2048xf32>
    %212 = arith.addf %208, %211 : vector<16x2048xf32>
    %cst_139 = arith.constant 0.000000e+00 : f32
    %213 = vector.broadcast %cst_139 : f32 to vector<16x2048xf32>
    %214 = arith.maximumf %212, %213 : vector<16x2048xf32>
    %c0_140 = arith.constant 0 : index
    %c0_141 = arith.constant 0 : index
    %c0_142 = arith.constant 0 : index
    %215 = vector.load %arg17[%c0_140, %c0_141, %c0_142] : memref<1x2048x32xf32, #tpu.memory_space<vmem>>, vector<1x2048x32xf32>
    %216 = vector.shape_cast %215 : vector<1x2048x32xf32> to vector<2048x32xf32>
    %cst_143 = arith.constant dense<0.000000e+00> : vector<16x32xf32>
    %217 = tpu.matmul %214, %216, %cst_143 {dimension_numbers = #tpu.dot_dimension_numbers<[1], [0], [0], [1], [0, 0, 1, 1], [], []>} : vector<16x2048xf32>, vector<2048x32xf32>, vector<16x32xf32> -> vector<16x32xf32>
    %c0_144 = arith.constant 0 : index
    %c0_145 = arith.constant 0 : index
    %c0_146 = arith.constant 0 : index
    %218 = vector.load %arg18[%c0_144, %c0_145, %c0_146] : memref<1x1x32xf32, #tpu.memory_space<vmem>>, vector<1x1x32xf32>
    %219 = vector.shape_cast %218 : vector<1x1x32xf32> to vector<1x32xf32>
    %220 = vector.broadcast %219 : vector<1x32xf32> to vector<16x32xf32>
    %221 = arith.addf %217, %220 : vector<16x32xf32>
    %222 = arith.addf %205, %221 : vector<16x32xf32>
    %c0_147 = arith.constant 0 : index
    %c0_148 = arith.constant 0 : index
    %c0_149 = arith.constant 0 : index
    %223 = vector.load %arg19[%c0_147, %c0_148, %c0_149] : memref<1x1x32xf32, #tpu.memory_space<vmem>>, vector<1x1x32xf32>
    %224 = vector.shape_cast %223 : vector<1x1x32xf32> to vector<1x32xf32>
    %c0_150 = arith.constant 0 : index
    %c0_151 = arith.constant 0 : index
    %c0_152 = arith.constant 0 : index
    %225 = vector.load %arg20[%c0_150, %c0_151, %c0_152] : memref<1x1x32xf32, #tpu.memory_space<vmem>>, vector<1x1x32xf32>
    %226 = vector.shape_cast %225 : vector<1x1x32xf32> to vector<1x32xf32>
    %cst_153 = arith.constant dense<0.000000e+00> : vector<16xf32>
    %227 = vector.multi_reduction <add>, %222, %cst_153 [1] : vector<16x32xf32> to vector<16xf32>
    %228 = vector.shape_cast %227 : vector<16xf32> to vector<16x1xf32>
    %cst_154 = arith.constant 3.200000e+01 : f32
    %229 = vector.broadcast %cst_154 : f32 to vector<16x1xf32>
    %230 = arith.divf %228, %229 : vector<16x1xf32>
    %231 = vector.broadcast %230 : vector<16x1xf32> to vector<16x32xf32>
    %232 = arith.subf %222, %231 : vector<16x32xf32>
    %233 = arith.mulf %232, %232 : vector<16x32xf32>
    %cst_155 = arith.constant dense<0.000000e+00> : vector<16xf32>
    %234 = vector.multi_reduction <add>, %233, %cst_155 [1] : vector<16x32xf32> to vector<16xf32>
    %235 = vector.shape_cast %234 : vector<16xf32> to vector<16x1xf32>
    %cst_156 = arith.constant 3.200000e+01 : f32
    %236 = vector.broadcast %cst_156 : f32 to vector<16x1xf32>
    %237 = arith.divf %235, %236 : vector<16x1xf32>
    %238 = vector.broadcast %230 : vector<16x1xf32> to vector<16x32xf32>
    %239 = arith.subf %222, %238 : vector<16x32xf32>
    %cst_157 = arith.constant 9.99999974E-6 : f32
    %240 = vector.broadcast %cst_157 : f32 to vector<16x1xf32>
    %241 = arith.addf %237, %240 : vector<16x1xf32>
    %242 = math.rsqrt %241 : vector<16x1xf32>
    %243 = vector.broadcast %242 : vector<16x1xf32> to vector<16x32xf32>
    %244 = arith.mulf %239, %243 : vector<16x32xf32>
    %245 = vector.broadcast %224 : vector<1x32xf32> to vector<16x32xf32>
    %246 = arith.mulf %244, %245 : vector<16x32xf32>
    %247 = vector.broadcast %226 : vector<1x32xf32> to vector<16x32xf32>
    %248 = arith.addf %246, %247 : vector<16x32xf32>
    %c0_158 = arith.constant 0 : index
    %c0_159 = arith.constant 0 : index
    %249 = vector.load %arg24[%c0_158, %c0_159] : memref<16x32xf32, #tpu.memory_space<vmem>>, vector<16x32xf32>
    tpu.vector_store %arg24[%c0_158, %c0_159], %248 {strides = array<i32>} : memref<16x32xf32, #tpu.memory_space<vmem>>, vector<16x32xf32>,
    %c1_i32 = arith.constant 1 : i32
    %250 = arith.cmpi eq, %arg0, %c1_i32 : i32
    %251 = arith.extui %250 : i1 to i32
    %c0_i32_160 = arith.constant 0 : i32
    %252 = arith.cmpi ne, %251, %c0_i32_160 : i32
    scf.if %252 {
      %253 = vector.shape_cast %248 : vector<16x32xf32> to vector<2x8x32xf32>
      %cst_161 = arith.constant dense<0.000000e+00> : vector<2x32xf32>
      %254 = vector.multi_reduction <add>, %253, %cst_161 [1] : vector<2x8x32xf32> to vector<2x32xf32>
      %cst_162 = arith.constant 8.000000e+00 : f32
      %255 = vector.broadcast %cst_162 : f32 to vector<2x32xf32>
      %256 = arith.divf %254, %255 : vector<2x32xf32>
      %c0_163 = arith.constant 0 : index
      %c0_164 = arith.constant 0 : index
      %257 = vector.load %arg21[%c0_163, %c0_164] : memref<32x128xf32, #tpu.memory_space<vmem>>, vector<32x128xf32>
      %cst_165 = arith.constant dense<0.000000e+00> : vector<2x128xf32>
      %258 = tpu.matmul %256, %257, %cst_165 {dimension_numbers = #tpu.dot_dimension_numbers<[1], [0], [0], [1], [0, 0, 1, 1], [], []>} : vector<2x32xf32>, vector<32x128xf32>, vector<2x128xf32> -> vector<2x128xf32>
      %c0_166 = arith.constant 0 : index
      %c0_167 = arith.constant 0 : index
      %259 = vector.load %arg22[%c0_166, %c0_167] : memref<1x128xf32, #tpu.memory_space<vmem>>, vector<1x128xf32>
      %260 = vector.broadcast %259 : vector<1x128xf32> to vector<2x128xf32>
      %261 = arith.addf %258, %260 : vector<2x128xf32>
      %c0_168 = arith.constant 0 : index
      %c0_169 = arith.constant 0 : index
      %262 = vector.load %arg23[%c0_168, %c0_169] : memref<2x128xf32, #tpu.memory_space<vmem>>, vector<2x128xf32>
      tpu.vector_store %arg23[%c0_168, %c0_169], %261 {strides = array<i32>} : memref<2x128xf32, #tpu.memory_space<vmem>>, vector<2x128xf32>,
    } else {
    }
    return
  }
  func.func @transform_0(%arg0: i32) -> (i32, i32) {
    %c0_i32 = arith.constant 0 : i32
    %c0_i32_0 = arith.constant 0 : i32
    %c0_i32_1 = arith.constant 0 : i32
    return %c0_i32, %c0_i32_0 : i32, i32
  }
  func.func @transform_1(%arg0: i32) -> (i32, i32) {
    %c0_i32 = arith.constant 0 : i32
    %c0_i32_0 = arith.constant 0 : i32
    %c0_i32_1 = arith.constant 0 : i32
    return %c0_i32, %c0_i32_0 : i32, i32
  }
  func.func @transform_2(%arg0: i32) -> (i32, i32) {
    %c0_i32 = arith.constant 0 : i32
    %c0_i32_0 = arith.constant 0 : i32
    %c0_i32_1 = arith.constant 0 : i32
    return %c0_i32, %c0_i32_0 : i32, i32
  }
  func.func @transform_3(%arg0: i32) -> (i32, i32) {
    %c0_i32 = arith.constant 0 : i32
    %c0_i32_0 = arith.constant 0 : i32
    %c0_i32_1 = arith.constant 0 : i32
    return %c0_i32, %c0_i32_0 : i32, i32
  }
  func.func @transform_4(%arg0: i32) -> (i32, i32, i32) {
    %c0_i32 = arith.constant 0 : i32
    %c0_i32_0 = arith.constant 0 : i32
    %c0_i32_1 = arith.constant 0 : i32
    return %arg0, %c0_i32, %c0_i32_0 : i32, i32, i32
  }
  func.func @transform_5(%arg0: i32) -> (i32, i32, i32) {
    %c0_i32 = arith.constant 0 : i32
    %c0_i32_0 = arith.constant 0 : i32
    %c0_i32_1 = arith.constant 0 : i32
    return %arg0, %c0_i32, %c0_i32_0 : i32, i32, i32
  }
  func.func @transform_6(%arg0: i32) -> (i32, i32, i32) {
    %c0_i32 = arith.constant 0 : i32
    %c0_i32_0 = arith.constant 0 : i32
    %c0_i32_1 = arith.constant 0 : i32
    return %arg0, %c0_i32, %c0_i32_0 : i32, i32, i32
  }
  func.func @transform_7(%arg0: i32) -> (i32, i32, i32) {
    %c0_i32 = arith.constant 0 : i32
    %c0_i32_0 = arith.constant 0 : i32
    %c0_i32_1 = arith.constant 0 : i32
    return %arg0, %c0_i32, %c0_i32_0 : i32, i32, i32
  }
  func.func @transform_8(%arg0: i32) -> (i32, i32, i32) {
    %c0_i32 = arith.constant 0 : i32
    %c0_i32_0 = arith.constant 0 : i32
    %c0_i32_1 = arith.constant 0 : i32
    return %arg0, %c0_i32, %c0_i32_0 : i32, i32, i32
  }
  func.func @transform_9(%arg0: i32) -> (i32, i32, i32) {
    %c0_i32 = arith.constant 0 : i32
    %c0_i32_0 = arith.constant 0 : i32
    %c0_i32_1 = arith.constant 0 : i32
    return %arg0, %c0_i32, %c0_i32_0 : i32, i32, i32
  }
  func.func @transform_10(%arg0: i32) -> (i32, i32, i32) {
    %c0_i32 = arith.constant 0 : i32
    %c0_i32_0 = arith.constant 0 : i32
    %c0_i32_1 = arith.constant 0 : i32
    return %arg0, %c0_i32, %c0_i32_0 : i32, i32, i32
  }
  func.func @transform_11(%arg0: i32) -> (i32, i32, i32) {
    %c0_i32 = arith.constant 0 : i32
    %c0_i32_0 = arith.constant 0 : i32
    %c0_i32_1 = arith.constant 0 : i32
    return %arg0, %c0_i32, %c0_i32_0 : i32, i32, i32
  }
  func.func @transform_12(%arg0: i32) -> (i32, i32, i32) {
    %c0_i32 = arith.constant 0 : i32
    %c0_i32_0 = arith.constant 0 : i32
    %c0_i32_1 = arith.constant 0 : i32
    return %arg0, %c0_i32, %c0_i32_0 : i32, i32, i32
  }
  func.func @transform_13(%arg0: i32) -> (i32, i32, i32) {
    %c0_i32 = arith.constant 0 : i32
    %c0_i32_0 = arith.constant 0 : i32
    %c0_i32_1 = arith.constant 0 : i32
    return %arg0, %c0_i32, %c0_i32_0 : i32, i32, i32
  }
  func.func @transform_14(%arg0: i32) -> (i32, i32, i32) {
    %c0_i32 = arith.constant 0 : i32
    %c0_i32_0 = arith.constant 0 : i32
    %c0_i32_1 = arith.constant 0 : i32
    return %arg0, %c0_i32, %c0_i32_0 : i32, i32, i32
  }
  func.func @transform_15(%arg0: i32) -> (i32, i32, i32) {
    %c0_i32 = arith.constant 0 : i32
    %c0_i32_0 = arith.constant 0 : i32
    %c0_i32_1 = arith.constant 0 : i32
    return %arg0, %c0_i32, %c0_i32_0 : i32, i32, i32
  }
  func.func @transform_16(%arg0: i32) -> (i32, i32, i32) {
    %c0_i32 = arith.constant 0 : i32
    %c0_i32_0 = arith.constant 0 : i32
    %c0_i32_1 = arith.constant 0 : i32
    return %arg0, %c0_i32, %c0_i32_0 : i32, i32, i32
  }
  func.func @transform_17(%arg0: i32) -> (i32, i32, i32) {
    %c0_i32 = arith.constant 0 : i32
    %c0_i32_0 = arith.constant 0 : i32
    %c0_i32_1 = arith.constant 0 : i32
    return %arg0, %c0_i32, %c0_i32_0 : i32, i32, i32
  }
  func.func @transform_18(%arg0: i32) -> (i32, i32, i32) {
    %c0_i32 = arith.constant 0 : i32
    %c0_i32_0 = arith.constant 0 : i32
    %c0_i32_1 = arith.constant 0 : i32
    return %arg0, %c0_i32, %c0_i32_0 : i32, i32, i32
  }
  func.func @transform_19(%arg0: i32) -> (i32, i32, i32) {
    %c0_i32 = arith.constant 0 : i32
    %c0_i32_0 = arith.constant 0 : i32
    %c0_i32_1 = arith.constant 0 : i32
    return %arg0, %c0_i32, %c0_i32_0 : i32, i32, i32
  }
  func.func @transform_20(%arg0: i32) -> (i32, i32) {
    %c0_i32 = arith.constant 0 : i32
    %c0_i32_0 = arith.constant 0 : i32
    %c0_i32_1 = arith.constant 0 : i32
    return %c0_i32, %c0_i32_0 : i32, i32
  }
  func.func @transform_21(%arg0: i32) -> (i32, i32) {
    %c0_i32 = arith.constant 0 : i32
    %c0_i32_0 = arith.constant 0 : i32
    %c0_i32_1 = arith.constant 0 : i32
    return %c0_i32, %c0_i32_0 : i32, i32
  }
  func.func @transform_22(%arg0: i32) -> (i32, i32) {
    %c0_i32 = arith.constant 0 : i32
    %c0_i32_0 = arith.constant 0 : i32
    %c0_i32_1 = arith.constant 0 : i32
    return %c0_i32, %c0_i32_0 : i32, i32
  }
}

</mosaic_0001>

<bundles_post_ra>
// kernel: video_transformer_forward.1
= control target key start
LH: loop header
LB: loop body
LE: loop exit
PB: predicated region body
PF: predicated region fallthrough
CT: control target
= control target key end

     0   :  { %s8713_s0 = inlined_call_operand.vmem [shape: f32[16,1024], index: 0, kind: input, shape index: {}]   ;;  %s8714_s1 = inlined_call_operand.vmem [shape: f32[1024,32], index: 1, kind: input, shape index: {}]   ;;  %s8715_s2 = inlined_call_operand.vmem [shape: f32[1,32], index: 2, kind: input, shape index: {}]   ;;  %s8716_s3 = inlined_call_operand.vmem [shape: f32[16,32], index: 3, kind: input, shape index: {}]   ;;  %s8717_s4 = inlined_call_operand.vmem [shape: f32[8,32,8], index: 4, kind: input, shape index: {}]   ;;  %s8718_s5 = inlined_call_operand.vmem [shape: f32[8,1,8], index: 5, kind: input, shape index: {}]   ;;  %s8719_s6 = inlined_call_operand.vmem [shape: f32[8,32,8], index: 6, kind: input, shape index: {}]   ;;  %s8720_s7 = inlined_call_operand.vmem [shape: f32[8,1,8], index: 7, kind: input, shape index: {}]   ;;  %s8721_s8 = inlined_call_operand.vmem [shape: f32[8,32,8], index: 8, kind: input, shape index: {}]   ;;  %s8722_s9 = inlined_call_operand.vmem [shape: f32[8,1,8], index: 9, kind: input, shape index: {}]   ;;  %s8723_s10 = inlined_call_operand.vmem [shape: f32[8,8,32], index: 10, kind: input, shape index: {}]   ;;  %s8724_s11 = inlined_call_operand.vmem [shape: f32[2,1,32], index: 11, kind: input, shape index: {}]   ;;  %s8725_s12 = inlined_call_operand.vmem [shape: f32[2,1,32], index: 12, kind: input, shape index: {}]   ;;  %s8726_s13 = inlined_call_operand.vmem [shape: f32[2,1,32], index: 13, kind: input, shape index: {}]   ;;  %s8727_s14 = inlined_call_operand.vmem [shape: f32[2,32,2048], index: 14, kind: input, shape index: {}]   ;;  %s8728_s15 = inlined_call_operand.vmem [shape: f32[2,1,2048], index: 15, kind: input, shape index: {}]   ;;  %s8729_s16 = inlined_call_operand.vmem [shape: f32[2,2048,32], index: 16, kind: input, shape index: {}]   ;;  %s8730_s17 = inlined_call_operand.vmem [shape: f32[2,1,32], index: 17, kind: input, shape index: {}]   ;;  %s8731_s18 = inlined_call_operand.vmem [shape: f32[2,1,32], index: 18, kind: input, shape index: {}]   ;;  %s8732_s19 = inlined_call_operand.vmem [shape: f32[2,1,32], index: 19, kind: input, shape index: {}]   ;;  %s8733_s20 = inlined_call_operand.vmem [shape: f32[32,128], index: 20, kind: input, shape index: {}]   ;;  %s8734_s21 = inlined_call_operand.vmem [shape: f32[1,128], index: 21, kind: input, shape index: {}]   ;;  %s8735_s22 = inlined_call_operand.hbm [shape: f32[2,128], index: 22, kind: output, shape index: {}]  }
   0x1   :  { %8743 = sst [smem:[#allocation9_spill]] %s8713_s0 }
   0x2   :  { %8744 = sst [smem:[#allocation10_spill]] %s8714_s1 }
   0x3   :  { %8745 = sst [smem:[#allocation11_spill]] %s8715_s2 }
   0x4   :  { %8746 = sst [smem:[#allocation12_spill]] %s8716_s3 }
   0x5   :  { %8747 = sst [smem:[#allocation13_spill]] %s8717_s4 }
   0x6   :  { %8748 = sst [smem:[#allocation14_spill]] %s8718_s5 }
   0x7   :  { %8749 = sst [smem:[#allocation15_spill]] %s8719_s6 }
   0x8   :  { %8750 = sst [smem:[#allocation16_spill]] %s8720_s7 }
   0x9   :  { %8751 = sst [smem:[#allocation17_spill]] %s8721_s8 }
   0xa   :  { %8752 = sst [smem:[#allocation18_spill]] %s8722_s9 }
   0xb   :  { %8753 = sst [smem:[#allocation19_spill]] %s8723_s10 }
   0xc   :  { %8754 = sst [smem:[#allocation20_spill]] %s8724_s11 }
   0xd   :  { %8755 = sst [smem:[#allocation21_spill]] %s8725_s12 }
   0xe   :  { %8756 = sst [smem:[#allocation22_spill]] %s8733_s20 }
   0xf   :  { %8757 = sst [smem:[#allocation23_spill]] %s8734_s21 }
  0x10   :  { %8758 = sst [smem:[#allocation24_spill]] %s8735_s22 }
  0x11   :  { %27 = vsyncpa [#allocation4], 0  ;;  %s7379_s3 = smov 0  }
  0x12 LB: > { %8759 = sst [smem:[#allocation6_spill]] %s7257_s3  ;;  %s7385_s28 = sadd.s32 4294967295, %s7257_s3   ;;  %s7257_s3 = sphi %s7379_s3, %s33_s3  }
  0x13   : > { %p6172_p0 = scmp.ge.s32.totalorder %s7257_s3, 1  ;;  %p752_p1 = scmp.lt.s32.totalorder %s7257_s3, 3 }
  0x15   : > { %p753_p2 = pnand %p6172_p0, %p752_p1 }
  0x17   : > { %756 = sbr.rel (%p753_p2) target bundleno = 5535 (0x159f), region = 108 }
  0x1c   : > { %s6173_s29 = sshll.u32 %s7385_s28, 2  ;;  %p913_p3 = scmp.lt.s32.totalorder %s7385_s28, 1 }
  0x1d   : > { %p872_p4 = scmp.lt.s32.totalorder %s6173_s29, 7  ;;  %s8762_s2 = sld [smem:[#allocation14_spill]] }
  0x1e   : > { %s7392_s30 = scalar_select %p913_p3, %s7385_s28, 1 }
  0x1f   : > { %s8789_s29 = smov (!%p872_p4, %s6173_s29), 7  ;;  %s8764_s21 = sld [smem:[#allocation13_spill]] }
  0x20   : > { %s6339_s6 = sshll.u32 %s8789_s29, 5  ;;  %s8765_s23 = sld [smem:[#allocation15_spill]] }
  0x21   : > { %s8766_s7 = sld [smem:[#allocation16_spill]]  ;;  %s6186_s11 = sshll.u32 %s8789_s29, 3 }
  0x22   : > { %s8768_s8 = sld [smem:[#allocation17_spill]]  ;;  %s944_s22 = scalar_lea.vmem %s8732_s19, %s7392_s30 }
  0x23   : > { %s7405_s27 = scalar_lea.vmem %s8762_s2, %s8789_s29  ;;  %s8769_s9 = sld [smem:[#allocation18_spill]] }
  0x24   : > { %8763 = sst [smem:[#allocation7_spill]] %s7405_s27  ;;  %p6192_p5 = scmp.ne.s32.totalorder %s7385_s28, 0 }
  0x25   : > { %s7410_s20 = scalar_lea.vmem %s8764_s21, %s6339_s6  ;;  %s8770_s10 = sld [smem:[#allocation19_spill]] }
  0x26   : > { %s7415_s1 = scalar_lea.vmem %s8765_s23, %s6339_s6  ;;  %s8771_s4 = sld [smem:[#allocation10_spill]] (!%p6192_p5) }
  0x27   : > { %s7420_s12 = scalar_lea.vmem %s8766_s7, %s8789_s29  ;;  %s6342_s7 = sshll.u32 %s7392_s30, 9 }
  0x28   : > { %8767 = sst [smem:[#allocation8_spill]] %s7420_s12  ;;  %s7425_s2 = scalar_lea.vmem %s8768_s8, %s6339_s6 }
  0x29   : > { %s7430_s21 = scalar_lea.vmem %s8769_s9, %s8789_s29  ;;  %s6189_s12 = sshll.u32 %s7392_s30, 4 }
  0x2a   : > { %s7446_s26 = scalar_lea.vmem %s8727_s14, %s6342_s7  ;;  %s7451_s29 = scalar_lea.vmem %s8728_s15, %s6189_s12 }
  0x2b   : > { %s7435_s23 = scalar_lea.vmem %s8770_s10, %s6186_s11  ;;  %s6343_s8 = sshll.u32 %s7392_s30, 11 }
  0x2c   : > { %s7461_s24 = scalar_lea.vmem %s8729_s16, %s6343_s8  ;;  %s941_s7 = scalar_lea.vmem %s8731_s18, %s7392_s30 }
  0x2d   : > { %948 = sbr.rel (%p6192_p5) target bundleno = 329 (0x149), region = 112  ;;  %s8772_s5 = sld [smem:[#allocation9_spill]] (!%p6192_p5) }
  0x2e   : > { %s8773_s6 = sld [smem:[#allocation11_spill]] (!%p6192_p5) }
  0x2f   : > { %s8774_s3 = sld [smem:[#allocation12_spill]] (!%p6192_p5) }
  0x32   : > { %v996_v0 = vld [vmem:[%s8771_s4 + $0xf8] sm:$0xff]  ;;  %v995_v4 = vld [vmem:[%s8771_s4 + $0xf0] sm:$0xff]  ;;  %v994_v8 = vld [vmem:[%s8771_s4 + $0xe8] sm:$0xff]  ;;  %vm1404_vm0 = vcmask 261120  }
  0x33   : > { %v1028_v1 = vld [vmem:[%s8771_s4 + $0x1f8] sm:$0xff]  ;;  %6344 = vmatprep.subr.mxu0 %v996_v0  ;;  %v1027_v5 = vld [vmem:[%s8771_s4 + $0x1f0] sm:$0xff]  ;;  %v1026_v9 = vld [vmem:[%s8771_s4 + $0x1e8] sm:$0xff] }
  0x34   : > { %v980_v2 = vld [vmem:[%s8771_s4 + $0x78] sm:$0xff]  ;;  %6382 = vmatprep.subr.mxu1 %v1028_v1  ;;  %v979_v6 = vld [vmem:[%s8771_s4 + $0x70] sm:$0xff]  ;;  %v978_v10 = vld [vmem:[%s8771_s4 + $0x68] sm:$0xff] }
  0x35   : > { %v1012_v3 = vld [vmem:[%s8771_s4 + $0x178] sm:$0xff]  ;;  %6345 = vmatpush3.msra.mxu0 %v980_v2  ;;  %v1011_v7 = vld [vmem:[%s8771_s4 + $0x170] sm:$0xff]  ;;  %v1010_v11 = vld [vmem:[%s8771_s4 + $0x168] sm:$0xff]  ;;  %s8775_s11 = smov %s8774_s3 }
  0x36   : > { %6383 = vmatpush3.msra.mxu1 %v1012_v3  ;;  %6346 = vmatprep.subr.mxu0 %v995_v4  ;;  %v993_v12 = vld [vmem:[%s8771_s4 + $0xe0] sm:$0xff]  ;;  %v992_v16 = vld [vmem:[%s8771_s4 + $0xd8] sm:$0xff]  ;;  %v991_v20 = vld [vmem:[%s8771_s4 + $0xd0] sm:$0xff] }
  0x37   : > { %6384 = vmatprep.subr.mxu1 %v1027_v5  ;;  %6347 = vmatpush3.msra.mxu0 %v979_v6  ;;  %v1025_v13 = vld [vmem:[%s8771_s4 + $0x1e0] sm:$0xff]  ;;  %v1024_v17 = vld [vmem:[%s8771_s4 + $0x1d8] sm:$0xff]  ;;  %v1023_v21 = vld [vmem:[%s8771_s4 + $0x1d0] sm:$0xff] }
  0x38   : > { %6385 = vmatpush3.msra.mxu1 %v1011_v7  ;;  %6348 = vmatprep.subr.mxu0 %v994_v8  ;;  %v977_v14 = vld [vmem:[%s8771_s4 + $0x60] sm:$0xff]  ;;  %v976_v18 = vld [vmem:[%s8771_s4 + $0x58] sm:$0xff]  ;;  %v975_v22 = vld [vmem:[%s8771_s4 + $0x50] sm:$0xff] }
  0x39   : > { %6386 = vmatprep.subr.mxu1 %v1026_v9  ;;  %v1009_v15 = vld [vmem:[%s8771_s4 + $0x160] sm:$0xff]  ;;  %6349 = vmatpush3.msra.mxu0 %v978_v10  ;;  %v1008_v19 = vld [vmem:[%s8771_s4 + $0x158] sm:$0xff]  ;;  %v1007_v23 = vld [vmem:[%s8771_s4 + $0x150] sm:$0xff] }
  0x3a   : > { %6387 = vmatpush3.msra.mxu1 %v1010_v11  ;;  %6350 = vmatprep.subr.mxu0 %v993_v12  ;;  %v990_v24 = vld [vmem:[%s8771_s4 + $0xc8] sm:$0xff]  ;;  %v989_v28 = vld [vmem:[%s8771_s4 + $0xc0] sm:$0xff]  ;;  %v988_v32 = vld [vmem:[%s8771_s4 + $0xb8] sm:$0xff] }
  0x3b   : > { %6388 = vmatprep.subr.mxu1 %v1025_v13  ;;  %6351 = vmatpush3.msra.mxu0 %v977_v14  ;;  %v1022_v25 = vld [vmem:[%s8771_s4 + $0x1c8] sm:$0xff]  ;;  %v1021_v29 = vld [vmem:[%s8771_s4 + $0x1c0] sm:$0xff]  ;;  %v1020_v33 = vld [vmem:[%s8771_s4 + $0x1b8] sm:$0xff] }
  0x3c   : > { %6389 = vmatpush3.msra.mxu1 %v1009_v15  ;;  %6352 = vmatprep.subr.mxu0 %v992_v16  ;;  %v974_v26 = vld [vmem:[%s8771_s4 + $0x48] sm:$0xff]  ;;  %v973_v30 = vld [vmem:[%s8771_s4 + $0x40] sm:$0xff]  ;;  %v972_v34 = vld [vmem:[%s8771_s4 + $0x38] sm:$0xff] }
  0x3d   : > { %6390 = vmatprep.subr.mxu1 %v1024_v17  ;;  %6353 = vmatpush3.msra.mxu0 %v976_v18  ;;  %v1006_v27 = vld [vmem:[%s8771_s4 + $0x148] sm:$0xff]  ;;  %v1005_v31 = vld [vmem:[%s8771_s4 + $0x140] sm:$0xff]  ;;  %v1004_v35 = vld [vmem:[%s8771_s4 + $0x138] sm:$0xff] }
  0x3e   : > { %6391 = vmatpush3.msra.mxu1 %v1008_v19  ;;  %6354 = vmatprep.subr.mxu0 %v991_v20  ;;  %v987_v36 = vld [vmem:[%s8771_s4 + $0xb0] sm:$0xff]  ;;  %v986_v40 = vld [vmem:[%s8771_s4 + $0xa8] sm:$0xff]  ;;  %v985_v44 = vld [vmem:[%s8771_s4 + $0xa0] sm:$0xff] }
  0x3f   : > { %6392 = vmatprep.subr.mxu1 %v1023_v21  ;;  %6355 = vmatpush3.msra.mxu0 %v975_v22  ;;  %v1019_v37 = vld [vmem:[%s8771_s4 + $0x1b0] sm:$0xff]  ;;  %v1018_v41 = vld [vmem:[%s8771_s4 + $0x1a8] sm:$0xff]  ;;  %v1017_v45 = vld [vmem:[%s8771_s4 + $0x1a0] sm:$0xff] }
  0x40   : > { %6393 = vmatpush3.msra.mxu1 %v1007_v23  ;;  %6356 = vmatprep.subr.mxu0 %v990_v24  ;;  %v971_v38 = vld [vmem:[%s8771_s4 + $0x30] sm:$0xff]  ;;  %v970_v42 = vld [vmem:[%s8771_s4 + $0x28] sm:$0xff]  ;;  %v969_v46 = vld [vmem:[%s8771_s4 + $0x20] sm:$0xff] }
  0x41   : > { %6394 = vmatprep.subr.mxu1 %v1022_v25  ;;  %6357 = vmatpush3.msra.mxu0 %v974_v26  ;;  %v1003_v39 = vld [vmem:[%s8771_s4 + $0x130] sm:$0xff]  ;;  %v1002_v43 = vld [vmem:[%s8771_s4 + $0x128] sm:$0xff]  ;;  %v1001_v47 = vld [vmem:[%s8771_s4 + $0x120] sm:$0xff] }
  0x42   : > { %6395 = vmatpush3.msra.mxu1 %v1006_v27  ;;  %6358 = vmatprep.subr.mxu0 %v989_v28  ;;  %v984_v48 = vld [vmem:[%s8771_s4 + $0x98] sm:$0xff]  ;;  %v983_v52 = vld [vmem:[%s8771_s4 + $0x90] sm:$0xff]  ;;  %v982_v56 = vld [vmem:[%s8771_s4 + $0x88] sm:$0xff] }
  0x43   : > { %6396 = vmatprep.subr.mxu1 %v1021_v29  ;;  %6359 = vmatpush3.msra.mxu0 %v973_v30  ;;  %v1016_v49 = vld [vmem:[%s8771_s4 + $0x198] sm:$0xff]  ;;  %v1015_v53 = vld [vmem:[%s8771_s4 + $0x190] sm:$0xff]  ;;  %v1014_v57 = vld [vmem:[%s8771_s4 + $0x188] sm:$0xff] }
  0x44   : > { %6397 = vmatpush3.msra.mxu1 %v1005_v31  ;;  %6360 = vmatprep.subr.mxu0 %v988_v32  ;;  %v968_v50 = vld [vmem:[%s8771_s4 + $0x18] sm:$0xff]  ;;  %v967_v54 = vld [vmem:[%s8771_s4 + $0x10] sm:$0xff]  ;;  %v966_v58 = vld [vmem:[%s8771_s4 + $0x8] sm:$0xff] }
  0x45   : > { %6398 = vmatprep.subr.mxu1 %v1020_v33  ;;  %6361 = vmatpush3.msra.mxu0 %v972_v34  ;;  %v1000_v51 = vld [vmem:[%s8771_s4 + $0x118] sm:$0xff]  ;;  %v999_v55 = vld [vmem:[%s8771_s4 + $0x110] sm:$0xff]  ;;  %v998_v59 = vld [vmem:[%s8771_s4 + $0x108] sm:$0xff] }
  0x46   : > { %6399 = vmatpush3.msra.mxu1 %v1004_v35  ;;  %6362 = vmatprep.subr.mxu0 %v987_v36  ;;  %v981_v60 = vld [vmem:[%s8771_s4 + $0x80] sm:$0xff]  ;;  %v950_v63 = vld [vmem:[%s8772_s5 + $0x8] sm:$0xff]  ;;  %v952_v2 = vld [vmem:[%s8772_s5 + $0x18] sm:$0xff] }
  0x47   : > { %6400 = vmatprep.subr.mxu1 %v1019_v37  ;;  %6363 = vmatpush3.msra.mxu0 %v971_v38  ;;  %v1013_v61 = vld [vmem:[%s8771_s4 + $0x180] sm:$0xff]  ;;  %v1060_v3 = vld [vmem:[%s8771_s4 + $0x2f8] sm:$0xff]  ;;  %v951_v5 = vld [vmem:[%s8772_s5 + $0x10] sm:$0xff] }
  0x48   : > { %6401 = vmatpush3.msra.mxu1 %v1003_v39  ;;  %6364 = vmatprep.subr.mxu0 %v986_v40  ;;  %v965_v62 = vld [vmem:[%s8771_s4] sm:$0xff]  ;;  %v1092_v4 = vld [vmem:[%s8771_s4 + $0x3f8] sm:$0xff]  ;;  %v1059_v8 = vld [vmem:[%s8771_s4 + $0x2f0] sm:$0xff] }
  0x49   : > { %6402 = vmatprep.subr.mxu1 %v1018_v41  ;;  %6365 = vmatpush3.msra.mxu0 %v970_v42  ;;  %v997_v0 = vld [vmem:[%s8771_s4 + $0x100] sm:$0xff]  ;;  %v1044_v6 = vld [vmem:[%s8771_s4 + $0x278] sm:$0xff]  ;;  %v1091_v9 = vld [vmem:[%s8771_s4 + $0x3f0] sm:$0xff] }
  0x4a   : > { %6403 = vmatpush3.msra.mxu1 %v1002_v43  ;;  %6366 = vmatprep.subr.mxu0 %v985_v44  ;;  %v949_v1 = vld [vmem:[%s8772_s5] sm:$0xff]  ;;  %v1076_v7 = vld [vmem:[%s8771_s4 + $0x378] sm:$0xff]  ;;  %v1043_v10 = vld [vmem:[%s8771_s4 + $0x270] sm:$0xff] }
  0x4b   : > { %6404 = vmatprep.subr.mxu1 %v1017_v45  ;;  %6367 = vmatpush3.msra.mxu0 %v969_v46  ;;  %v1075_v11 = vld [vmem:[%s8771_s4 + $0x370] sm:$0xff]  ;;  %v1058_v12 = vld [vmem:[%s8771_s4 + $0x2e8] sm:$0xff]  ;;  %v1057_v16 = vld [vmem:[%s8771_s4 + $0x2e0] sm:$0xff] }
  0x4c   : > { %6405 = vmatpush3.msra.mxu1 %v1001_v47  ;;  %6368 = vmatprep.subr.mxu0 %v984_v48  ;;  %v1090_v13 = vld [vmem:[%s8771_s4 + $0x3e8] sm:$0xff]  ;;  %v1089_v17 = vld [vmem:[%s8771_s4 + $0x3e0] sm:$0xff]  ;;  %v1056_v20 = vld [vmem:[%s8771_s4 + $0x2d8] sm:$0xff] }
  0x4d   : > { %6406 = vmatprep.subr.mxu1 %v1016_v49  ;;  %6369 = vmatpush3.msra.mxu0 %v968_v50  ;;  %v1042_v14 = vld [vmem:[%s8771_s4 + $0x268] sm:$0xff]  ;;  %v1041_v18 = vld [vmem:[%s8771_s4 + $0x260] sm:$0xff]  ;;  %v1088_v21 = vld [vmem:[%s8771_s4 + $0x3d8] sm:$0xff] }
  0x4e   : > { %6407 = vmatpush3.msra.mxu1 %v1000_v51  ;;  %6370 = vmatprep.subr.mxu0 %v983_v52  ;;  %v1074_v15 = vld [vmem:[%s8771_s4 + $0x368] sm:$0xff]  ;;  %v1073_v19 = vld [vmem:[%s8771_s4 + $0x360] sm:$0xff]  ;;  %v1040_v22 = vld [vmem:[%s8771_s4 + $0x258] sm:$0xff] }
  0x4f   : > { %6408 = vmatprep.subr.mxu1 %v1015_v53  ;;  %6371 = vmatpush3.msra.mxu0 %v967_v54  ;;  %v1072_v23 = vld [vmem:[%s8771_s4 + $0x358] sm:$0xff]  ;;  %v1055_v24 = vld [vmem:[%s8771_s4 + $0x2d0] sm:$0xff]  ;;  %v1054_v28 = vld [vmem:[%s8771_s4 + $0x2c8] sm:$0xff] }
  0x50   : > { %6409 = vmatpush3.msra.mxu1 %v999_v55  ;;  %6372 = vmatprep.subr.mxu0 %v982_v56  ;;  %v1087_v25 = vld [vmem:[%s8771_s4 + $0x3d0] sm:$0xff]  ;;  %v1086_v29 = vld [vmem:[%s8771_s4 + $0x3c8] sm:$0xff]  ;;  %v1053_v32 = vld [vmem:[%s8771_s4 + $0x2c0] sm:$0xff] }
  0x51   : > { %6410 = vmatprep.subr.mxu1 %v1014_v57  ;;  %6373 = vmatpush3.msra.mxu0 %v966_v58  ;;  %v1039_v26 = vld [vmem:[%s8771_s4 + $0x250] sm:$0xff]  ;;  %v1038_v30 = vld [vmem:[%s8771_s4 + $0x248] sm:$0xff]  ;;  %v1085_v33 = vld [vmem:[%s8771_s4 + $0x3c0] sm:$0xff] }
  0x52   : > { %6411 = vmatpush3.msra.mxu1 %v998_v59  ;;  %6374 = vmatprep.subr.mxu0 %v981_v60  ;;  %v1071_v27 = vld [vmem:[%s8771_s4 + $0x350] sm:$0xff]  ;;  %v1070_v31 = vld [vmem:[%s8771_s4 + $0x348] sm:$0xff]  ;;  %v1037_v34 = vld [vmem:[%s8771_s4 + $0x240] sm:$0xff] }
  0x53   : > { %6412 = vmatprep.subr.mxu1 %v1013_v61  ;;  %6375 = vmatpush3.msra.mxu0 %v965_v62  ;;  %v1069_v35 = vld [vmem:[%s8771_s4 + $0x340] sm:$0xff]  ;;  %v1052_v36 = vld [vmem:[%s8771_s4 + $0x2b8] sm:$0xff]  ;;  %v1051_v40 = vld [vmem:[%s8771_s4 + $0x2b0] sm:$0xff] }
  0x54   : > { %1164 = vmatprep.mubr.f32.mxu0 %v950_v63  ;;  %6413 = vmatpush3.msra.mxu1 %v997_v0  ;;  %v1084_v37 = vld [vmem:[%s8771_s4 + $0x3b8] sm:$0xff]  ;;  %v1083_v41 = vld [vmem:[%s8771_s4 + $0x3b0] sm:$0xff]  ;;  %v1050_v44 = vld [vmem:[%s8771_s4 + $0x2a8] sm:$0xff] }
  0x55   : > { %1165 = vmatmul.mubr.f32.vlgmr.msra.gmra.mxu0 %v949_v1  ;;  %1239 = vmatprep.mubr.f32.mxu1 %v952_v2  ;;  %v1036_v38 = vld [vmem:[%s8771_s4 + $0x238] sm:$0xff]  ;;  %v1035_v42 = vld [vmem:[%s8771_s4 + $0x230] sm:$0xff]  ;;  %v1082_v45 = vld [vmem:[%s8771_s4 + $0x3a8] sm:$0xff] }
  0x56   : > { %6420 = vmatprep.subr.mxu0 %v1060_v3  ;;  %6458 = vmatprep.subr.mxu1 %v1092_v4  ;;  %v1068_v39 = vld [vmem:[%s8771_s4 + $0x338] sm:$0xff]  ;;  %v1067_v43 = vld [vmem:[%s8771_s4 + $0x330] sm:$0xff]  ;;  %v1034_v46 = vld [vmem:[%s8771_s4 + $0x228] sm:$0xff] }
  0x57   : > { %1240 = vmatmul.mubr.f32.vlgmr.msra.gmra.mxu1 %v951_v5  ;;  %6421 = vmatpush3.msra.mxu0 %v1044_v6  ;;  %v1066_v47 = vld [vmem:[%s8771_s4 + $0x328] sm:$0xff]  ;;  %v1049_v48 = vld [vmem:[%s8771_s4 + $0x2a0] sm:$0xff]  ;;  %v1048_v52 = vld [vmem:[%s8771_s4 + $0x298] sm:$0xff] }
  0x58   : > { %6459 = vmatpush3.msra.mxu1 %v1076_v7  ;;  %6422 = vmatprep.subr.mxu0 %v1059_v8  ;;  %v1081_v49 = vld [vmem:[%s8771_s4 + $0x3a0] sm:$0xff]  ;;  %v1080_v53 = vld [vmem:[%s8771_s4 + $0x398] sm:$0xff]  ;;  %v958_v54 = vld [vmem:[%s8772_s5 + $0x48] sm:$0xff] }
  0x59   : > { %6460 = vmatprep.subr.mxu1 %v1091_v9  ;;  %6423 = vmatpush3.msra.mxu0 %v1043_v10  ;;  %v1033_v50 = vld [vmem:[%s8771_s4 + $0x220] sm:$0xff]  ;;  %v1032_v55 = vld [vmem:[%s8771_s4 + $0x218] sm:$0xff]  ;;  %v1047_v58 = vld [vmem:[%s8771_s4 + $0x290] sm:$0xff] }
  0x5a   : > { %6461 = vmatpush3.msra.mxu1 %v1075_v11  ;;  %6424 = vmatprep.subr.mxu0 %v1058_v12  ;;  %v1065_v51 = vld [vmem:[%s8771_s4 + $0x320] sm:$0xff]  ;;  %v1064_v56 = vld [vmem:[%s8771_s4 + $0x318] sm:$0xff]  ;;  %v1079_v59 = vld [vmem:[%s8771_s4 + $0x390] sm:$0xff] }
  0x5b   : > { %6462 = vmatprep.subr.mxu1 %v1090_v13  ;;  %6425 = vmatpush3.msra.mxu0 %v1042_v14  ;;  %v957_v57 = vld [vmem:[%s8772_s5 + $0x40] sm:$0xff]  ;;  %v960_v60 = vld [vmem:[%s8772_s5 + $0x58] sm:$0xff]  ;;  %v1031_v61 = vld [vmem:[%s8771_s4 + $0x210] sm:$0xff] }
  0x5c   : > { %6463 = vmatpush3.msra.mxu1 %v1074_v15  ;;  %6426 = vmatprep.subr.mxu0 %v1057_v16  ;;  %v1063_v62 = vld [vmem:[%s8771_s4 + $0x310] sm:$0xff]  ;;  %v1046_v63 = vld [vmem:[%s8771_s4 + $0x288] sm:$0xff]  ;;  %v1045_v4 = vld [vmem:[%s8771_s4 + $0x280] sm:$0xff] }
  0x5d   : > { %6464 = vmatprep.subr.mxu1 %v1089_v17  ;;  %6427 = vmatpush3.msra.mxu0 %v1041_v18  ;;  %v959_v0 = vld [vmem:[%s8772_s5 + $0x50] sm:$0xff]  ;;  %v1078_v1 = vld [vmem:[%s8771_s4 + $0x388] sm:$0xff]  ;;  %v1077_v5 = vld [vmem:[%s8771_s4 + $0x380] sm:$0xff] }
  0x5e   : > { %6465 = vmatpush3.msra.mxu1 %v1073_v19  ;;  %6428 = vmatprep.subr.mxu0 %v1056_v20  ;;  %v1030_v2 = vld [vmem:[%s8771_s4 + $0x208] sm:$0xff]  ;;  %v1029_v6 = vld [vmem:[%s8771_s4 + $0x200] sm:$0xff]  ;;  %v956_v9 = vld [vmem:[%s8772_s5 + $0x38] sm:$0xff] }
  0x5f   : > { %6466 = vmatprep.subr.mxu1 %v1088_v21  ;;  %6429 = vmatpush3.msra.mxu0 %v1040_v22  ;;  %v1062_v3 = vld [vmem:[%s8771_s4 + $0x308] sm:$0xff]  ;;  %v1061_v8 = vld [vmem:[%s8771_s4 + $0x300] sm:$0xff]  ;;  %v955_v11 = vld [vmem:[%s8772_s5 + $0x30] sm:$0xff] }
  0x60   : > { %6467 = vmatpush3.msra.mxu1 %v1072_v23  ;;  %6430 = vmatprep.subr.mxu0 %v1055_v24  ;;  %v954_v7 = vld [vmem:[%s8772_s5 + $0x28] sm:$0xff]  ;;  %v953_v10 = vld [vmem:[%s8772_s5 + $0x20] sm:$0xff]  ;;  %v964_v13 = vld [vmem:[%s8772_s5 + $0x78] sm:$0xff] }
  0x61   : > { %6468 = vmatprep.subr.mxu1 %v1087_v25  ;;  %6431 = vmatpush3.msra.mxu0 %v1039_v26  ;;  %v962_v12 = vld [vmem:[%s8772_s5 + $0x68] sm:$0xff]  ;;  %v961_v14 = vld [vmem:[%s8772_s5 + $0x60] sm:$0xff]  ;;  %v963_v15 = vld [vmem:[%s8772_s5 + $0x70] sm:$0xff] }
  0x62   : > { %6469 = vmatpush3.msra.mxu1 %v1071_v27  ;;  %6432 = vmatprep.subr.mxu0 %v1054_v28  ;;  %v6193_v23 = vld [vmem:[%s8773_s6] ss:$0 sm:$0xff] }
  0x63   : > { %6470 = vmatprep.subr.mxu1 %v1086_v29  ;;  %6433 = vmatpush3.msra.mxu0 %v1038_v30 }
  0x64   : > { %6471 = vmatpush3.msra.mxu1 %v1070_v31  ;;  %6434 = vmatprep.subr.mxu0 %v1053_v32 }
  0x65   : > { %6472 = vmatprep.subr.mxu1 %v1085_v33  ;;  %6435 = vmatpush3.msra.mxu0 %v1037_v34 }
  0x66   : > { %6473 = vmatpush3.msra.mxu1 %v1069_v35  ;;  %6436 = vmatprep.subr.mxu0 %v1052_v36 }
  0x67   : > { %6474 = vmatprep.subr.mxu1 %v1084_v37  ;;  %6437 = vmatpush3.msra.mxu0 %v1036_v38 }
  0x68   : > { %6475 = vmatpush3.msra.mxu1 %v1068_v39  ;;  %6438 = vmatprep.subr.mxu0 %v1051_v40 }
  0x69   : > { %6476 = vmatprep.subr.mxu1 %v1083_v41  ;;  %6439 = vmatpush3.msra.mxu0 %v1035_v42  ;;  %v1400_v41 = vld [vmem:[%s8774_s3] sm:$0xff] }
  0x6a   : > { %6477 = vmatpush3.msra.mxu1 %v1067_v43  ;;  %6440 = vmatprep.subr.mxu0 %v1050_v44 }
  0x6b   : > { %6478 = vmatprep.subr.mxu1 %v1082_v45  ;;  %6441 = vmatpush3.msra.mxu0 %v1034_v46 }
  0x6c   : > { %6479 = vmatpush3.msra.mxu1 %v1066_v47  ;;  %6442 = vmatprep.subr.mxu0 %v1049_v48 }
  0x6d   : > { %6480 = vmatprep.subr.mxu1 %v1081_v49  ;;  %6443 = vmatpush3.msra.mxu0 %v1033_v50  ;;  %v1401_v50 = vld [vmem:[%s8775_s11 + $0x8] sm:$0xff] }
  0x6e   : > { %6481 = vmatpush3.msra.mxu1 %v1065_v51  ;;  %6444 = vmatprep.subr.mxu0 %v1048_v52 }
  0x6f   : > { %6482 = vmatprep.subr.mxu1 %v1080_v53  ;;  %1169 = vmatprep.mubr.f32.mxu0 %v958_v54 }
  0x70   : > { %6445 = vmatpush3.msra.mxu0 %v1032_v55  ;;  %6483 = vmatpush3.msra.mxu1 %v1064_v56 }
  0x71   : > { %1170 = vmatmul.mubr.f32.gmra.mxu0 %v957_v57  ;;  %6446 = vmatprep.subr.mxu0 %v1047_v58 }
  0x72   : > { %6484 = vmatprep.subr.mxu1 %v1079_v59  ;;  %1244 = vmatprep.mubr.f32.mxu1 %v960_v60 }
  0x73   : > { %6447 = vmatpush3.msra.mxu0 %v1031_v61  ;;  %6485 = vmatpush3.msra.mxu1 %v1063_v62 }
  0x74   : > { %6448 = vmatprep.subr.mxu0 %v1046_v63  ;;  %1245 = vmatmul.mubr.f32.gmra.mxu1 %v959_v0 }
  0x75   : > { %6486 = vmatprep.subr.mxu1 %v1078_v1  ;;  %6449 = vmatpush3.msra.mxu0 %v1030_v2 }
  0x76   : > { %6487 = vmatpush3.msra.mxu1 %v1062_v3  ;;  %6450 = vmatprep.subr.mxu0 %v1045_v4 }
  0x77   : > { %6488 = vmatprep.subr.mxu1 %v1077_v5  ;;  %6451 = vmatpush3.msra.mxu0 %v1029_v6 }
  0x78   : > { %1314 = vmatprep.mubr.f32.mxu0 %v954_v7  ;;  %6489 = vmatpush3.msra.mxu1 %v1061_v8 }
  0x79   : > { %1389 = vmatprep.mubr.f32.mxu1 %v956_v9  ;;  %1315 = vmatmul.mubr.f32.vlgmr.msra.gmra.mxu0 %v953_v10 }
  0x7a   : > { %1390 = vmatmul.mubr.f32.vlgmr.msra.gmra.mxu1 %v955_v11  ;;  %1319 = vmatprep.mubr.f32.mxu0 %v962_v12 }
  0x7b   : > { %1394 = vmatprep.mubr.f32.mxu1 %v964_v13 }
  0x7d   : > { %1320 = vmatmul.mubr.f32.gmra.mxu0 %v961_v14 }
  0x7e   : > { %1395 = vmatmul.mubr.f32.gmra.mxu1 %v963_v15 }
 0x115   : > { %v6376_v16 = vpop.f32.mrf.mxu0 }
 0x117   : > { %v6414_v17 = vpop.f32.mrf.mxu1  ;;  %v6377_v18 = vpop.f32.mrf.mxu0 }
 0x118   : > { %v6378_v21 = vadd.f32 %v6377_v18, %v6376_v16 }
 0x119   : > { %v6415_v20 = vpop.f32.mrf.mxu1 }
 0x11a   : > { %v1167_v26 = vadd.f32 %v6378_v21, %v6193_v23  ;;  %v6416_v27 = vadd.f32 %v6415_v20, %v6414_v17 }
 0x11c   : > { %v1242_v33 = vadd.f32 %v6416_v27, %v1167_v26 }
 0x131   : > { %v6379_v19 = vpop.f32.mrf.mxu0 }
 0x133   : > { %v6380_v24 = vpop.f32.mrf.mxu0 }
 0x134   : > { %v6417_v22 = vpop.f32.mrf.mxu1  ;;  %v6381_v28 = vadd.f32 %v6380_v24, %v6379_v19 }
 0x136   : > { %v6418_v25 = vpop.f32.mrf.mxu1  ;;  %v1172_v34 = vadd.f32 %v6381_v28, %v6193_v23 }
 0x137   : > { %v6419_v35 = vadd.f32 %v6418_v25, %v6417_v22 }
 0x139   : > { %v6452_v29 = vpop.f32.mrf.mxu0  ;;  %v1247_v44 = vadd.f32 %v6419_v35, %v1172_v34 }
 0x13a   : > { %v6490_v30 = vpop.f32.mrf.mxu1 }
 0x13b   : > { %v6453_v31 = vpop.f32.mrf.mxu0 }
 0x13c   : > { %v6491_v32 = vpop.f32.mrf.mxu1  ;;  %v6454_v36 = vadd.f32 %v6453_v31, %v6452_v29 }
 0x13d   : > { %v6455_v37 = vpop.f32.mrf.mxu0  ;;  %v6492_v40 = vadd.f32 %v6491_v32, %v6490_v30 }
 0x13e   : > { %v6493_v38 = vpop.f32.mrf.mxu1  ;;  %v1317_v39 = vadd.f32 %v6454_v36, %v1242_v33 }
 0x13f   : > { %v6456_v42 = vpop.f32.mrf.mxu0 }
 0x140   : > { %v6494_v43 = vpop.f32.mrf.mxu1  ;;  %v1392_v45 = vadd.f32 %v6492_v40, %v1317_v39  ;;  %v6457_v46 = vadd.f32 %v6456_v42, %v6455_v37 }
 0x141   : > { %v6495_v49 = vadd.f32 %v6494_v43, %v6493_v38 }
 0x142   : > { %v1402_v47 = vadd.f32 %v1400_v41, %v1392_v45  ;;  %v1322_v48 = vadd.f32 %v6457_v46, %v1247_v44 }
 0x144   : > { %1405 = vst.msk [vmem:[#allocation2] sm:$0xff] %vm1404_vm0, %v1402_v47  ;;  %v1397_v51 = vadd.f32 %v6495_v49, %v1322_v48 }
 0x146   : > { %v1403_v52 = vadd.f32 %v1401_v50, %v1397_v51 }
 0x148   : > { %1406 = vst.msk [vmem:[#allocation2 + $0x8] sm:$0xff] %vm1404_vm0, %v1403_v52 }
 0x149 PF: > { %v1413_v53 = vld [vmem:[%s7410_s20 + $0x18] sm:$0xff]  ;;  %v1412_v55 = vld [vmem:[%s7410_s20 + $0x10] sm:$0xff]  ;;  %v1411_v57 = vld [vmem:[%s7410_s20 + $0x8] sm:$0xff]  ;;  %vm1421_vm1 = vcmask 261120   ;;  %s8776_s10 = sld [smem:[#allocation7_spill]]  ;;  %v7259_v63 = vmov 0.0   ;;  %s8782_s8 = scalar_lea.vmem %s8726_s13, %s7392_s30 }
 0x14a   : > { %v1506_v54 = vld [vmem:[%s7415_s1 + $0x18] sm:$0xff]  ;;  %6921 = vmatprep.subr.mxu0 %v1413_v53  ;;  %v1505_v56 = vld [vmem:[%s7415_s1 + $0x10] sm:$0xff]  ;;  %v1504_v58 = vld [vmem:[%s7415_s1 + $0x8] sm:$0xff]  ;;  %s8777_s27 = sld [smem:[#allocation8_spill]]  ;;  %vm7260_vm2 = vmmov 0   ;;  %vm1677_vm3 = vcmask 64512  }
 0x14b   : > { %6932 = vmatprep.subr.mxu1 %v1506_v54  ;;  %6922 = vmatpush3.msra.mxu0 %v1413_v53  ;;  %v1410_v59 = vld [vmem:[%s7410_s20] sm:$0xff]  ;;  %v1592_v12 = vld [vmem:[%s7425_s2 + $0x18] sm:$0xff]  ;;  %v1591_v13 = vld [vmem:[%s7425_s2 + $0x10] sm:$0xff]  ;;  %s8778_s12 = sld [smem:[#allocation20_spill]]  ;;  %p6332_p6 = scmp.ne.s32.totalorder %s7385_s28, 1 }
 0x14c   : > { %6933 = vmatpush3.msra.mxu1 %v1506_v54  ;;  %6923 = vmatprep.subr.mxu0 %v1412_v55  ;;  %v1503_v60 = vld [vmem:[%s7415_s1] sm:$0xff]  ;;  %v1590_v14 = vld [vmem:[%s7425_s2 + $0x8] sm:$0xff]  ;;  %v6215_v44 = vld [vmem:[%s7410_s20 + $0x38] sm:$0xff]  ;;  %s8785_s3 = sld [smem:[#allocation23_spill]] (!%p6332_p6) }
 0x14d   : > { %6934 = vmatprep.subr.mxu1 %v1505_v56  ;;  %6924 = vmatpush3.msra.mxu0 %v1412_v55  ;;  %v7921_v61 = vld [vmem:[#allocation2] sm:$0xff]  ;;  %v6223_v45 = vld [vmem:[%s7415_s1 + $0x38] sm:$0xff]  ;;  %v6214_v46 = vld [vmem:[%s7410_s20 + $0x30] sm:$0xff] }
 0x14e   : > { %6935 = vmatpush3.msra.mxu1 %v1505_v56  ;;  %6925 = vmatprep.subr.mxu0 %v1411_v57  ;;  %v1589_v15 = vld [vmem:[%s7425_s2] sm:$0xff]  ;;  %v6213_v47 = vld [vmem:[%s7410_s20 + $0x28] sm:$0xff]  ;;  %v6222_v52 = vld [vmem:[%s7415_s1 + $0x30] sm:$0xff] }
 0x14f   : > { %6936 = vmatprep.subr.mxu1 %v1504_v58  ;;  %6926 = vmatpush3.msra.mxu0 %v1411_v57  ;;  %v7923_v62 = vld [vmem:[#allocation2 + $0x8] sm:$0xff]  ;;  %v6194_v1 = vld [vmem:[%s8776_s10] ss:$0 sm:$0xff] }
 0x150   : > { %6937 = vmatpush3.msra.mxu1 %v1504_v58  ;;  %6927 = vmatprep.subr.mxu0 %v1410_v59  ;;  %v6197_v3 = vld [vmem:[%s8777_s27] ss:$0 sm:$0xff]  ;;  %v6221_v54 = vld [vmem:[%s7415_s1 + $0x28] sm:$0xff] }
 0x151   : > { %6938 = vmatprep.subr.mxu1 %v1503_v60  ;;  %6928 = vmatpush3.msra.mxu0 %v1410_v59  ;;  %v6200_v33 = vld [vmem:[%s7430_s21] ss:$0 sm:$0xff]  ;;  %v6217_v59 = vld [vmem:[%s8776_s10 + $0x1] ss:$0 sm:$0xff]  ;;  %s8779_s0 = scalar_lea.vmem %s8778_s12, %s7392_s30  ;;  %s8784_s12 = sld [smem:[#allocation22_spill]] (!%p6332_p6) }
 0x152   : > { %6929 = vmatprep.mubr.msk.f32.mxu0 %vm1421_vm1, %v7921_v61  ;;  %6939 = vmatpush3.msra.mxu1 %v1503_v60  ;;  %v1998_v43 = vld [vmem:[%s7435_s23] sm:$0xff] }
 0x153   : > { %6940 = vmatprep.mubr.msk.f32.mxu1 %vm1421_vm1, %v7921_v61  ;;  %6930 = vmatmul.mubr.msk.f32.vlgmr.msra.gmra.mxu0 %vm1421_vm1, %v7923_v62  ;;  %v6212_v48 = vld [vmem:[%s7410_s20 + $0x20] sm:$0xff] }
 0x154   : > { %6941 = vmatmul.mubr.msk.f32.vlgmr.msra.gmra.mxu1 %vm1421_vm1, %v7923_v62  ;;  %6951 = vmatprep.mubr.msk.f32.mxu0 %vm1421_vm1, %v7921_v61  ;;  %v6220_v55 = vld [vmem:[%s7415_s1 + $0x20] sm:$0xff] }
 0x155   : > { %6954 = vmatprep.subr.mxu1 %v7259_v63  ;;  %6956 = vmatprep.mubr.msk.f32.mxu1 %vm7260_vm2, %v7259_v63 }
 0x156   : > { %6943 = vmatprep.subr.mxu0 %v1592_v12 }
 0x157   : > { %6944 = vmatpush3.msra.mxu0 %v1592_v12  ;;  %v6228_v12 = vld [vmem:[%s7425_s2 + $0x20] sm:$0xff] }
 0x158   : > { %6945 = vmatprep.subr.mxu0 %v1591_v13 }
 0x159   : > { %6946 = vmatpush3.msra.mxu0 %v1591_v13 }
 0x15a   : > { %6947 = vmatprep.subr.mxu0 %v1590_v14 }
 0x15b   : > { %6948 = vmatpush3.msra.mxu0 %v1590_v14 }
 0x15c   : > { %6949 = vmatprep.subr.mxu0 %v1589_v15 }
 0x15d   : > { %6950 = vmatpush3.msra.mxu0 %v1589_v15 }
 0x15e   : > { %6952 = vmatmul.mubr.msk.f32.vlgmr.msra.gmra.mxu0 %vm1421_vm1, %v7923_v62  ;;  %6964 = vmatprep.subr.mxu0 %v7259_v63 }
 0x15f   : > { %6966 = vmatprep.mubr.msk.f32.mxu0 %vm7260_vm2, %v7259_v63 }
 0x213   : > { %v6931_v0 = vpop.f32.mrf.mxu0 }
 0x214   : > { %v6942_v2 = vpop.f32.mrf.mxu1  ;;  %v1500_v9 = vadd.f32 %v6931_v0, %v6194_v1 }
 0x215   : > { %v1494_v4 = vpop.f32.mrf.mxu0  ;;  %v1586_v10 = vadd.f32 %v6942_v2, %v6197_v3 }
 0x216   : > { %v1580_v5 = vpop.f32.mrf.mxu1  ;;  %v1495_v6 = vadd.f32 %v6194_v1, %v1494_v4  ;;  %v1676_v11 = vmul.f32 0.35355338, %v1500_v9  ;;  %v6225_v1 = vld [vmem:[%s8777_s27 + $0x1] ss:$0 sm:$0xff]  ;;  %v6231_v9 = vld [vmem:[%s7425_s2 + $0x38] sm:$0xff] }
 0x217   : > { %v1581_v7 = vadd.f32 %v6197_v3, %v1580_v5 }
 0x218   : > { %v1675_v8 = vmul.f32 0.35355338, %v1495_v6 }
 0x219   : > { %6955 = vmatpush3.xpose.msk.msra.mxu1 %vm1677_vm3, %v1581_v7 }
 0x21a   : > { %6959 = vmatprep.subr.mxu1 %v7259_v63 }
 0x21c   : > { %6957 = vmatmul.mubr.msk.f32.vlgmr.msra.gmra.mxu1 %vm1677_vm3, %v1675_v8 }
 0x21d   : > { %6960 = vmatpush3.xpose.msk.msra.mxu1 %vm1677_vm3, %v1586_v10  ;;  %6961 = vmatprep.mubr.msk.f32.mxu1 %vm7260_vm2, %v7259_v63  ;;  %v6230_v10 = vld [vmem:[%s7425_s2 + $0x30] sm:$0xff] }
 0x21e   : > { %6969 = vmatprep.subr.mxu1 %v7259_v63  ;;  %v6953_v32 = vpop.f32.mrf.mxu0 }
 0x21f   : > { %v1672_v34 = vadd.f32 %v6953_v32, %v6200_v33 }
 0x220   : > { %6962 = vmatmul.mubr.msk.f32.vlgmr.msra.gmra.mxu1 %vm1677_vm3, %v1676_v11  ;;  %v1666_v35 = vpop.f32.mrf.mxu0  ;;  %v6229_v11 = vld [vmem:[%s7425_s2 + $0x28] sm:$0xff] }
 0x221   : > { %6971 = vmatprep.mubr.msk.f32.mxu1 %vm7260_vm2, %v7259_v63  ;;  %v1667_v36 = vadd.f32 %v6200_v33, %v1666_v35  ;;  %6970 = vmatpush3.msra.mxu1 %v1672_v34 }
 0x222   : > { %6979 = vmatprep.subr.mxu1 %v6215_v44 }
 0x223   : > { %6965 = vmatpush3.msra.mxu0 %v1667_v36 }
 0x224   : > { %6974 = vmatprep.subr.mxu0 %v1998_v43 }
 0x2dc   : > { %v1750_v16 = vpop.f32.mrf.mxu1 }
 0x2dd   : > { %v1830_v17 = vsel %vm1677_vm3, %v1750_v16, -inf }
 0x2de   : > { %1831 = vmax.xlane.f32.xlu0 %v1830_v17  ;;  %v6958_v18 = vpop.f32.mrf.mxu1 }
 0x2e0   : > { %v1826_v19 = vpop.f32.mrf.mxu1 }
 0x2e1   : > { %v1833_v20 = vsel %vm1677_vm3, %v1826_v19, -inf }
 0x2e2   : > { %1834 = vmax.xlane.f32.xlu0 %v1833_v20  ;;  %v6963_v21 = vpop.f32.mrf.mxu1 }
 0x367   : > { %v1832_v22 = vpop.xlane.xlu0 %1831 }
 0x368   : > { %v1836_v23 = vsub.f32 %v1750_v16, %v1832_v22 }
 0x36a   : > { %v1838_v24 = vmul.f32 1.442695, %v1836_v23 }
 0x36b   : > { %v1835_v25 = vpop.xlane.xlu0 %1834 }
 0x36c   : > { %7183 = vpow2.f32 %v1838_v24  ;;  %v1837_v26 = vsub.f32 %v1826_v19, %v1835_v25 }
 0x36e   : > { %v1840_v27 = vmul.f32 1.442695, %v1837_v26 }
 0x370   : > { %7185 = vpow2.f32 %v1840_v27 }
 0x379   : > { %v7184_v28 = vpop.eup %7183 }
 0x37a   : > { %v1842_v29 = vsel %vm1677_vm3, %v7184_v28, 0.0 }
 0x37b   : > { %1843 = vadd.xlane.f32.xlu1 %v1842_v29 }
 0x37d   : > { %v7186_v30 = vpop.eup %7185 }
 0x37e   : > { %v1845_v31 = vsel %vm1677_vm3, %v7186_v30, 0.0 }
 0x37f   : > { %1846 = vadd.xlane.f32.xlu1 %v1845_v31 }
 0x404   : > { %v1844_v37 = vpop.xlane.xlu1 %1843 }
 0x405   : > { %7187 = vrcp.f32 %v1844_v37 }
 0x408   : > { %v1847_v38 = vpop.xlane.xlu1 %1846 }
 0x409   : > { %7189 = vrcp.f32 %v1847_v38 }
 0x412   : > { %v7188_v39 = vpop.eup %7187 }
 0x413   : > { %v1850_v40 = vmul.f32 %v7188_v39, %v7184_v28 }
 0x415   : > { %6967 = vmatmul.mubr.msk.f32.vlgmr.msra.gmra.mxu0 %vm1677_vm3, %v1850_v40  ;;  %v6242_v40 = vld [vmem:[%s7435_s23 + $0x8] sm:$0xff] }
 0x416   : > { %v7190_v41 = vpop.eup %7189  ;;  %6975 = vmatpush3.msra.mxu0 %v1998_v43  ;;  %v6247_v43 = vld [vmem:[%s7410_s20 + $0x50] sm:$0xff] }
 0x417   : > { %v1851_v42 = vmul.f32 %v7190_v41, %v7186_v30  ;;  %6990 = vmatprep.subr.mxu0 %v6223_v45  ;;  %v6233_v30 = vld [vmem:[%s7430_s21 + $0x1] ss:$0 sm:$0xff]  ;;  %v6248_v41 = vld [vmem:[%s7410_s20 + $0x58] sm:$0xff] }
 0x419   : > { %6972 = vmatmul.mubr.msk.f32.vlgmr.msra.gmra.mxu1 %vm1677_vm3, %v1851_v42  ;;  %v6256_v42 = vld [vmem:[%s7415_s1 + $0x58] sm:$0xff] }
 0x41a   : > { %6987 = vmatprep.mubr.msk.f32.mxu1 %vm1421_vm1, %v7921_v61  ;;  %6980 = vmatpush3.msra.mxu1 %v6215_v44  ;;  %v6246_v44 = vld [vmem:[%s7410_s20 + $0x48] sm:$0xff] }
 0x41b   : > { %6981 = vmatprep.subr.mxu1 %v6214_v46 }
 0x41c   : > { %6982 = vmatpush3.msra.mxu1 %v6214_v46 }
 0x41d   : > { %6983 = vmatprep.subr.mxu1 %v6213_v47 }
 0x41e   : > { %6984 = vmatpush3.msra.mxu1 %v6213_v47 }
 0x41f   : > { %6985 = vmatprep.subr.mxu1 %v6212_v48 }
 0x420   : > { %6986 = vmatpush3.msra.mxu1 %v6212_v48 }
 0x421   : > { %6988 = vmatmul.mubr.msk.f32.vlgmr.msra.gmra.mxu1 %vm1421_vm1, %v7923_v62  ;;  %7001 = vmatprep.subr.mxu1 %v6231_v9 }
 0x422   : > { %7009 = vmatprep.mubr.msk.f32.mxu1 %vm1421_vm1, %v7921_v61  ;;  %7002 = vmatpush3.msra.mxu1 %v6231_v9 }
 0x423   : > { %7003 = vmatprep.subr.mxu1 %v6230_v10 }
 0x424   : > { %7004 = vmatpush3.msra.mxu1 %v6230_v10 }
 0x425   : > { %7005 = vmatprep.subr.mxu1 %v6229_v11 }
 0x426   : > { %7006 = vmatpush3.msra.mxu1 %v6229_v11  ;;  %v6264_v11 = vld [vmem:[%s7425_s2 + $0x58] sm:$0xff] }
 0x427   : > { %7007 = vmatprep.subr.mxu1 %v6228_v12 }
 0x428   : > { %7008 = vmatpush3.msra.mxu1 %v6228_v12  ;;  %v6263_v12 = vld [vmem:[%s7425_s2 + $0x50] sm:$0xff] }
 0x429   : > { %7010 = vmatmul.mubr.msk.f32.vlgmr.msra.gmra.mxu1 %vm1421_vm1, %v7923_v62  ;;  %7022 = vmatprep.subr.mxu1 %v7259_v63 }
 0x42a   : > { %7024 = vmatprep.mubr.msk.f32.mxu1 %vm7260_vm2, %v7259_v63 }
 0x4d5   : > { %v1921_v49 = vpop.f32.mrf.mxu0 }
 0x4d6   : > { %6976 = vmatprep.mubr.msk.f32.mxu0 %vm1677_vm3, %v1921_v49  ;;  %v6255_v49 = vld [vmem:[%s7415_s1 + $0x50] sm:$0xff] }
 0x4d7   : > { %v6968_v50 = vpop.f32.mrf.mxu0 }
 0x4d9   : > { %v1994_v51 = vpop.f32.mrf.mxu1 }
 0x4da   : > { %6977 = vmatmul.mubr.msk.f32.vlgmr.msra.gmra.mxu0 %vm1677_vm3, %v1994_v51  ;;  %v6254_v51 = vld [vmem:[%s7415_s1 + $0x48] sm:$0xff] }
 0x4db   : > { %6991 = vmatpush3.msra.mxu0 %v6223_v45  ;;  %v6973_v53 = vpop.f32.mrf.mxu1  ;;  %6998 = vmatprep.mubr.msk.f32.mxu0 %vm1421_vm1, %v7921_v61  ;;  %v6245_v45 = vld [vmem:[%s7410_s20 + $0x40] sm:$0xff] }
 0x4dc   : > { %6992 = vmatprep.subr.mxu0 %v6222_v52  ;;  %v6211_v53 = vld [vmem:[%s8779_s0] ss:$0 sm:$0xff] }
 0x4dd   : > { %6993 = vmatpush3.msra.mxu0 %v6222_v52  ;;  %v6253_v52 = vld [vmem:[%s7415_s1 + $0x40] sm:$0xff] }
 0x4de   : > { %6994 = vmatprep.subr.mxu0 %v6221_v54 }
 0x4df   : > { %6995 = vmatpush3.msra.mxu0 %v6221_v54 }
 0x4e0   : > { %6996 = vmatprep.subr.mxu0 %v6220_v55 }
 0x4e1   : > { %6997 = vmatpush3.msra.mxu0 %v6220_v55  ;;  %v6989_v57 = vpop.f32.mrf.mxu1 }
 0x4e2   : > { %6999 = vmatmul.mubr.msk.f32.vlgmr.msra.gmra.mxu0 %vm1421_vm1, %v7923_v62  ;;  %7012 = vmatprep.subr.mxu0 %v7259_v63  ;;  %v2173_v5 = vadd.f32 %v6989_v57, %v6217_v59 }
 0x4e3   : > { %7014 = vmatprep.mubr.msk.f32.mxu0 %vm7260_vm2, %v7259_v63  ;;  %v2167_v60 = vpop.f32.mrf.mxu1 }
 0x4e4   : > { %v2168_v2 = vadd.f32 %v6217_v59, %v2167_v60  ;;  %v2353_v8 = vmul.f32 0.35355338, %v2173_v5  ;;  %v6258_v5 = vld [vmem:[%s8777_s27 + $0x2] ss:$0 sm:$0xff] }
 0x4e6   : > { %v2352_v6 = vmul.f32 0.35355338, %v2168_v2  ;;  %v6250_v2 = vld [vmem:[%s8776_s10 + $0x2] ss:$0 sm:$0xff] }
 0x4e9   : > { %v7011_v29 = vpop.f32.mrf.mxu1 }
 0x4ea   : > { %v2349_v31 = vadd.f32 %v7011_v29, %v6233_v30 }
 0x4eb   : > { %v2343_v32 = vpop.f32.mrf.mxu1 }
 0x4ec   : > { %v2344_v33 = vadd.f32 %v6233_v30, %v2343_v32  ;;  %v6266_v32 = vld [vmem:[%s7430_s21 + $0x2] ss:$0 sm:$0xff] }
 0x4ee   : > { %7023 = vmatpush3.msra.mxu1 %v2344_v33 }
 0x4ef   : > { %7032 = vmatprep.subr.mxu1 %v6242_v40 }
 0x59a   : > { %v7990_v56 = vpop.f32.mrf.mxu0 }
 0x59b   : > { %v2087_v54 = vadd.f32 %v7990_v56, %v6211_v53 }
 0x59c   : > { %v7992_v58 = vpop.f32.mrf.mxu0 }
 0x59d   : > { %v2086_v57 = vadd.f32 %v6211_v53, %v7992_v58  ;;  %v6287_v53 = vld [vmem:[%s7415_s1 + $0x68] sm:$0xff] }
 0x5a2   : > { %v7000_v0 = vpop.f32.mrf.mxu0 }
 0x5a3   : > { %v2261_v7 = vadd.f32 %v7000_v0, %v6225_v1 }
 0x5a4   : > { %v2255_v3 = vpop.f32.mrf.mxu0 }
 0x5a5   : > { %v2256_v4 = vadd.f32 %v6225_v1, %v2255_v3 }
 0x5a7   : > { %7013 = vmatpush3.xpose.msk.msra.mxu0 %vm1677_vm3, %v2256_v4 }
 0x5a8   : > { %7017 = vmatprep.subr.mxu0 %v7259_v63 }
 0x5aa   : > { %7015 = vmatmul.mubr.msk.f32.vlgmr.msra.gmra.mxu0 %vm1677_vm3, %v2352_v6 }
 0x5ab   : > { %7018 = vmatpush3.xpose.msk.msra.mxu0 %vm1677_vm3, %v2261_v7  ;;  %7019 = vmatprep.mubr.msk.f32.mxu0 %vm7260_vm2, %v7259_v63 }
 0x5ac   : > { %7027 = vmatprep.subr.mxu0 %v7259_v63 }
 0x5ae   : > { %7020 = vmatmul.mubr.msk.f32.vlgmr.msra.gmra.mxu0 %vm1677_vm3, %v2353_v8 }
 0x5af   : > { %7029 = vmatprep.mubr.msk.f32.mxu0 %vm7260_vm2, %v7259_v63  ;;  %7028 = vmatpush3.msra.mxu0 %v2349_v31 }
 0x5b0   : > { %7037 = vmatprep.subr.mxu0 %v6248_v41 }
 0x66a   : > { %v2426_v13 = vpop.f32.mrf.mxu0 }
 0x66b   : > { %v2506_v14 = vsel %vm1677_vm3, %v2426_v13, -inf }
 0x66c   : > { %2507 = vmax.xlane.f32.xlu0 %v2506_v14  ;;  %v7016_v15 = vpop.f32.mrf.mxu0  ;;  %v6261_v14 = vld [vmem:[%s7425_s2 + $0x40] sm:$0xff] }
 0x66e   : > { %v2502_v16 = vpop.f32.mrf.mxu0 }
 0x66f   : > { %v2509_v17 = vsel %vm1677_vm3, %v2502_v16, -inf }
 0x670   : > { %2510 = vmax.xlane.f32.xlu1 %v2509_v17  ;;  %v7021_v18 = vpop.f32.mrf.mxu0 }
 0x6f5   : > { %v2508_v19 = vpop.xlane.xlu0 %2507 }
 0x6f6   : > { %v2512_v20 = vsub.f32 %v2426_v13, %v2508_v19  ;;  %v6262_v13 = vld [vmem:[%s7425_s2 + $0x48] sm:$0xff] }
 0x6f8   : > { %v2514_v21 = vmul.f32 1.442695, %v2512_v20 }
 0x6f9   : > { %v2511_v22 = vpop.xlane.xlu1 %2510 }
 0x6fa   : > { %7191 = vpow2.f32 %v2514_v21  ;;  %v2513_v23 = vsub.f32 %v2502_v16, %v2511_v22 }
 0x6fc   : > { %v2516_v24 = vmul.f32 1.442695, %v2513_v23 }
 0x6fe   : > { %7193 = vpow2.f32 %v2516_v24 }
 0x707   : > { %v7192_v25 = vpop.eup %7191 }
 0x708   : > { %v2518_v26 = vsel %vm1677_vm3, %v7192_v25, 0.0 }
 0x709   : > { %2519 = vadd.xlane.f32.xlu0 %v2518_v26 }
 0x70b   : > { %v7194_v27 = vpop.eup %7193 }
 0x70c   : > { %v2521_v28 = vsel %vm1677_vm3, %v7194_v27, 0.0 }
 0x70d   : > { %2522 = vadd.xlane.f32.xlu1 %v2521_v28 }
 0x792   : > { %v2520_v34 = vpop.xlane.xlu0 %2519 }
 0x793   : > { %7195 = vrcp.f32 %v2520_v34 }
 0x796   : > { %v2523_v35 = vpop.xlane.xlu1 %2522 }
 0x797   : > { %7197 = vrcp.f32 %v2523_v35 }
 0x7a0   : > { %v7196_v36 = vpop.eup %7195 }
 0x7a1   : > { %v2526_v37 = vmul.f32 %v7196_v36, %v7192_v25 }
 0x7a3   : > { %7025 = vmatmul.mubr.msk.f32.vlgmr.msra.gmra.mxu1 %vm1677_vm3, %v2526_v37 }
 0x7a4   : > { %v7198_v38 = vpop.eup %7197  ;;  %7033 = vmatpush3.msra.mxu1 %v6242_v40 }
 0x7a5   : > { %v2527_v39 = vmul.f32 %v7198_v38, %v7194_v27  ;;  %7048 = vmatprep.subr.mxu1 %v6256_v42 }
 0x7a7   : > { %7030 = vmatmul.mubr.msk.f32.vlgmr.msra.gmra.mxu0 %vm1677_vm3, %v2527_v39 }
 0x7a8   : > { %7045 = vmatprep.mubr.msk.f32.mxu0 %vm1421_vm1, %v7921_v61  ;;  %7038 = vmatpush3.msra.mxu0 %v6248_v41 }
 0x7a9   : > { %7039 = vmatprep.subr.mxu0 %v6247_v43 }
 0x7aa   : > { %7040 = vmatpush3.msra.mxu0 %v6247_v43  ;;  %v6281_v43 = vld [vmem:[%s7410_s20 + $0x78] sm:$0xff] }
 0x7ab   : > { %7041 = vmatprep.subr.mxu0 %v6246_v44 }
 0x7ac   : > { %7042 = vmatpush3.msra.mxu0 %v6246_v44  ;;  %v6289_v44 = vld [vmem:[%s7415_s1 + $0x78] sm:$0xff] }
 0x7ad   : > { %7043 = vmatprep.subr.mxu0 %v6245_v45 }
 0x7ae   : > { %7044 = vmatpush3.msra.mxu0 %v6245_v45  ;;  %v6280_v45 = vld [vmem:[%s7410_s20 + $0x70] sm:$0xff] }
 0x7af   : > { %7046 = vmatmul.mubr.msk.f32.vlgmr.msra.gmra.mxu0 %vm1421_vm1, %v7923_v62  ;;  %7059 = vmatprep.subr.mxu0 %v6264_v11 }
 0x7b0   : > { %7067 = vmatprep.mubr.msk.f32.mxu0 %vm1421_vm1, %v7921_v61  ;;  %7060 = vmatpush3.msra.mxu0 %v6264_v11  ;;  %v6296_v11 = vld [vmem:[%s7425_s2 + $0x70] sm:$0xff] }
 0x7b1   : > { %7061 = vmatprep.subr.mxu0 %v6263_v12 }
 0x7b2   : > { %7062 = vmatpush3.msra.mxu0 %v6263_v12  ;;  %v6295_v12 = vld [vmem:[%s7425_s2 + $0x68] sm:$0xff] }
 0x7b3   : > { %7063 = vmatprep.subr.mxu0 %v6262_v13 }
 0x7b4   : > { %7064 = vmatpush3.msra.mxu0 %v6262_v13  ;;  %v6294_v13 = vld [vmem:[%s7425_s2 + $0x60] sm:$0xff] }
 0x7b5   : > { %7065 = vmatprep.subr.mxu0 %v6261_v14 }
 0x7b6   : > { %7066 = vmatpush3.msra.mxu0 %v6261_v14 }
 0x7b7   : > { %7068 = vmatmul.mubr.msk.f32.vlgmr.msra.gmra.mxu0 %vm1421_vm1, %v7923_v62  ;;  %7080 = vmatprep.subr.mxu0 %v7259_v63 }
 0x7b8   : > { %7082 = vmatprep.mubr.msk.f32.mxu0 %vm7260_vm2, %v7259_v63 }
 0x863   : > { %v2597_v46 = vpop.f32.mrf.mxu1 }
 0x864   : > { %7034 = vmatprep.mubr.msk.f32.mxu1 %vm1677_vm3, %v2597_v46  ;;  %v6279_v46 = vld [vmem:[%s7410_s20 + $0x68] sm:$0xff] }
 0x865   : > { %v7026_v47 = vpop.f32.mrf.mxu1 }
 0x866   : > { %v6278_v47 = vld [vmem:[%s7410_s20 + $0x60] sm:$0xff] }
 0x867   : > { %v2670_v48 = vpop.f32.mrf.mxu0 }
 0x868   : > { %7035 = vmatmul.mubr.msk.f32.vlgmr.msra.gmra.mxu1 %vm1677_vm3, %v2670_v48 }
 0x869   : > { %7049 = vmatpush3.msra.mxu1 %v6256_v42  ;;  %v7031_v50 = vpop.f32.mrf.mxu0  ;;  %7056 = vmatprep.mubr.msk.f32.mxu1 %vm1421_vm1, %v7921_v61  ;;  %v6275_v42 = vld [vmem:[%s7435_s23 + $0x10] sm:$0xff] }
 0x86a   : > { %7050 = vmatprep.subr.mxu1 %v6255_v49 }
 0x86b   : > { %7051 = vmatpush3.msra.mxu1 %v6255_v49 }
 0x86c   : > { %7052 = vmatprep.subr.mxu1 %v6254_v51 }
 0x86d   : > { %7053 = vmatpush3.msra.mxu1 %v6254_v51  ;;  %v6288_v51 = vld [vmem:[%s7415_s1 + $0x70] sm:$0xff] }
 0x86e   : > { %7054 = vmatprep.subr.mxu1 %v6253_v52 }
 0x86f   : > { %7055 = vmatpush3.msra.mxu1 %v6253_v52  ;;  %v7047_v1 = vpop.f32.mrf.mxu0 }
 0x870   : > { %7057 = vmatmul.mubr.msk.f32.vlgmr.msra.gmra.mxu1 %vm1421_vm1, %v7923_v62  ;;  %7070 = vmatprep.subr.mxu1 %v7259_v63  ;;  %v2844_v56 = vadd.f32 %v7047_v1, %v6250_v2 }
 0x871   : > { %7072 = vmatprep.mubr.msk.f32.mxu1 %vm7260_vm2, %v7259_v63  ;;  %v2838_v3 = vpop.f32.mrf.mxu0 }
 0x872   : > { %v2839_v6 = vadd.f32 %v6250_v2, %v2838_v3  ;;  %v3024_v10 = vmul.f32 0.35355338, %v2844_v56  ;;  %v6283_v3 = vld [vmem:[%s8776_s10 + $0x3] ss:$0 sm:$0xff] }
 0x874   : > { %v3023_v58 = vmul.f32 0.35355338, %v2839_v6  ;;  %v6291_v6 = vld [vmem:[%s8777_s27 + $0x3] ss:$0 sm:$0xff] }
 0x877   : > { %v7069_v31 = vpop.f32.mrf.mxu0 }
 0x878   : > { %v3020_v33 = vadd.f32 %v7069_v31, %v6266_v32  ;;  %v6299_v31 = vld [vmem:[%s7430_s21 + $0x3] ss:$0 sm:$0xff] }
 0x879   : > { %v3014_v34 = vpop.f32.mrf.mxu0 }
 0x87a   : > { %v3015_v35 = vadd.f32 %v6266_v32, %v3014_v34 }
 0x87c   : > { %7081 = vmatpush3.msra.mxu0 %v3015_v35 }
 0x87d   : > { %7090 = vmatprep.subr.mxu0 %v6275_v42 }
 0x928   : > { %v7036_v55 = vpop.f32.mrf.mxu1 }
 0x929   : > { %v8053_v59 = vadd.f32 %v7036_v55, %v2087_v54  ;;  %v6286_v54 = vld [vmem:[%s7415_s1 + $0x60] sm:$0xff] }
 0x92a   : > { %v2748_v60 = vpop.f32.mrf.mxu1 }
 0x92b   : > { %v8055_v0 = vadd.f32 %v2748_v60, %v2086_v57 }
 0x930   : > { %v7058_v4 = vpop.f32.mrf.mxu1 }
 0x931   : > { %v2932_v9 = vadd.f32 %v7058_v4, %v6258_v5 }
 0x932   : > { %v2926_v7 = vpop.f32.mrf.mxu1 }
 0x933   : > { %v2927_v8 = vadd.f32 %v6258_v5, %v2926_v7 }
 0x935   : > { %7071 = vmatpush3.xpose.msk.msra.mxu1 %vm1677_vm3, %v2927_v8 }
 0x936   : > { %7075 = vmatprep.subr.mxu1 %v7259_v63 }
 0x938   : > { %7073 = vmatmul.mubr.msk.f32.vlgmr.msra.gmra.mxu1 %vm1677_vm3, %v3023_v58 }
 0x939   : > { %7076 = vmatpush3.xpose.msk.msra.mxu1 %vm1677_vm3, %v2932_v9  ;;  %7077 = vmatprep.mubr.msk.f32.mxu1 %vm7260_vm2, %v7259_v63 }
 0x93a   : > { %7085 = vmatprep.subr.mxu1 %v7259_v63 }
 0x93c   : > { %7078 = vmatmul.mubr.msk.f32.vlgmr.msra.gmra.mxu1 %vm1677_vm3, %v3024_v10  ;;  %v6297_v10 = vld [vmem:[%s7425_s2 + $0x78] sm:$0xff]  ;;  %s8780_s2 = sld [smem:[#allocation21_spill]] }
 0x93d   : > { %7087 = vmatprep.mubr.msk.f32.mxu1 %vm7260_vm2, %v7259_v63  ;;  %7086 = vmatpush3.msra.mxu1 %v3020_v33 }
 0x93e   : > { %7095 = vmatprep.subr.mxu1 %v6281_v43 }
 0x942   : > { %s8781_s21 = scalar_lea.vmem %s8780_s2, %s7392_s30 }
 0x9f8   : > { %v3097_v15 = vpop.f32.mrf.mxu1 }
 0x9f9   : > { %v3177_v16 = vsel %vm1677_vm3, %v3097_v15, -inf }
 0x9fa   : > { %3178 = vmax.xlane.f32.xlu0 %v3177_v16  ;;  %v7074_v17 = vpop.f32.mrf.mxu1 }
 0x9fc   : > { %v3173_v18 = vpop.f32.mrf.mxu1 }
 0x9fd   : > { %v3180_v19 = vsel %vm1677_vm3, %v3173_v18, -inf }
 0x9fe   : > { %3181 = vmax.xlane.f32.xlu1 %v3180_v19  ;;  %v7079_v20 = vpop.f32.mrf.mxu1 }
 0xa83   : > { %v3179_v21 = vpop.xlane.xlu0 %3178 }
 0xa84   : > { %v3183_v22 = vsub.f32 %v3097_v15, %v3179_v21 }
 0xa86   : > { %v3185_v23 = vmul.f32 1.442695, %v3183_v22 }
 0xa87   : > { %v3182_v24 = vpop.xlane.xlu1 %3181 }
 0xa88   : > { %7199 = vpow2.f32 %v3185_v23  ;;  %v3184_v25 = vsub.f32 %v3173_v18, %v3182_v24 }
 0xa8a   : > { %v3187_v26 = vmul.f32 1.442695, %v3184_v25 }
 0xa8c   : > { %7201 = vpow2.f32 %v3187_v26 }
 0xa95   : > { %v7200_v27 = vpop.eup %7199 }
 0xa96   : > { %v3189_v28 = vsel %vm1677_vm3, %v7200_v27, 0.0 }
 0xa97   : > { %3190 = vadd.xlane.f32.xlu0 %v3189_v28 }
 0xa99   : > { %v7202_v29 = vpop.eup %7201 }
 0xa9a   : > { %v3192_v30 = vsel %vm1677_vm3, %v7202_v29, 0.0 }
 0xa9b   : > { %3193 = vadd.xlane.f32.xlu1 %v3192_v30 }
 0xb20   : > { %v3191_v36 = vpop.xlane.xlu0 %3190 }
 0xb21   : > { %7203 = vrcp.f32 %v3191_v36 }
 0xb24   : > { %v3194_v37 = vpop.xlane.xlu1 %3193 }
 0xb25   : > { %7205 = vrcp.f32 %v3194_v37 }
 0xb2e   : > { %v7204_v38 = vpop.eup %7203 }
 0xb2f   : > { %v3197_v39 = vmul.f32 %v7204_v38, %v7200_v27 }
 0xb31   : > { %7083 = vmatmul.mubr.msk.f32.vlgmr.msra.gmra.mxu0 %vm1677_vm3, %v3197_v39 }
 0xb32   : > { %v7206_v40 = vpop.eup %7205  ;;  %7091 = vmatpush3.msra.mxu0 %v6275_v42 }
 0xb33   : > { %v3198_v41 = vmul.f32 %v7206_v40, %v7202_v29  ;;  %7106 = vmatprep.subr.mxu0 %v6289_v44 }
 0xb35   : > { %7088 = vmatmul.mubr.msk.f32.vlgmr.msra.gmra.mxu1 %vm1677_vm3, %v3198_v41  ;;  %v6308_v41 = vld [vmem:[%s7435_s23 + $0x18] sm:$0xff] }
 0xb36   : > { %7103 = vmatprep.mubr.msk.f32.mxu1 %vm1421_vm1, %v7921_v61  ;;  %7096 = vmatpush3.msra.mxu1 %v6281_v43 }
 0xb37   : > { %7097 = vmatprep.subr.mxu1 %v6280_v45 }
 0xb38   : > { %7098 = vmatpush3.msra.mxu1 %v6280_v45 }
 0xb39   : > { %7099 = vmatprep.subr.mxu1 %v6279_v46 }
 0xb3a   : > { %7100 = vmatpush3.msra.mxu1 %v6279_v46 }
 0xb3b   : > { %7101 = vmatprep.subr.mxu1 %v6278_v47 }
 0xb3c   : > { %7102 = vmatpush3.msra.mxu1 %v6278_v47 }
 0xb3d   : > { %7104 = vmatmul.mubr.msk.f32.vlgmr.msra.gmra.mxu1 %vm1421_vm1, %v7923_v62  ;;  %7117 = vmatprep.subr.mxu1 %v6297_v10 }
 0xb3e   : > { %7125 = vmatprep.mubr.msk.f32.mxu1 %vm1421_vm1, %v7921_v61  ;;  %7118 = vmatpush3.msra.mxu1 %v6297_v10  ;;  %v4167_v10 = vld [vmem:[%s7446_s26 + $0x98] sm:$0xff] }
 0xb3f   : > { %7119 = vmatprep.subr.mxu1 %v6296_v11 }
 0xb40   : > { %7120 = vmatpush3.msra.mxu1 %v6296_v11  ;;  %v4164_v11 = vld [vmem:[%s7446_s26 + $0x80] sm:$0xff] }
 0xb41   : > { %7121 = vmatprep.subr.mxu1 %v6295_v12 }
 0xb42   : > { %7122 = vmatpush3.msra.mxu1 %v6295_v12  ;;  %v4166_v12 = vld [vmem:[%s7446_s26 + $0x90] sm:$0xff] }
 0xb43   : > { %7123 = vmatprep.subr.mxu1 %v6294_v13 }
 0xb44   : > { %7124 = vmatpush3.msra.mxu1 %v6294_v13  ;;  %v4149_v13 = vld [vmem:[%s7446_s26 + $0x8] sm:$0xff] }
 0xb45   : > { %7126 = vmatmul.mubr.msk.f32.vlgmr.msra.gmra.mxu1 %vm1421_vm1, %v7923_v62  ;;  %7138 = vmatprep.subr.mxu1 %v7259_v63 }
 0xb46   : > { %7140 = vmatprep.mubr.msk.f32.mxu1 %vm7260_vm2, %v7259_v63 }
 0xbf1   : > { %v3268_v48 = vpop.f32.mrf.mxu0 }
 0xbf2   : > { %7092 = vmatprep.mubr.msk.f32.mxu0 %vm1677_vm3, %v3268_v48 }
 0xbf3   : > { %v7084_v49 = vpop.f32.mrf.mxu0 }
 0xbf5   : > { %v3341_v50 = vpop.f32.mrf.mxu1 }
 0xbf6   : > { %7093 = vmatmul.mubr.msk.f32.vlgmr.msra.gmra.mxu0 %vm1677_vm3, %v3341_v50 }
 0xbf7   : > { %7107 = vmatpush3.msra.mxu0 %v6289_v44  ;;  %v7089_v52 = vpop.f32.mrf.mxu1  ;;  %7114 = vmatprep.mubr.msk.f32.mxu0 %vm1421_vm1, %v7921_v61 }
 0xbf8   : > { %7108 = vmatprep.subr.mxu0 %v6288_v51 }
 0xbf9   : > { %7109 = vmatpush3.msra.mxu0 %v6288_v51 }
 0xbfa   : > { %7110 = vmatprep.subr.mxu0 %v6287_v53 }
 0xbfb   : > { %7111 = vmatpush3.msra.mxu0 %v6287_v53 }
 0xbfc   : > { %7112 = vmatprep.subr.mxu0 %v6286_v54 }
 0xbfd   : > { %7113 = vmatpush3.msra.mxu0 %v6286_v54  ;;  %v7105_v2 = vpop.f32.mrf.mxu1 }
 0xbfe   : > { %7115 = vmatmul.mubr.msk.f32.vlgmr.msra.gmra.mxu0 %vm1421_vm1, %v7923_v62  ;;  %7128 = vmatprep.subr.mxu0 %v7259_v63  ;;  %v3515_v58 = vadd.f32 %v7105_v2, %v6283_v3 }
 0xbff   : > { %7130 = vmatprep.mubr.msk.f32.mxu0 %vm7260_vm2, %v7259_v63  ;;  %v3509_v4 = vpop.f32.mrf.mxu1 }
 0xc00   : > { %v3510_v7 = vadd.f32 %v6283_v3, %v3509_v4  ;;  %v3695_v9 = vmul.f32 0.35355338, %v3515_v58  ;;  %v4183_v58 = vld [vmem:[%s7446_s26 + $0x118] sm:$0xff] }
 0xc05   : > { %v7127_v30 = vpop.f32.mrf.mxu1 }
 0xc06   : > { %v3691_v32 = vadd.f32 %v7127_v30, %v6299_v31 }
 0xc07   : > { %v3685_v33 = vpop.f32.mrf.mxu1 }
 0xc08   : > { %v3686_v34 = vadd.f32 %v6299_v31, %v3685_v33  ;;  %v6312_v31 = vld [vmem:[%s8782_s8] ss:$0 sm:$0xff] }
 0xc09   : > { %v4200_v33 = vld [vmem:[%s7446_s26 + $0x1a0] sm:$0xff] }
 0xc0a   : > { %7139 = vmatpush3.msra.mxu1 %v3686_v34  ;;  %v4202_v34 = vld [vmem:[%s7446_s26 + $0x1b0] sm:$0xff] }
 0xc0b   : > { %7148 = vmatprep.subr.mxu1 %v6308_v41 }
 0xcb6   : > { %v7094_v55 = vpop.f32.mrf.mxu0 }
 0xcb7   : > { %v8110_v57 = vadd.f32 %v7094_v55, %v8053_v59  ;;  %v3694_v59 = vmul.f32 0.35355338, %v3510_v7  ;;  %v4196_v7 = vld [vmem:[%s7446_s26 + $0x180] sm:$0xff] }
 0xcb8   : > { %v3419_v60 = vpop.f32.mrf.mxu0 }
 0xcb9   : > { %v8113_v1 = vadd.f32 %v3419_v60, %v8055_v0 }
 0xcbe   : > { %v7116_v5 = vpop.f32.mrf.mxu0 }
 0xcbf   : > { %v3603_v0 = vadd.f32 %v7116_v5, %v6291_v6  ;;  %v4197_v5 = vld [vmem:[%s7446_s26 + $0x188] sm:$0xff] }
 0xcc0   : > { %v3597_v8 = vpop.f32.mrf.mxu0 }
 0xcc1   : > { %v3598_v56 = vadd.f32 %v6291_v6, %v3597_v8  ;;  %v4199_v6 = vld [vmem:[%s7446_s26 + $0x198] sm:$0xff]  ;;  %v4198_v8 = vld [vmem:[%s7446_s26 + $0x190] sm:$0xff] }
 0xcc3   : > { %7129 = vmatpush3.xpose.msk.msra.mxu0 %vm1677_vm3, %v3598_v56  ;;  %v4181_v56 = vld [vmem:[%s7446_s26 + $0x108] sm:$0xff] }
 0xcc4   : > { %7133 = vmatprep.subr.mxu0 %v7259_v63 }
 0xcc6   : > { %7131 = vmatmul.mubr.msk.f32.vlgmr.msra.gmra.mxu0 %vm1677_vm3, %v3694_v59  ;;  %v4180_v59 = vld [vmem:[%s7446_s26 + $0x100] sm:$0xff] }
 0xcc7   : > { %7134 = vmatpush3.xpose.msk.msra.mxu0 %vm1677_vm3, %v3603_v0  ;;  %7135 = vmatprep.mubr.msk.f32.mxu0 %vm7260_vm2, %v7259_v63  ;;  %v4182_v0 = vld [vmem:[%s7446_s26 + $0x110] sm:$0xff] }
 0xcc8   : > { %7143 = vmatprep.subr.mxu0 %v7259_v63 }
 0xcca   : > { %7136 = vmatmul.mubr.msk.f32.vlgmr.msra.gmra.mxu0 %vm1677_vm3, %v3695_v9  ;;  %v4165_v9 = vld [vmem:[%s7446_s26 + $0x88] sm:$0xff] }
 0xccb   : > { %7145 = vmatprep.mubr.msk.f32.mxu0 %vm7260_vm2, %v7259_v63  ;;  %7144 = vmatpush3.msra.mxu0 %v3691_v32 }
 0xccc   : > { %4326 = vmatprep.subr.mxu0 %v4197_v5  ;;  %v4158_v5 = vld [vmem:[%s7446_s26 + $0x50] sm:$0xff] }
 0xd86   : > { %v3768_v14 = vpop.f32.mrf.mxu0 }
 0xd87   : > { %v3848_v15 = vsel %vm1677_vm3, %v3768_v14, -inf }
 0xd88   : > { %3849 = vmax.xlane.f32.xlu0 %v3848_v15  ;;  %v7132_v16 = vpop.f32.mrf.mxu0  ;;  %v4148_v15 = vld [vmem:[%s7446_s26] sm:$0xff] }
 0xd89   : > { %v4150_v16 = vld [vmem:[%s7446_s26 + $0x10] sm:$0xff] }
 0xd8a   : > { %v3844_v17 = vpop.f32.mrf.mxu0 }
 0xd8b   : > { %v3851_v18 = vsel %vm1677_vm3, %v3844_v17, -inf }
 0xd8c   : > { %3852 = vmax.xlane.f32.xlu1 %v3851_v18  ;;  %v7137_v19 = vpop.f32.mrf.mxu0  ;;  %v4203_v18 = vld [vmem:[%s7446_s26 + $0x1b8] sm:$0xff] }
 0xe11   : > { %v3850_v20 = vpop.xlane.xlu0 %3849 }
 0xe12   : > { %v3854_v21 = vsub.f32 %v3768_v14, %v3850_v20  ;;  %v4151_v14 = vld [vmem:[%s7446_s26 + $0x18] sm:$0xff] }
 0xe14   : > { %v3856_v22 = vmul.f32 1.442695, %v3854_v21 }
 0xe15   : > { %v3853_v23 = vpop.xlane.xlu1 %3852 }
 0xe16   : > { %7207 = vpow2.f32 %v3856_v22  ;;  %v3855_v24 = vsub.f32 %v3844_v17, %v3853_v23  ;;  %v4201_v17 = vld [vmem:[%s7446_s26 + $0x1a8] sm:$0xff] }
 0xe18   : > { %v3858_v25 = vmul.f32 1.442695, %v3855_v24 }
 0xe1a   : > { %7209 = vpow2.f32 %v3858_v25 }
 0xe23   : > { %v7208_v26 = vpop.eup %7207 }
 0xe24   : > { %v3860_v27 = vsel %vm1677_vm3, %v7208_v26, 0.0 }
 0xe25   : > { %3861 = vadd.xlane.f32.xlu0 %v3860_v27 }
 0xe27   : > { %v7210_v28 = vpop.eup %7209 }
 0xe28   : > { %v3863_v29 = vsel %vm1677_vm3, %v7210_v28, 0.0 }
 0xe29   : > { %3864 = vadd.xlane.f32.xlu1 %v3863_v29 }
 0xeae   : > { %v3862_v35 = vpop.xlane.xlu0 %3861 }
 0xeaf   : > { %7211 = vrcp.f32 %v3862_v35 }
 0xeb2   : > { %v3865_v36 = vpop.xlane.xlu1 %3864 }
 0xeb3   : > { %7213 = vrcp.f32 %v3865_v36  ;;  %v4185_v36 = vld [vmem:[%s7446_s26 + $0x128] sm:$0xff] }
 0xebc   : > { %v7212_v37 = vpop.eup %7211 }
 0xebd   : > { %v3868_v38 = vmul.f32 %v7212_v37, %v7208_v26  ;;  %v4187_v37 = vld [vmem:[%s7446_s26 + $0x138] sm:$0xff] }
 0xebf   : > { %7141 = vmatmul.mubr.msk.f32.vlgmr.msra.gmra.mxu1 %vm1677_vm3, %v3868_v38  ;;  %v4184_v38 = vld [vmem:[%s7446_s26 + $0x120] sm:$0xff] }
 0xec0   : > { %v7214_v39 = vpop.eup %7213  ;;  %7149 = vmatpush3.msra.mxu1 %v6308_v41  ;;  %v4169_v41 = vld [vmem:[%s7446_s26 + $0xa8] sm:$0xff] }
 0xec1   : > { %v3869_v40 = vmul.f32 %v7214_v39, %v7210_v28  ;;  %4403 = vmatprep.subr.mxu1 %v4199_v6  ;;  %v6311_v28 = vld [vmem:[%s8781_s21] ss:$0 sm:$0xff]  ;;  %v4186_v39 = vld [vmem:[%s7446_s26 + $0x130] sm:$0xff]  ;;  %v4209_v6 = vld [vmem:[%s7446_s26 + $0x1e8] sm:$0xff] }
 0xec3   : > { %7146 = vmatmul.mubr.msk.f32.vlgmr.msra.gmra.mxu0 %vm1677_vm3, %v3869_v40 }
 0xec4   : > { %4366 = vmatprep.mubr.f32.mxu0 %v7259_v63  ;;  %4327 = vmatpush1.msra.mxu0 %v4196_v7  ;;  %v4211_v7 = vld [vmem:[%s7446_s26 + $0x1f8] sm:$0xff] }
 0xec5   : > { %4328 = vmatprep.subr.mxu0 %v4181_v56  ;;  %v4210_v56 = vld [vmem:[%s7446_s26 + $0x1f0] sm:$0xff] }
 0xec6   : > { %4329 = vmatpush1.msra.mxu0 %v4180_v59  ;;  %v4195_v59 = vld [vmem:[%s7446_s26 + $0x178] sm:$0xff] }
 0xec7   : > { %4330 = vmatprep.subr.mxu0 %v4165_v9  ;;  %v4194_v9 = vld [vmem:[%s7446_s26 + $0x170] sm:$0xff] }
 0xec8   : > { %4331 = vmatpush1.msra.mxu0 %v4164_v11  ;;  %v4179_v11 = vld [vmem:[%s7446_s26 + $0xf8] sm:$0xff] }
 0xec9   : > { %4332 = vmatprep.subr.mxu0 %v4149_v13  ;;  %v4178_v13 = vld [vmem:[%s7446_s26 + $0xf0] sm:$0xff] }
 0xeca   : > { %4333 = vmatpush1.msra.mxu0 %v4148_v15  ;;  %v4163_v15 = vld [vmem:[%s7446_s26 + $0x78] sm:$0xff] }
 0xecb   : > { %4480 = vmatprep.subr.mxu0 %v4201_v17  ;;  %v4162_v17 = vld [vmem:[%s7446_s26 + $0x70] sm:$0xff] }
 0xf7f   : > { %v3939_v42 = vpop.f32.mrf.mxu1 }
 0xf80   : > { %7150 = vmatprep.mubr.msk.f32.mxu1 %vm1677_vm3, %v3939_v42  ;;  %v4171_v42 = vld [vmem:[%s7446_s26 + $0xb8] sm:$0xff] }
 0xf81   : > { %v7142_v43 = vpop.f32.mrf.mxu1 }
 0xf82   : > { %v4168_v43 = vld [vmem:[%s7446_s26 + $0xa0] sm:$0xff] }
 0xf83   : > { %v4012_v44 = vpop.f32.mrf.mxu0 }
 0xf84   : > { %7151 = vmatmul.mubr.msk.f32.vlgmr.msra.gmra.mxu1 %vm1677_vm3, %v4012_v44  ;;  %v4170_v44 = vld [vmem:[%s7446_s26 + $0xb0] sm:$0xff] }
 0xf85   : > { %v7147_v45 = vpop.f32.mrf.mxu0  ;;  %4443 = vmatprep.mubr.f32.mxu1 %v7259_v63  ;;  %4404 = vmatpush1.msra.mxu1 %v4198_v8  ;;  %v4208_v8 = vld [vmem:[%s7446_s26 + $0x1e0] sm:$0xff] }
 0xf86   : > { %4405 = vmatprep.subr.mxu1 %v4183_v58  ;;  %v4153_v45 = vld [vmem:[%s7446_s26 + $0x28] sm:$0xff] }
 0xf87   : > { %4406 = vmatpush1.msra.mxu1 %v4182_v0  ;;  %v4193_v58 = vld [vmem:[%s7446_s26 + $0x168] sm:$0xff]  ;;  %v4192_v0 = vld [vmem:[%s7446_s26 + $0x160] sm:$0xff] }
 0xf88   : > { %4407 = vmatprep.subr.mxu1 %v4167_v10  ;;  %v4177_v10 = vld [vmem:[%s7446_s26 + $0xe8] sm:$0xff] }
 0xf89   : > { %4408 = vmatpush1.msra.mxu1 %v4166_v12  ;;  %v4176_v12 = vld [vmem:[%s7446_s26 + $0xe0] sm:$0xff] }
 0xf8a   : > { %4409 = vmatprep.subr.mxu1 %v4151_v14  ;;  %v4161_v14 = vld [vmem:[%s7446_s26 + $0x68] sm:$0xff] }
 0xf8b   : > { %4410 = vmatpush1.msra.mxu1 %v4150_v16  ;;  %v4160_v16 = vld [vmem:[%s7446_s26 + $0x60] sm:$0xff] }
 0xf8c   : > { %4557 = vmatprep.subr.mxu1 %v4203_v18  ;;  %v4981_v18 = vld [vmem:[%s7461_s24 + $0xf8] sm:$0xff] }
0x1044   : > { %v7152_v46 = vpop.f32.mrf.mxu1 }
0x1045   : > { %v4100_v47 = vadd.f32 %v7152_v46, %v8110_v57  ;;  %v4155_v46 = vld [vmem:[%s7446_s26 + $0x38] sm:$0xff] }
0x1046   : > { %v4090_v48 = vpop.f32.mrf.mxu1 }
0x1047   : > { %v4099_v49 = vadd.f32 %v4090_v48, %v8113_v1  ;;  %v4102_v50 = vadd.f32 %v4100_v47, %v7923_v62  ;;  %v4152_v47 = vld [vmem:[%s7446_s26 + $0x20] sm:$0xff]  ;;  %v4154_v48 = vld [vmem:[%s7446_s26 + $0x30] sm:$0xff] }
0x1049   : > { %v4108_v51 = vsel %vm1421_vm1, %v4102_v50, 0.0  ;;  %v4101_v52 = vadd.f32 %v4099_v49, %v7921_v61  ;;  %v4205_v49 = vld [vmem:[%s7446_s26 + $0x1c8] sm:$0xff] }
0x104a   : > { %4109 = vadd.xlane.f32.xlu1 %v4108_v51  ;;  %v4204_v51 = vld [vmem:[%s7446_s26 + $0x1c0] sm:$0xff] }
0x104b   : > { %v4105_v53 = vsel %vm1421_vm1, %v4101_v52, 0.0 }
0x104c   : > { %4106 = vadd.xlane.f32.xlu0 %v4105_v53  ;;  %v4189_v53 = vld [vmem:[%s7446_s26 + $0x148] sm:$0xff] }
0x10d3   : > { %v4110_v54 = vpop.xlane.xlu1 %4109 }
0x10d4   : > { %v4113_v55 = vmul.f32 0.03125, %v4110_v54  ;;  %v4191_v54 = vld [vmem:[%s7446_s26 + $0x158] sm:$0xff] }
0x10d5   : > { %v4107_v57 = vpop.xlane.xlu0 %4106 }
0x10d6   : > { %v4115_v60 = vsub.f32 %v4102_v50, %v4113_v55  ;;  %v4112_v2 = vmul.f32 0.03125, %v4107_v57  ;;  %v4207_v50 = vld [vmem:[%s7446_s26 + $0x1d8] sm:$0xff]  ;;  %v4188_v55 = vld [vmem:[%s7446_s26 + $0x140] sm:$0xff]  ;;  %v4190_v57 = vld [vmem:[%s7446_s26 + $0x150] sm:$0xff] }
0x10d8   : > { %v4114_v1 = vsub.f32 %v4101_v52, %v4112_v2  ;;  %v4117_v62 = vmul.f32 %v4115_v60, %v4115_v60  ;;  %v4206_v52 = vld [vmem:[%s7446_s26 + $0x1d0] sm:$0xff]  ;;  %v4175_v2 = vld [vmem:[%s7446_s26 + $0xd8] sm:$0xff] }
0x10da   : > { %v4121_v3 = vsel %vm1421_vm1, %v4117_v62, 0.0  ;;  %v4116_v61 = vmul.f32 %v4114_v1, %v4114_v1  ;;  %v4174_v62 = vld [vmem:[%s7446_s26 + $0xd0] sm:$0xff] }
0x10db   : > { %4122 = vadd.xlane.f32.xlu1 %v4121_v3  ;;  %v4157_v3 = vld [vmem:[%s7446_s26 + $0x48] sm:$0xff] }
0x10dc   : > { %v4118_v4 = vsel %vm1421_vm1, %v4116_v61, 0.0  ;;  %v4159_v61 = vld [vmem:[%s7446_s26 + $0x58] sm:$0xff] }
0x10dd   : > { %4119 = vadd.xlane.f32.xlu0 %v4118_v4  ;;  %v4156_v4 = vld [vmem:[%s7446_s26 + $0x40] sm:$0xff] }
0x1164   : > { %v4123_v19 = vpop.xlane.xlu1 %4122 }
0x1165   : > { %v4125_v20 = vmul.f32 0.03125, %v4123_v19  ;;  %v5013_v19 = vld [vmem:[%s7461_s24 + $0x1f8] sm:$0xff] }
0x1166   : > { %v4120_v21 = vpop.xlane.xlu0 %4119 }
0x1167   : > { %v4127_v22 = vadd.f32 1e-05, %v4125_v20  ;;  %v4124_v23 = vmul.f32 0.03125, %v4120_v21  ;;  %v4965_v20 = vld [vmem:[%s7461_s24 + $0x78] sm:$0xff] }
0x1168   : > { %v4997_v21 = vld [vmem:[%s7461_s24 + $0x178] sm:$0xff] }
0x1169   : > { %v4126_v24 = vadd.f32 1e-05, %v4124_v23  ;;  %7215 = vrsqrt.f32 %v4127_v22  ;;  %v4980_v22 = vld [vmem:[%s7461_s24 + $0xf0] sm:$0xff] }
0x116a   : > { %v5012_v23 = vld [vmem:[%s7461_s24 + $0x1f0] sm:$0xff] }
0x116b   : > { %7217 = vrsqrt.f32 %v4126_v24  ;;  %v4964_v24 = vld [vmem:[%s7461_s24 + $0x70] sm:$0xff] }
0x1176   : > { %v7216_v25 = vpop.eup %7215 }
0x1177   : > { %v4131_v29 = vmul.f32 %v7216_v25, %v4115_v60  ;;  %v4173_v60 = vld [vmem:[%s7446_s26 + $0xc8] sm:$0xff]  ;;  %v4996_v25 = vld [vmem:[%s7461_s24 + $0x170] sm:$0xff] }
0x1178   : > { %v7218_v26 = vpop.eup %7217 }
0x1179   : > { %v4130_v27 = vmul.f32 %v7218_v26, %v4114_v1  ;;  %v4139_v35 = vmul.f32 %v6311_v28, %v4131_v29  ;;  %v4172_v1 = vld [vmem:[%s7446_s26 + $0xc0] sm:$0xff]  ;;  %v5011_v26 = vld [vmem:[%s7461_s24 + $0x1e8] sm:$0xff] }
0x117a   : > { %v4978_v29 = vld [vmem:[%s7461_s24 + $0xe0] sm:$0xff] }
0x117b   : > { %v4138_v30 = vmul.f32 %v6311_v28, %v4130_v27  ;;  %v8196_v40 = vadd.f32 %v6312_v31, %v4139_v35  ;;  %v4963_v27 = vld [vmem:[%s7461_s24 + $0x68] sm:$0xff]  ;;  %v5009_v35 = vld [vmem:[%s7461_s24 + $0x1d8] sm:$0xff] }
0x117c   : > { %v4995_v28 = vld [vmem:[%s7461_s24 + $0x168] sm:$0xff] }
0x117d   : > { %v8184_v32 = vadd.f32 %v6312_v31, %v4138_v30  ;;  %v5010_v30 = vld [vmem:[%s7461_s24 + $0x1e0] sm:$0xff] }
0x117e   : > { %v4962_v31 = vld [vmem:[%s7461_s24 + $0x60] sm:$0xff] }
0x117f   : > { %6313 = vmatmul.mubr.msk.f32.vlgmr.msra.gmra.mxu0 %vm1421_vm1, %v8184_v32  ;;  %6315 = vmatmul.mubr.msk.f32.vlgmr.msra.gmra.mxu1 %vm1421_vm1, %v8184_v32 }
0x1180   : > { %4481 = vmatpush1.msra.mxu0 %v4200_v33  ;;  %4558 = vmatpush1.msra.mxu1 %v4202_v34  ;;  %v4994_v33 = vld [vmem:[%s7461_s24 + $0x160] sm:$0xff]  ;;  %v4977_v34 = vld [vmem:[%s7461_s24 + $0xd8] sm:$0xff] }
0x1181   : > { %4482 = vmatprep.subr.mxu0 %v4185_v36  ;;  %4559 = vmatprep.subr.mxu1 %v4187_v37  ;;  %v4961_v36 = vld [vmem:[%s7461_s24 + $0x58] sm:$0xff] }
0x1182   : > { %4372 = vmatprep.mubr.f32.mxu0 %v7259_v63  ;;  %4449 = vmatprep.mubr.f32.mxu1 %v7259_v63  ;;  %v4993_v37 = vld [vmem:[%s7461_s24 + $0x158] sm:$0xff] }
0x1183   : > { %4483 = vmatpush1.msra.mxu0 %v4184_v38  ;;  %4560 = vmatpush1.msra.mxu1 %v4186_v39  ;;  %v4976_v38 = vld [vmem:[%s7461_s24 + $0xd0] sm:$0xff] }
0x1184   : > { %6314 = vmatmul.mubr.msk.f32.gmra.mxu0 %vm1421_vm1, %v8196_v40  ;;  %6316 = vmatmul.mubr.msk.f32.gmra.mxu1 %vm1421_vm1, %v8196_v40  ;;  %v5008_v39 = vld [vmem:[%s7461_s24 + $0x1d0] sm:$0xff] }
0x1185   : > { %4484 = vmatprep.subr.mxu0 %v4169_v41  ;;  %4561 = vmatprep.subr.mxu1 %v4171_v42  ;;  %v4960_v41 = vld [vmem:[%s7461_s24 + $0x50] sm:$0xff] }
0x1186   : > { %4485 = vmatpush1.msra.mxu0 %v4168_v43  ;;  %4562 = vmatpush1.msra.mxu1 %v4170_v44  ;;  %v4992_v42 = vld [vmem:[%s7461_s24 + $0x150] sm:$0xff]  ;;  %v4975_v43 = vld [vmem:[%s7461_s24 + $0xc8] sm:$0xff] }
0x1187   : > { %4486 = vmatprep.subr.mxu0 %v4153_v45  ;;  %4563 = vmatprep.subr.mxu1 %v4155_v46  ;;  %v5007_v44 = vld [vmem:[%s7461_s24 + $0x1c8] sm:$0xff] }
0x1188   : > { %4487 = vmatpush1.msra.mxu0 %v4152_v47  ;;  %4520 = vmatprep.mubr.f32.mxu0 %v7259_v63  ;;  %v4959_v45 = vld [vmem:[%s7461_s24 + $0x48] sm:$0xff]  ;;  %v4974_v47 = vld [vmem:[%s7461_s24 + $0xc0] sm:$0xff] }
0x1189   : > { %4564 = vmatpush1.msra.mxu1 %v4154_v48  ;;  %4597 = vmatprep.mubr.f32.mxu1 %v7259_v63  ;;  %v4991_v46 = vld [vmem:[%s7461_s24 + $0x148] sm:$0xff]  ;;  %v5006_v48 = vld [vmem:[%s7461_s24 + $0x1c0] sm:$0xff] }
0x118a   : > { %6317 = vmatmul.mubr.msk.f32.vlgmr.msra.gmra.mxu0 %vm1421_vm1, %v8184_v32  ;;  %6319 = vmatmul.mubr.msk.f32.vlgmr.msra.gmra.mxu1 %vm1421_vm1, %v8184_v32 }
0x118b   : > { %4634 = vmatprep.subr.mxu0 %v4205_v49  ;;  %4711 = vmatprep.subr.mxu1 %v4207_v50  ;;  %v4958_v49 = vld [vmem:[%s7461_s24 + $0x40] sm:$0xff] }
0x118c   : > { %4635 = vmatpush1.msra.mxu0 %v4204_v51  ;;  %4712 = vmatpush1.msra.mxu1 %v4206_v52  ;;  %v4990_v50 = vld [vmem:[%s7461_s24 + $0x140] sm:$0xff]  ;;  %v4973_v51 = vld [vmem:[%s7461_s24 + $0xb8] sm:$0xff] }
0x118d   : > { %4636 = vmatprep.subr.mxu0 %v4189_v53  ;;  %4713 = vmatprep.subr.mxu1 %v4191_v54  ;;  %v5005_v52 = vld [vmem:[%s7461_s24 + $0x1b8] sm:$0xff] }
0x118e   : > { %4526 = vmatprep.mubr.f32.mxu0 %v7259_v63  ;;  %4603 = vmatprep.mubr.f32.mxu1 %v7259_v63  ;;  %v4957_v53 = vld [vmem:[%s7461_s24 + $0x38] sm:$0xff] }
0x118f   : > { %4637 = vmatpush1.msra.mxu0 %v4188_v55  ;;  %4714 = vmatpush1.msra.mxu1 %v4190_v57  ;;  %v4989_v54 = vld [vmem:[%s7461_s24 + $0x138] sm:$0xff]  ;;  %v4972_v55 = vld [vmem:[%s7461_s24 + $0xb0] sm:$0xff] }
0x1190   : > { %6318 = vmatmul.mubr.msk.f32.gmra.mxu0 %vm1421_vm1, %v8196_v40  ;;  %6320 = vmatmul.mubr.msk.f32.gmra.mxu1 %vm1421_vm1, %v8196_v40  ;;  %v5004_v57 = vld [vmem:[%s7461_s24 + $0x1b0] sm:$0xff] }
0x1191   : > { %4638 = vmatprep.subr.mxu0 %v4173_v60  ;;  %4715 = vmatprep.subr.mxu1 %v4175_v2  ;;  %v4956_v60 = vld [vmem:[%s7461_s24 + $0x30] sm:$0xff] }
0x1192   : > { %4639 = vmatpush1.msra.mxu0 %v4172_v1  ;;  %4716 = vmatpush1.msra.mxu1 %v4174_v62  ;;  %v4988_v2 = vld [vmem:[%s7461_s24 + $0x130] sm:$0xff]  ;;  %v4971_v1 = vld [vmem:[%s7461_s24 + $0xa8] sm:$0xff] }
0x1193   : > { %4640 = vmatprep.subr.mxu0 %v4157_v3  ;;  %4717 = vmatprep.subr.mxu1 %v4159_v61  ;;  %v5003_v62 = vld [vmem:[%s7461_s24 + $0x1a8] sm:$0xff] }
0x1194   : > { %4641 = vmatpush1.msra.mxu0 %v4156_v4  ;;  %4674 = vmatprep.mubr.f32.mxu0 %v7259_v63  ;;  %v4955_v3 = vld [vmem:[%s7461_s24 + $0x28] sm:$0xff]  ;;  %v4970_v4 = vld [vmem:[%s7461_s24 + $0xa0] sm:$0xff] }
0x1195   : > { %4718 = vmatpush1.msra.mxu1 %v4158_v5  ;;  %4751 = vmatprep.mubr.f32.mxu1 %v7259_v63  ;;  %v4987_v61 = vld [vmem:[%s7461_s24 + $0x128] sm:$0xff]  ;;  %v5002_v5 = vld [vmem:[%s7461_s24 + $0x1a0] sm:$0xff] }
0x1196   : > { %6321 = vmatmul.mubr.msk.f32.vlgmr.msra.gmra.mxu0 %vm1421_vm1, %v8184_v32  ;;  %6323 = vmatmul.mubr.msk.f32.vlgmr.msra.gmra.mxu1 %vm1421_vm1, %v8184_v32 }
0x1197   : > { %4788 = vmatprep.subr.mxu0 %v4209_v6  ;;  %4865 = vmatprep.subr.mxu1 %v4211_v7  ;;  %v4954_v6 = vld [vmem:[%s7461_s24 + $0x20] sm:$0xff] }
0x1198   : > { %4789 = vmatpush1.msra.mxu0 %v4208_v8  ;;  %4866 = vmatpush1.msra.mxu1 %v4210_v56  ;;  %v4986_v7 = vld [vmem:[%s7461_s24 + $0x120] sm:$0xff]  ;;  %v4969_v8 = vld [vmem:[%s7461_s24 + $0x98] sm:$0xff] }
0x1199   : > { %4790 = vmatprep.subr.mxu0 %v4193_v58  ;;  %4867 = vmatprep.subr.mxu1 %v4195_v59  ;;  %v5001_v56 = vld [vmem:[%s7461_s24 + $0x198] sm:$0xff] }
0x119a   : > { %4680 = vmatprep.mubr.f32.mxu0 %v7259_v63  ;;  %4757 = vmatprep.mubr.f32.mxu1 %v7259_v63  ;;  %v4953_v58 = vld [vmem:[%s7461_s24 + $0x18] sm:$0xff] }
0x119b   : > { %4791 = vmatpush1.msra.mxu0 %v4192_v0  ;;  %4868 = vmatpush1.msra.mxu1 %v4194_v9  ;;  %v4985_v59 = vld [vmem:[%s7461_s24 + $0x118] sm:$0xff]  ;;  %v4968_v0 = vld [vmem:[%s7461_s24 + $0x90] sm:$0xff] }
0x119c   : > { %6322 = vmatmul.mubr.msk.f32.gmra.mxu0 %vm1421_vm1, %v8196_v40  ;;  %6324 = vmatmul.mubr.msk.f32.gmra.mxu1 %vm1421_vm1, %v8196_v40  ;;  %v5000_v9 = vld [vmem:[%s7461_s24 + $0x190] sm:$0xff] }
0x119d   : > { %4792 = vmatprep.subr.mxu0 %v4177_v10  ;;  %4869 = vmatprep.subr.mxu1 %v4179_v11  ;;  %v4952_v10 = vld [vmem:[%s7461_s24 + $0x10] sm:$0xff] }
0x119e   : > { %4793 = vmatpush1.msra.mxu0 %v4176_v12  ;;  %4870 = vmatpush1.msra.mxu1 %v4178_v13  ;;  %v4984_v11 = vld [vmem:[%s7461_s24 + $0x110] sm:$0xff]  ;;  %v4967_v12 = vld [vmem:[%s7461_s24 + $0x88] sm:$0xff] }
0x119f   : > { %4794 = vmatprep.subr.mxu0 %v4161_v14  ;;  %4871 = vmatprep.subr.mxu1 %v4163_v15  ;;  %v4999_v13 = vld [vmem:[%s7461_s24 + $0x188] sm:$0xff] }
0x11a0   : > { %4795 = vmatpush1.msra.mxu0 %v4160_v16  ;;  %4828 = vmatprep.mubr.f32.mxu0 %v7259_v63  ;;  %v4951_v14 = vld [vmem:[%s7461_s24 + $0x8] sm:$0xff]  ;;  %v4966_v16 = vld [vmem:[%s7461_s24 + $0x80] sm:$0xff] }
0x11a1   : > { %4872 = vmatpush1.msra.mxu1 %v4162_v17  ;;  %4905 = vmatprep.mubr.f32.mxu1 %v7259_v63  ;;  %v4983_v15 = vld [vmem:[%s7461_s24 + $0x108] sm:$0xff]  ;;  %v4998_v17 = vld [vmem:[%s7461_s24 + $0x180] sm:$0xff] }
0x11a2   : > { %6325 = vmatmul.mubr.msk.f32.vlgmr.msra.gmra.mxu0 %vm1421_vm1, %v8184_v32  ;;  %6327 = vmatmul.mubr.msk.f32.vlgmr.msra.gmra.mxu1 %vm1421_vm1, %v8184_v32 }
0x11a3   : > { %4834 = vmatprep.mubr.f32.mxu0 %v7259_v63  ;;  %4911 = vmatprep.mubr.f32.mxu1 %v7259_v63  ;;  %v4979_v63 = vld [vmem:[%s7461_s24 + $0xe8] sm:$0xff] }
0x11a4   : > { %6612 = vmatprep.subr.mxu0 %v4981_v18  ;;  %6650 = vmatprep.subr.mxu1 %v5013_v19  ;;  %v4950_v18 = vld [vmem:[%s7461_s24] sm:$0xff] }
0x11a5   : > { %6613 = vmatpush3.msra.mxu0 %v4965_v20  ;;  %6651 = vmatpush3.msra.mxu1 %v4997_v21  ;;  %v4982_v19 = vld [vmem:[%s7461_s24 + $0x100] sm:$0xff]  ;;  %v5045_v20 = vld [vmem:[%s7461_s24 + $0x2f8] sm:$0xff] }
0x11a6   : > { %6326 = vmatmul.mubr.msk.f32.gmra.mxu0 %vm1421_vm1, %v8196_v40  ;;  %6328 = vmatmul.mubr.msk.f32.gmra.mxu1 %vm1421_vm1, %v8196_v40  ;;  %v5077_v21 = vld [vmem:[%s7461_s24 + $0x3f8] sm:$0xff] }
0x11a7   : > { %6614 = vmatprep.subr.mxu0 %v4980_v22  ;;  %6652 = vmatprep.subr.mxu1 %v5012_v23  ;;  %v4216_v22 = vlaneseq }
0x11a8   : > { %6615 = vmatpush3.msra.mxu0 %v4964_v24  ;;  %6653 = vmatpush3.msra.mxu1 %v4996_v25 }
0x11a9   : > { %6616 = vmatprep.subr.mxu0 %v4979_v63  ;;  %6654 = vmatprep.subr.mxu1 %v5011_v26  ;;  %v8346_v23 = vshrl.u32 %v4216_v22, 7  ;;  %v8351_v63 = vld [vmem:[%s7451_s29 + $0x8] sm:$0xff]  ;;  %v5026_v22 = vld [vmem:[%s7461_s24 + $0x260] sm:$0xff] }
0x11aa   : > { %6617 = vmatpush3.msra.mxu0 %v4963_v27  ;;  %6655 = vmatpush3.msra.mxu1 %v4995_v28 }
0x11ab   : > { %6618 = vmatprep.subr.mxu0 %v4978_v29  ;;  %6656 = vmatprep.subr.mxu1 %v5010_v30  ;;  %v4234_v24 = vsub.s32 4, %v8346_v23  ;;  %v4242_v25 = vsub.s32 6, %v8346_v23  ;;  %v4218_v28 = vsub.s32 0, %v8346_v23  ;;  %v4226_v29 = vsub.s32 2, %v8346_v23  ;;  %v8366_v30 = vld [vmem:[%s7451_s29] sm:$0xff] }
0x11ac   : > { %6619 = vmatpush3.msra.mxu0 %v4962_v31  ;;  %6657 = vmatpush3.msra.mxu1 %v4994_v33  ;;  %v4222_v31 = vsub.s32 1, %v8346_v23  ;;  %v4230_v33 = vsub.s32 3, %v8346_v23 }
0x11ad   : > { %6620 = vmatprep.subr.mxu0 %v4977_v34  ;;  %6658 = vmatprep.subr.mxu1 %v5009_v35  ;;  %v8356_v26 = vrot.slane %v8351_v63, %v4234_v24  ;;  %v8361_v27 = vrot.slane %v8351_v63, %v4242_v25  ;;  %v4219_v34 = vrot.slane %v8366_v30, %v4218_v28 }
0x11ae   : > { %6621 = vmatpush3.msra.mxu0 %v4961_v36  ;;  %6659 = vmatpush3.msra.mxu1 %v4993_v37  ;;  %v4227_v35 = vrot.slane %v8366_v30, %v4226_v29  ;;  %v4223_v36 = vrot.slane %v8366_v30, %v4222_v31  ;;  %v4231_v37 = vrot.slane %v8366_v30, %v4230_v33 }
0x11af   : > { %6622 = vmatprep.subr.mxu0 %v4976_v38  ;;  %6660 = vmatprep.subr.mxu1 %v5008_v39 }
0x11b0   : > { %6623 = vmatpush3.msra.mxu0 %v4960_v41  ;;  %6661 = vmatpush3.msra.mxu1 %v4992_v42 }
0x11b1   : > { %6624 = vmatprep.subr.mxu0 %v4975_v43  ;;  %6662 = vmatprep.subr.mxu1 %v5007_v44 }
0x11b2   : > { %6625 = vmatpush3.msra.mxu0 %v4959_v45  ;;  %6663 = vmatpush3.msra.mxu1 %v4991_v46 }
0x11b3   : > { %6626 = vmatprep.subr.mxu0 %v4974_v47  ;;  %6664 = vmatprep.subr.mxu1 %v5006_v48 }
0x11b4   : > { %6627 = vmatpush3.msra.mxu0 %v4958_v49  ;;  %6665 = vmatpush3.msra.mxu1 %v4990_v50 }
0x11b5   : > { %6628 = vmatprep.subr.mxu0 %v4973_v51  ;;  %6666 = vmatprep.subr.mxu1 %v5005_v52 }
0x11b6   : > { %6629 = vmatpush3.msra.mxu0 %v4957_v53  ;;  %6667 = vmatpush3.msra.mxu1 %v4989_v54  ;;  %v5029_v53 = vld [vmem:[%s7461_s24 + $0x278] sm:$0xff] }
0x11b7   : > { %6630 = vmatprep.subr.mxu0 %v4972_v55  ;;  %6668 = vmatprep.subr.mxu1 %v5004_v57  ;;  %v5061_v54 = vld [vmem:[%s7461_s24 + $0x378] sm:$0xff]  ;;  %v4238_v55 = vsub.s32 5, %v8346_v23  ;;  %v4246_v57 = vsub.s32 7, %v8346_v23  ;;  %v5172_v23 = vld [vmem:[%s7461_s24 + $0x6f0] sm:$0xff] }
0x11b8   : > { %6631 = vmatpush3.msra.mxu0 %v4956_v60  ;;  %6669 = vmatpush3.msra.mxu1 %v4988_v2 }
0x11b9   : > { %6632 = vmatprep.subr.mxu0 %v4971_v1  ;;  %6670 = vmatprep.subr.mxu1 %v5003_v62  ;;  %v5044_v62 = vld [vmem:[%s7461_s24 + $0x2f0] sm:$0xff] }
0x11ba   : > { %6633 = vmatpush3.msra.mxu0 %v4955_v3  ;;  %6671 = vmatpush3.msra.mxu1 %v4987_v61  ;;  %v5076_v3 = vld [vmem:[%s7461_s24 + $0x3f0] sm:$0xff] }
0x11bb   : > { %6634 = vmatprep.subr.mxu0 %v4970_v4  ;;  %6672 = vmatprep.subr.mxu1 %v5002_v5 }
0x11bc   : > { %6635 = vmatpush3.msra.mxu0 %v4954_v6  ;;  %6673 = vmatpush3.msra.mxu1 %v4986_v7  ;;  %v5028_v6 = vld [vmem:[%s7461_s24 + $0x270] sm:$0xff] }
0x11bd   : > { %6636 = vmatprep.subr.mxu0 %v4969_v8  ;;  %6674 = vmatprep.subr.mxu1 %v5001_v56  ;;  %v5060_v7 = vld [vmem:[%s7461_s24 + $0x370] sm:$0xff] }
0x11be   : > { %6637 = vmatpush3.msra.mxu0 %v4953_v58  ;;  %6675 = vmatpush3.msra.mxu1 %v4985_v59  ;;  %v8393_v58 = vrot.slane %v8366_v30, %v4238_v55  ;;  %v8398_v59 = vrot.slane %v8366_v30, %v4246_v57 }
0x11bf   : > { %6638 = vmatprep.subr.mxu0 %v4968_v0  ;;  %6676 = vmatprep.subr.mxu1 %v5000_v9  ;;  %v5043_v0 = vld [vmem:[%s7461_s24 + $0x2e8] sm:$0xff] }
0x11c0   : > { %6639 = vmatpush3.msra.mxu0 %v4952_v10  ;;  %6677 = vmatpush3.msra.mxu1 %v4984_v11  ;;  %v5075_v9 = vld [vmem:[%s7461_s24 + $0x3e8] sm:$0xff] }
0x11c1   : > { %6640 = vmatprep.subr.mxu0 %v4967_v12  ;;  %6678 = vmatprep.subr.mxu1 %v4999_v13 }
0x11c2   : > { %6641 = vmatpush3.msra.mxu0 %v4951_v14  ;;  %6679 = vmatpush3.msra.mxu1 %v4983_v15  ;;  %v5027_v14 = vld [vmem:[%s7461_s24 + $0x268] sm:$0xff] }
0x11c3   : > { %6642 = vmatprep.subr.mxu0 %v4966_v16  ;;  %6680 = vmatprep.subr.mxu1 %v4998_v17  ;;  %v5059_v15 = vld [vmem:[%s7461_s24 + $0x368] sm:$0xff] }
0x11c4   : > { %6643 = vmatpush3.msra.mxu0 %v4950_v18  ;;  %6681 = vmatpush3.msra.mxu1 %v4982_v19  ;;  %v5042_v18 = vld [vmem:[%s7461_s24 + $0x2e0] sm:$0xff] }
0x11c5   : > { %6688 = vmatprep.subr.mxu0 %v5045_v20  ;;  %6726 = vmatprep.subr.mxu1 %v5077_v21  ;;  %v5074_v19 = vld [vmem:[%s7461_s24 + $0x3e0] sm:$0xff] }
0x123f   : > { %v4368_v38 = vpop.f32.mrf.mxu0  ;;  %v4445_v39 = vpop.f32.mrf.mxu1 }
0x1240   : > { %v4369_v41 = vadd.f32 %v4368_v38, %v4219_v34  ;;  %v4446_v42 = vadd.f32 %v4445_v39, %v4227_v35  ;;  %v5073_v38 = vld [vmem:[%s7461_s24 + $0x3d8] sm:$0xff] }
0x1241   : > { %v4370_v43 = vpop.f32.mrf.mxu0  ;;  %v4447_v44 = vpop.f32.mrf.mxu1  ;;  %v5025_v39 = vld [vmem:[%s7461_s24 + $0x258] sm:$0xff] }
0x1242   : > { %v4371_v45 = vadd.f32 %v4370_v43, %v4223_v36  ;;  %v4448_v46 = vadd.f32 %v4447_v44, %v4231_v37  ;;  %v4918_v51 = vmax.f32 %v4369_v41, 0.0  ;;  %v4920_v52 = vmax.f32 %v4446_v42, 0.0  ;;  %v5057_v41 = vld [vmem:[%s7461_s24 + $0x358] sm:$0xff]  ;;  %v5040_v42 = vld [vmem:[%s7461_s24 + $0x2d0] sm:$0xff] }
0x1243   : > { %v5072_v43 = vld [vmem:[%s7461_s24 + $0x3d0] sm:$0xff] }
0x1244   : > { %v4919_v47 = vmax.f32 %v4371_v45, 0.0  ;;  %v4921_v48 = vmax.f32 %v4448_v46, 0.0  ;;  %v4374_v49 = vpop.f32.mrf.mxu0  ;;  %v4451_v50 = vpop.f32.mrf.mxu1  ;;  %v5024_v44 = vld [vmem:[%s7461_s24 + $0x250] sm:$0xff]  ;;  %v5039_v46 = vld [vmem:[%s7461_s24 + $0x2c8] sm:$0xff] }
0x1245   : > { %v4375_v60 = vadd.f32 %v4374_v49, %v4219_v34  ;;  %v4452_v61 = vadd.f32 %v4451_v50, %v4227_v35  ;;  %v5058_v34 = vld [vmem:[%s7461_s24 + $0x360] sm:$0xff]  ;;  %v5041_v35 = vld [vmem:[%s7461_s24 + $0x2d8] sm:$0xff]  ;;  %v5056_v45 = vld [vmem:[%s7461_s24 + $0x350] sm:$0xff] }
0x1246   : > { %v4376_v2 = vpop.f32.mrf.mxu0  ;;  %v4453_v1 = vpop.f32.mrf.mxu1  ;;  %5277 = vmatprep.mubr.f32.mxu0 %v4919_v47  ;;  %5352 = vmatprep.mubr.f32.mxu1 %v4921_v48  ;;  %v5071_v47 = vld [vmem:[%s7461_s24 + $0x3c8] sm:$0xff]  ;;  %v5038_v50 = vld [vmem:[%s7461_s24 + $0x2c0] sm:$0xff] }
0x1247   : > { %v4377_v4 = vadd.f32 %v4376_v2, %v4223_v36  ;;  %v4454_v5 = vadd.f32 %v4453_v1, %v4231_v37  ;;  %5278 = vmatmul.mubr.f32.vlgmr.msra.gmra.mxu0 %v4918_v51  ;;  %5353 = vmatmul.mubr.f32.vlgmr.msra.gmra.mxu1 %v4920_v52  ;;  %v4934_v12 = vmax.f32 %v4375_v60, 0.0  ;;  %v4936_v13 = vmax.f32 %v4452_v61, 0.0  ;;  %v5023_v48 = vld [vmem:[%s7461_s24 + $0x248] sm:$0xff]  ;;  %v5070_v51 = vld [vmem:[%s7461_s24 + $0x3c0] sm:$0xff]  ;;  %v5069_v60 = vld [vmem:[%s7461_s24 + $0x3b8] sm:$0xff] }
0x1248   : > { %6689 = vmatpush3.msra.mxu0 %v5029_v53  ;;  %6727 = vmatpush3.msra.mxu1 %v5061_v54  ;;  %v5055_v49 = vld [vmem:[%s7461_s24 + $0x348] sm:$0xff]  ;;  %v5022_v52 = vld [vmem:[%s7461_s24 + $0x240] sm:$0xff]  ;;  %v5037_v54 = vld [vmem:[%s7461_s24 + $0x2b8] sm:$0xff] }
0x1249   : > { %v4935_v8 = vmax.f32 %v4377_v4, 0.0  ;;  %v4937_v56 = vmax.f32 %v4454_v5, 0.0  ;;  %6690 = vmatprep.subr.mxu0 %v5044_v62  ;;  %6728 = vmatprep.subr.mxu1 %v5076_v3  ;;  %v5054_v53 = vld [vmem:[%s7461_s24 + $0x340] sm:$0xff]  ;;  %v5021_v2 = vld [vmem:[%s7461_s24 + $0x238] sm:$0xff]  ;;  %v5036_v62 = vld [vmem:[%s7461_s24 + $0x2b0] sm:$0xff] }
0x124a   : > { %v8402_v10 = vpop.f32.mrf.mxu0  ;;  %v8404_v11 = vpop.f32.mrf.mxu1  ;;  %6691 = vmatpush3.msra.mxu0 %v5028_v6  ;;  %6729 = vmatpush3.msra.mxu1 %v5060_v7  ;;  %v5053_v1 = vld [vmem:[%s7461_s24 + $0x338] sm:$0xff]  ;;  %v5068_v3 = vld [vmem:[%s7461_s24 + $0x3b0] sm:$0xff]  ;;  %v5035_v5 = vld [vmem:[%s7461_s24 + $0x2a8] sm:$0xff] }
0x124b   : > { %5282 = vmatprep.mubr.f32.mxu0 %v4935_v8  ;;  %5357 = vmatprep.mubr.f32.mxu1 %v4937_v56  ;;  %v5020_v61 = vld [vmem:[%s7461_s24 + $0x230] sm:$0xff]  ;;  %v5067_v6 = vld [vmem:[%s7461_s24 + $0x3a8] sm:$0xff] }
0x124c   : > { %v4524_v16 = vpop.f32.mrf.mxu0  ;;  %v4601_v17 = vpop.f32.mrf.mxu1  ;;  %6692 = vmatprep.subr.mxu0 %v5043_v0  ;;  %6730 = vmatprep.subr.mxu1 %v5075_v9  ;;  %v5052_v4 = vld [vmem:[%s7461_s24 + $0x330] sm:$0xff]  ;;  %v5019_v7 = vld [vmem:[%s7461_s24 + $0x228] sm:$0xff]  ;;  %v5034_v0 = vld [vmem:[%s7461_s24 + $0x2a0] sm:$0xff] }
0x124d   : > { %v4525_v20 = vadd.f32 %v4524_v16, %v8393_v58  ;;  %v4602_v21 = vadd.f32 %v4601_v17, %v8398_v59  ;;  %5283 = vmatmul.mubr.f32.gmra.mxu0 %v4934_v12  ;;  %5358 = vmatmul.mubr.f32.gmra.mxu1 %v4936_v13  ;;  %v5051_v8 = vld [vmem:[%s7461_s24 + $0x328] sm:$0xff]  ;;  %v5066_v9 = vld [vmem:[%s7461_s24 + $0x3a0] sm:$0xff]  ;;  %v5065_v16 = vld [vmem:[%s7461_s24 + $0x398] sm:$0xff]  ;;  %v4235_v17 = vrot.slane %v8366_v30, %v4234_v24 }
0x124e   : > { %6693 = vmatpush3.msra.mxu0 %v5027_v14  ;;  %6731 = vmatpush3.msra.mxu1 %v5059_v15  ;;  %v5018_v13 = vld [vmem:[%s7461_s24 + $0x220] sm:$0xff]  ;;  %v5033_v15 = vld [vmem:[%s7461_s24 + $0x298] sm:$0xff]  ;;  %v5016_v24 = vld [vmem:[%s7461_s24 + $0x210] sm:$0xff] }
0x124f   : > { %v4923_v36 = vmax.f32 %v4525_v20, 0.0  ;;  %v4925_v37 = vmax.f32 %v4602_v21, 0.0  ;;  %6694 = vmatprep.subr.mxu0 %v5042_v18  ;;  %6732 = vmatprep.subr.mxu1 %v5074_v19  ;;  %v5050_v14 = vld [vmem:[%s7461_s24 + $0x320] sm:$0xff]  ;;  %v4243_v18 = vrot.slane %v8366_v30, %v4242_v25  ;;  %v5017_v19 = vld [vmem:[%s7461_s24 + $0x218] sm:$0xff]  ;;  %v5048_v25 = vld [vmem:[%s7461_s24 + $0x310] sm:$0xff] }
0x1250   : > { %6695 = vmatpush3.msra.mxu0 %v5026_v22  ;;  %6733 = vmatpush3.msra.mxu1 %v5058_v34  ;;  %v8442_v56 = vpop.f32.mrf.mxu0  ;;  %v4605_v12 = vpop.f32.mrf.mxu1  ;;  %v5049_v20 = vld [vmem:[%s7461_s24 + $0x318] sm:$0xff]  ;;  %v5032_v22 = vld [vmem:[%s7461_s24 + $0x290] sm:$0xff]  ;;  %v5031_v30 = vld [vmem:[%s7461_s24 + $0x288] sm:$0xff] }
0x1251   : > { %6696 = vmatprep.subr.mxu0 %v5041_v35  ;;  %5427 = vmatprep.mubr.f32.mxu0 %v4923_v36  ;;  %v5064_v34 = vld [vmem:[%s7461_s24 + $0x390] sm:$0xff]  ;;  %v5063_v36 = vld [vmem:[%s7461_s24 + $0x388] sm:$0xff] }
0x1252   : > { %6734 = vmatprep.subr.mxu1 %v5073_v38  ;;  %5502 = vmatprep.mubr.f32.mxu1 %v4925_v37  ;;  %v4530_v21 = vpop.f32.mrf.mxu0  ;;  %v4607_v35 = vpop.f32.mrf.mxu1  ;;  %v4523_v37 = vadd.f32 %v8402_v10, %v4235_v17  ;;  %v4600_v38 = vadd.f32 %v8404_v11, %v4243_v18  ;;  %v5014_v11 = vld [vmem:[%s7461_s24 + $0x200] sm:$0xff] }
0x1253   : > { %6697 = vmatpush3.msra.mxu0 %v5025_v39  ;;  %6735 = vmatpush3.msra.mxu1 %v5057_v41  ;;  %v5015_v39 = vld [vmem:[%s7461_s24 + $0x208] sm:$0xff]  ;;  %v4608_v10 = vadd.f32 %v4607_v35, %v8398_v59  ;;  %v5141_v59 = vld [vmem:[%s7461_s24 + $0x5f8] sm:$0xff]  ;;  %v5136_v35 = vld [vmem:[%s7461_s24 + $0x5d0] sm:$0xff] }
0x1254   : > { %6698 = vmatprep.subr.mxu0 %v5040_v42  ;;  %6736 = vmatprep.subr.mxu1 %v5072_v43  ;;  %v5047_v41 = vld [vmem:[%s7461_s24 + $0x308] sm:$0xff]  ;;  %v5030_v43 = vld [vmem:[%s7461_s24 + $0x280] sm:$0xff] }
0x1255   : > { %6699 = vmatpush3.msra.mxu0 %v5024_v44  ;;  %6737 = vmatpush3.msra.mxu1 %v5056_v45  ;;  %v5062_v44 = vld [vmem:[%s7461_s24 + $0x380] sm:$0xff]  ;;  %v4531_v45 = vadd.f32 %v4530_v21, %v8393_v58  ;;  %v5109_v58 = vld [vmem:[%s7461_s24 + $0x4f8] sm:$0xff] }
0x1256   : > { %6700 = vmatprep.subr.mxu0 %v5039_v46  ;;  %6738 = vmatprep.subr.mxu1 %v5071_v47  ;;  %v8468_v42 = vpop.f32.mrf.mxu0  ;;  %v8474_v46 = vpop.f32.mrf.mxu1  ;;  %v5046_v47 = vld [vmem:[%s7461_s24 + $0x300] sm:$0xff]  ;;  %v5089_v21 = vld [vmem:[%s7461_s24 + $0x458] sm:$0xff] }
0x1257   : > { %6701 = vmatpush3.msra.mxu0 %v5023_v48  ;;  %6739 = vmatpush3.msra.mxu1 %v5055_v49  ;;  %v4922_v48 = vmax.f32 %v4523_v37, 0.0  ;;  %v4924_v49 = vmax.f32 %v4600_v38, 0.0  ;;  %v5087_v37 = vld [vmem:[%s7461_s24 + $0x448] sm:$0xff] }
0x1258   : > { %6702 = vmatprep.subr.mxu0 %v5038_v50  ;;  %6740 = vmatprep.subr.mxu1 %v5070_v51  ;;  %v8481_v50 = vrot.slane %v8351_v63, %v4222_v31  ;;  %v4678_v51 = vpop.f32.mrf.mxu0  ;;  %v4606_v31 = vadd.f32 %v4605_v12, %v4243_v18  ;;  %v5122_v18 = vld [vmem:[%s7461_s24 + $0x560] sm:$0xff]  ;;  %v5119_v38 = vld [vmem:[%s7461_s24 + $0x548] sm:$0xff] }
0x1259   : > { %6703 = vmatpush3.msra.mxu0 %v5022_v52  ;;  %6741 = vmatpush3.msra.mxu1 %v5054_v53  ;;  %v8488_v52 = vrot.slane %v8351_v63, %v4230_v33  ;;  %v4529_v53 = vadd.f32 %v8442_v56, %v4235_v17  ;;  %v5108_v33 = vld [vmem:[%s7461_s24 + $0x4f0] sm:$0xff]  ;;  %v5107_v56 = vld [vmem:[%s7461_s24 + $0x4e8] sm:$0xff]  ;;  %v5090_v17 = vld [vmem:[%s7461_s24 + $0x460] sm:$0xff] }
0x125a   : > { %6704 = vmatprep.subr.mxu0 %v5037_v54  ;;  %6742 = vmatprep.subr.mxu1 %v5069_v60  ;;  %v4939_v54 = vmax.f32 %v4531_v45, 0.0  ;;  %v4941_v60 = vmax.f32 %v4608_v10, 0.0  ;;  %v5101_v45 = vld [vmem:[%s7461_s24 + $0x4b8] sm:$0xff] }
0x125b   : > { %6705 = vmatpush3.msra.mxu0 %v5021_v2  ;;  %6743 = vmatpush3.msra.mxu1 %v5053_v1  ;;  %v4755_v2 = vpop.f32.mrf.mxu1  ;;  %v5093_v1 = vld [vmem:[%s7461_s24 + $0x478] sm:$0xff] }
0x125c   : > { %6706 = vmatprep.subr.mxu0 %v5036_v62  ;;  %6744 = vmatprep.subr.mxu1 %v5068_v3  ;;  %v5125_v62 = vld [vmem:[%s7461_s24 + $0x578] sm:$0xff]  ;;  %v5140_v3 = vld [vmem:[%s7461_s24 + $0x5f0] sm:$0xff] }
0x125d   : > { %6707 = vmatpush3.msra.mxu0 %v5020_v61  ;;  %6745 = vmatpush3.msra.mxu1 %v5052_v4  ;;  %v4679_v61 = vadd.f32 %v4678_v51, %v8481_v50  ;;  %v5092_v4 = vld [vmem:[%s7461_s24 + $0x470] sm:$0xff]  ;;  %v5133_v10 = vld [vmem:[%s7461_s24 + $0x5b8] sm:$0xff]  ;;  %v5099_v51 = vld [vmem:[%s7461_s24 + $0x4a8] sm:$0xff] }
0x125e   : > { %6708 = vmatprep.subr.mxu0 %v5035_v5  ;;  %6746 = vmatprep.subr.mxu1 %v5067_v6  ;;  %v5124_v5 = vld [vmem:[%s7461_s24 + $0x570] sm:$0xff]  ;;  %v4756_v6 = vadd.f32 %v4755_v2, %v8488_v52  ;;  %v5098_v2 = vld [vmem:[%s7461_s24 + $0x4a0] sm:$0xff] }
0x125f   : > { %6709 = vmatpush3.msra.mxu0 %v5019_v7  ;;  %6747 = vmatpush3.msra.mxu1 %v5051_v8  ;;  %v4938_v7 = vmax.f32 %v4529_v53, 0.0  ;;  %v4940_v8 = vmax.f32 %v4606_v31, 0.0  ;;  %v4927_v12 = vmax.f32 %v4679_v61, 0.0  ;;  %v5131_v53 = vld [vmem:[%s7461_s24 + $0x5a8] sm:$0xff]  ;;  %v5097_v61 = vld [vmem:[%s7461_s24 + $0x498] sm:$0xff] }
0x1260   : > { %6710 = vmatprep.subr.mxu0 %v5034_v0  ;;  %6748 = vmatprep.subr.mxu1 %v5066_v9  ;;  %v5139_v0 = vld [vmem:[%s7461_s24 + $0x5e8] sm:$0xff] }
0x1261   : > { %6711 = vmatpush3.msra.mxu0 %v5018_v13  ;;  %6749 = vmatpush3.msra.mxu1 %v5050_v14  ;;  %v5091_v9 = vld [vmem:[%s7461_s24 + $0x468] sm:$0xff]  ;;  %v4929_v14 = vmax.f32 %v4756_v6, 0.0  ;;  %v4259_v6 = vrot.slane %v8351_v63, %v4226_v29  ;;  %v5112_v29 = vld [vmem:[%s7461_s24 + $0x510] sm:$0xff] }
0x1262   : > { %6712 = vmatprep.subr.mxu0 %v5033_v15  ;;  %6750 = vmatprep.subr.mxu1 %v5065_v16  ;;  %v5123_v13 = vld [vmem:[%s7461_s24 + $0x568] sm:$0xff]  ;;  %v5106_v15 = vld [vmem:[%s7461_s24 + $0x4e0] sm:$0xff] }
0x1263   : > { %6713 = vmatpush3.msra.mxu0 %v5017_v19  ;;  %6751 = vmatpush3.msra.mxu1 %v5049_v20  ;;  %v5138_v16 = vld [vmem:[%s7461_s24 + $0x5e0] sm:$0xff]  ;;  %v5105_v19 = vld [vmem:[%s7461_s24 + $0x4d8] sm:$0xff]  ;;  %v5083_v31 = vld [vmem:[%s7461_s24 + $0x428] sm:$0xff] }
0x1264   : > { %6714 = vmatprep.subr.mxu0 %v5032_v22  ;;  %6752 = vmatprep.subr.mxu1 %v5064_v34  ;;  %v5137_v20 = vld [vmem:[%s7461_s24 + $0x5d8] sm:$0xff]  ;;  %v5104_v34 = vld [vmem:[%s7461_s24 + $0x4d0] sm:$0xff] }
0x1265   : > { %6715 = vmatpush3.msra.mxu0 %v5016_v24  ;;  %6753 = vmatpush3.msra.mxu1 %v5048_v25  ;;  %v5121_v22 = vld [vmem:[%s7461_s24 + $0x558] sm:$0xff]  ;;  %v5088_v24 = vld [vmem:[%s7461_s24 + $0x450] sm:$0xff] }
0x1266   : > { %6716 = vmatprep.subr.mxu0 %v5031_v30  ;;  %6754 = vmatprep.subr.mxu1 %v5063_v36  ;;  %v5120_v25 = vld [vmem:[%s7461_s24 + $0x550] sm:$0xff]  ;;  %v5103_v30 = vld [vmem:[%s7461_s24 + $0x4c8] sm:$0xff] }
0x1267   : > { %6717 = vmatpush3.msra.mxu0 %v5015_v39  ;;  %6755 = vmatpush3.msra.mxu1 %v5047_v41  ;;  %v5135_v36 = vld [vmem:[%s7461_s24 + $0x5c8] sm:$0xff]  ;;  %v5102_v39 = vld [vmem:[%s7461_s24 + $0x4c0] sm:$0xff] }
0x1268   : > { %6718 = vmatprep.subr.mxu0 %v5030_v43  ;;  %6756 = vmatprep.subr.mxu1 %v5062_v44  ;;  %v5134_v41 = vld [vmem:[%s7461_s24 + $0x5c0] sm:$0xff] }
0x1269   : > { %6719 = vmatpush3.msra.mxu0 %v5014_v11  ;;  %6757 = vmatpush3.msra.mxu1 %v5046_v47  ;;  %v5086_v43 = vld [vmem:[%s7461_s24 + $0x440] sm:$0xff]  ;;  %v5085_v11 = vld [vmem:[%s7461_s24 + $0x438] sm:$0xff] }
0x126a   : > { %5428 = vmatmul.mubr.f32.vlgmr.msra.gmra.mxu0 %v4922_v48  ;;  %5503 = vmatmul.mubr.f32.vlgmr.msra.gmra.mxu1 %v4924_v49  ;;  %v5118_v44 = vld [vmem:[%s7461_s24 + $0x540] sm:$0xff]  ;;  %v5117_v47 = vld [vmem:[%s7461_s24 + $0x538] sm:$0xff]  ;;  %v5100_v48 = vld [vmem:[%s7461_s24 + $0x4b0] sm:$0xff] }
0x126b   : > { %6764 = vmatprep.subr.mxu0 %v5109_v58  ;;  %6802 = vmatprep.subr.mxu1 %v5141_v59  ;;  %v5132_v49 = vld [vmem:[%s7461_s24 + $0x5b0] sm:$0xff] }
0x126c   : > { %5432 = vmatprep.mubr.f32.mxu0 %v4939_v54  ;;  %5507 = vmatprep.mubr.f32.mxu1 %v4941_v60  ;;  %v5084_v58 = vld [vmem:[%s7461_s24 + $0x430] sm:$0xff]  ;;  %v5115_v54 = vld [vmem:[%s7461_s24 + $0x528] sm:$0xff]  ;;  %v8535_v60 = vpop.f32.mrf.mxu0 }
0x126d   : > { %6765 = vmatpush3.msra.mxu0 %v5093_v1  ;;  %6803 = vmatpush3.msra.mxu1 %v5125_v62  ;;  %v5116_v59 = vld [vmem:[%s7461_s24 + $0x530] sm:$0xff]  ;;  %v5130_v1 = vld [vmem:[%s7461_s24 + $0x5a0] sm:$0xff]  ;;  %v4759_v62 = vpop.f32.mrf.mxu1 }
0x126e   : > { %6766 = vmatprep.subr.mxu0 %v5108_v33  ;;  %6804 = vmatprep.subr.mxu1 %v5140_v3  ;;  %v5082_v33 = vld [vmem:[%s7461_s24 + $0x420] sm:$0xff] }
0x126f   : > { %6767 = vmatpush3.msra.mxu0 %v5092_v4  ;;  %6805 = vmatpush3.msra.mxu1 %v5124_v5  ;;  %v5114_v3 = vld [vmem:[%s7461_s24 + $0x520] sm:$0xff]  ;;  %v5129_v4 = vld [vmem:[%s7461_s24 + $0x598] sm:$0xff]  ;;  %v4251_v5 = vrot.slane %v8351_v63, %v4218_v28  ;;  %v5080_v28 = vld [vmem:[%s7461_s24 + $0x410] sm:$0xff] }
0x1270   : > { %5433 = vmatmul.mubr.f32.gmra.mxu0 %v4938_v7  ;;  %5508 = vmatmul.mubr.f32.gmra.mxu1 %v4940_v8  ;;  %v5081_v7 = vld [vmem:[%s7461_s24 + $0x418] sm:$0xff] }
0x1271   : > { %6768 = vmatprep.subr.mxu0 %v5107_v56  ;;  %6806 = vmatprep.subr.mxu1 %v5139_v0  ;;  %v5113_v8 = vld [vmem:[%s7461_s24 + $0x518] sm:$0xff]  ;;  %v4684_v56 = vpop.f32.mrf.mxu0  ;;  %v5096_v0 = vld [vmem:[%s7461_s24 + $0x490] sm:$0xff] }
0x1272   : > { %6769 = vmatpush3.msra.mxu0 %v5091_v9  ;;  %5577 = vmatprep.mubr.f32.mxu0 %v4927_v12  ;;  %v5128_v9 = vld [vmem:[%s7461_s24 + $0x590] sm:$0xff]  ;;  %v4761_v12 = vpop.f32.mrf.mxu1 }
0x1273   : > { %6807 = vmatpush3.msra.mxu1 %v5123_v13  ;;  %5652 = vmatprep.mubr.f32.mxu1 %v4929_v14  ;;  %v5095_v13 = vld [vmem:[%s7461_s24 + $0x488] sm:$0xff] }
0x1274   : > { %6770 = vmatprep.subr.mxu0 %v5106_v15  ;;  %6808 = vmatprep.subr.mxu1 %v5138_v16  ;;  %v5127_v14 = vld [vmem:[%s7461_s24 + $0x588] sm:$0xff]  ;;  %v4677_v15 = vadd.f32 %v8468_v42, %v4251_v5  ;;  %v4754_v16 = vadd.f32 %v8474_v46, %v4259_v6  ;;  %v4762_v42 = vadd.f32 %v4761_v12, %v8488_v52  ;;  %v5078_v46 = vld [vmem:[%s7461_s24 + $0x400] sm:$0xff]  ;;  %v5205_v52 = vld [vmem:[%s7461_s24 + $0x7f8] sm:$0xff] }
0x1275   : > { %6771 = vmatpush3.msra.mxu0 %v5090_v17  ;;  %6809 = vmatpush3.msra.mxu1 %v5122_v18  ;;  %v5079_v17 = vld [vmem:[%s7461_s24 + $0x408] sm:$0xff] }
0x1276   : > { %6772 = vmatprep.subr.mxu0 %v5105_v19  ;;  %6810 = vmatprep.subr.mxu1 %v5137_v20  ;;  %v5111_v18 = vld [vmem:[%s7461_s24 + $0x508] sm:$0xff]  ;;  %v8561_v19 = vpop.f32.mrf.mxu0  ;;  %v5094_v20 = vld [vmem:[%s7461_s24 + $0x480] sm:$0xff] }
0x1277   : > { %6773 = vmatpush3.msra.mxu0 %v5089_v21  ;;  %6811 = vmatpush3.msra.mxu1 %v5121_v22  ;;  %v5126_v21 = vld [vmem:[%s7461_s24 + $0x580] sm:$0xff]  ;;  %v4685_v22 = vadd.f32 %v4684_v56, %v8481_v50  ;;  %v5173_v50 = vld [vmem:[%s7461_s24 + $0x6f8] sm:$0xff]  ;;  %v5167_v56 = vld [vmem:[%s7461_s24 + $0x6c8] sm:$0xff] }
0x1278   : > { %6774 = vmatprep.subr.mxu0 %v5104_v34  ;;  %6812 = vmatprep.subr.mxu1 %v5136_v35  ;;  %v8567_v34 = vpop.f32.mrf.mxu1  ;;  %v5110_v35 = vld [vmem:[%s7461_s24 + $0x500] sm:$0xff]  ;;  %v5183_v12 = vld [vmem:[%s7461_s24 + $0x748] sm:$0xff] }
0x1279   : > { %6775 = vmatpush3.msra.mxu0 %v5088_v24  ;;  %6813 = vmatpush3.msra.mxu1 %v5120_v25  ;;  %v4926_v24 = vmax.f32 %v4677_v15, 0.0  ;;  %v4928_v25 = vmax.f32 %v4754_v16, 0.0  ;;  %v5165_v15 = vld [vmem:[%s7461_s24 + $0x6b8] sm:$0xff] }
0x127a   : > { %6776 = vmatprep.subr.mxu0 %v5103_v30  ;;  %6814 = vmatprep.subr.mxu1 %v5135_v36  ;;  %v8574_v30 = vrot.slane %v8351_v63, %v4238_v55  ;;  %v4832_v36 = vpop.f32.mrf.mxu0  ;;  %v4760_v55 = vadd.f32 %v4759_v62, %v4259_v6  ;;  %v5186_v62 = vld [vmem:[%s7461_s24 + $0x760] sm:$0xff]  ;;  %v5200_v6 = vld [vmem:[%s7461_s24 + $0x7d0] sm:$0xff]  ;;  %v5197_v16 = vld [vmem:[%s7461_s24 + $0x7b8] sm:$0xff] }
0x127b   : > { %6777 = vmatpush3.msra.mxu0 %v5087_v37  ;;  %6815 = vmatpush3.msra.mxu1 %v5119_v38  ;;  %v8581_v37 = vrot.slane %v8351_v63, %v4246_v57  ;;  %v4683_v38 = vadd.f32 %v8535_v60, %v4251_v5  ;;  %v5204_v63 = vld [vmem:[%s7461_s24 + $0x7f0] sm:$0xff]  ;;  %v5170_v60 = vld [vmem:[%s7461_s24 + $0x6e0] sm:$0xff] }
0x127c   : > { %6778 = vmatprep.subr.mxu0 %v5102_v39  ;;  %6816 = vmatprep.subr.mxu1 %v5134_v41  ;;  %v4943_v39 = vmax.f32 %v4685_v22, 0.0  ;;  %v4945_v41 = vmax.f32 %v4762_v42, 0.0  ;;  %v4833_v57 = vadd.f32 %v4832_v36, %v8574_v30  ;;  %v5168_v5 = vld [vmem:[%s7461_s24 + $0x6d0] sm:$0xff]  ;;  %v4836_v36 = vpop.f32.mrf.mxu0 }
0x127d   : > { %6779 = vmatpush3.msra.mxu0 %v5086_v43  ;;  %6817 = vmatpush3.msra.mxu1 %v5118_v44  ;;  %v4909_v43 = vpop.f32.mrf.mxu1  ;;  %v5157_v44 = vld [vmem:[%s7461_s24 + $0x678] sm:$0xff]  ;;  %v5148_v22 = vld [vmem:[%s7461_s24 + $0x630] sm:$0xff] }
0x127e   : > { %6780 = vmatprep.subr.mxu0 %v5101_v45  ;;  %6818 = vmatprep.subr.mxu1 %v5133_v10  ;;  %v5189_v45 = vld [vmem:[%s7461_s24 + $0x778] sm:$0xff]  ;;  %v5156_v10 = vld [vmem:[%s7461_s24 + $0x670] sm:$0xff] }
0x127f   : > { %6781 = vmatpush3.msra.mxu0 %v5085_v11  ;;  %6819 = vmatpush3.msra.mxu1 %v5117_v47  ;;  %v5188_v11 = vld [vmem:[%s7461_s24 + $0x770] sm:$0xff]  ;;  %v4910_v47 = vadd.f32 %v4909_v43, %v8581_v37  ;;  %v5193_v43 = vld [vmem:[%s7461_s24 + $0x798] sm:$0xff] }
0x1280   : > { %6782 = vmatprep.subr.mxu0 %v5100_v48  ;;  %6820 = vmatprep.subr.mxu1 %v5132_v49  ;;  %v4942_v48 = vmax.f32 %v4683_v38, 0.0  ;;  %v4944_v49 = vmax.f32 %v4760_v55, 0.0  ;;  %v5180_v42 = vld [vmem:[%s7461_s24 + $0x730] sm:$0xff]  ;;  %v4913_v38 = vpop.f32.mrf.mxu1  ;;  %v5146_v55 = vld [vmem:[%s7461_s24 + $0x620] sm:$0xff] }
0x1281   : > { %6783 = vmatpush3.msra.mxu0 %v5084_v58  ;;  %6821 = vmatpush3.msra.mxu1 %v5116_v59  ;;  %v5171_v58 = vld [vmem:[%s7461_s24 + $0x6e8] sm:$0xff] }
0x1282   : > { %6784 = vmatprep.subr.mxu0 %v5099_v51  ;;  %6822 = vmatprep.subr.mxu1 %v5131_v53  ;;  %v5203_v59 = vld [vmem:[%s7461_s24 + $0x7e8] sm:$0xff]  ;;  %v4931_v53 = vmax.f32 %v4833_v57, 0.0  ;;  %v4838_v57 = vpop.f32.mrf.mxu0 }
0x1283   : > { %6785 = vmatpush3.msra.mxu0 %v5083_v31  ;;  %6823 = vmatpush3.msra.mxu1 %v5115_v54  ;;  %v5155_v51 = vld [vmem:[%s7461_s24 + $0x668] sm:$0xff]  ;;  %v4933_v54 = vmax.f32 %v4910_v47, 0.0  ;;  %v5176_v47 = vld [vmem:[%s7461_s24 + $0x710] sm:$0xff] }
0x1284   : > { %6786 = vmatprep.subr.mxu0 %v5098_v2  ;;  %6824 = vmatprep.subr.mxu1 %v5130_v1  ;;  %v5187_v31 = vld [vmem:[%s7461_s24 + $0x768] sm:$0xff]  ;;  %v5202_v2 = vld [vmem:[%s7461_s24 + $0x7e0] sm:$0xff] }
0x1285   : > { %6787 = vmatpush3.msra.mxu0 %v5082_v33  ;;  %6825 = vmatpush3.msra.mxu1 %v5114_v3  ;;  %v5154_v1 = vld [vmem:[%s7461_s24 + $0x660] sm:$0xff]  ;;  %v5169_v33 = vld [vmem:[%s7461_s24 + $0x6d8] sm:$0xff] }
0x1286   : > { %6788 = vmatprep.subr.mxu0 %v5097_v61  ;;  %6826 = vmatprep.subr.mxu1 %v5129_v4  ;;  %v5201_v3 = vld [vmem:[%s7461_s24 + $0x7d8] sm:$0xff] }
0x1287   : > { %6789 = vmatpush3.msra.mxu0 %v5081_v7  ;;  %6827 = vmatpush3.msra.mxu1 %v5113_v8  ;;  %v5153_v61 = vld [vmem:[%s7461_s24 + $0x658] sm:$0xff]  ;;  %v5152_v7 = vld [vmem:[%s7461_s24 + $0x650] sm:$0xff] }
0x1288   : > { %6790 = vmatprep.subr.mxu0 %v5096_v0  ;;  %6828 = vmatprep.subr.mxu1 %v5128_v9  ;;  %v5185_v4 = vld [vmem:[%s7461_s24 + $0x758] sm:$0xff]  ;;  %v5184_v8 = vld [vmem:[%s7461_s24 + $0x750] sm:$0xff]  ;;  %v5199_v0 = vld [vmem:[%s7461_s24 + $0x7c8] sm:$0xff] }
0x1289   : > { %6791 = vmatpush3.msra.mxu0 %v5080_v28  ;;  %6829 = vmatpush3.msra.mxu1 %v5112_v29  ;;  %v5151_v9 = vld [vmem:[%s7461_s24 + $0x648] sm:$0xff]  ;;  %v5166_v28 = vld [vmem:[%s7461_s24 + $0x6c0] sm:$0xff] }
0x128a   : > { %6792 = vmatprep.subr.mxu0 %v5095_v13  ;;  %6830 = vmatprep.subr.mxu1 %v5127_v14  ;;  %v5198_v29 = vld [vmem:[%s7461_s24 + $0x7c0] sm:$0xff] }
0x128b   : > { %6793 = vmatpush3.msra.mxu0 %v5079_v17  ;;  %6831 = vmatpush3.msra.mxu1 %v5111_v18  ;;  %v5150_v13 = vld [vmem:[%s7461_s24 + $0x640] sm:$0xff]  ;;  %v5149_v17 = vld [vmem:[%s7461_s24 + $0x638] sm:$0xff] }
0x128c   : > { %6794 = vmatprep.subr.mxu0 %v5094_v20  ;;  %6832 = vmatprep.subr.mxu1 %v5126_v21  ;;  %v5182_v14 = vld [vmem:[%s7461_s24 + $0x740] sm:$0xff]  ;;  %v5181_v18 = vld [vmem:[%s7461_s24 + $0x738] sm:$0xff]  ;;  %v5164_v20 = vld [vmem:[%s7461_s24 + $0x6b0] sm:$0xff] }
0x128d   : > { %6795 = vmatpush3.msra.mxu0 %v5078_v46  ;;  %6833 = vmatpush3.msra.mxu1 %v5110_v35  ;;  %v5196_v21 = vld [vmem:[%s7461_s24 + $0x7b0] sm:$0xff]  ;;  %v5163_v46 = vld [vmem:[%s7461_s24 + $0x6a8] sm:$0xff] }
0x128e   : > { %5578 = vmatmul.mubr.f32.vlgmr.msra.gmra.mxu0 %v4926_v24  ;;  %5653 = vmatmul.mubr.f32.vlgmr.msra.gmra.mxu1 %v4928_v25  ;;  %v5195_v35 = vld [vmem:[%s7461_s24 + $0x7a8] sm:$0xff] }
0x128f   : > { %6840 = vmatprep.subr.mxu0 %v5173_v50  ;;  %6878 = vmatprep.subr.mxu1 %v5205_v52  ;;  %v5147_v24 = vld [vmem:[%s7461_s24 + $0x628] sm:$0xff]  ;;  %v5162_v50 = vld [vmem:[%s7461_s24 + $0x6a0] sm:$0xff] }
0x1290   : > { %5582 = vmatprep.mubr.f32.mxu0 %v4943_v39  ;;  %5657 = vmatprep.mubr.f32.mxu1 %v4945_v41  ;;  %v5179_v25 = vld [vmem:[%s7461_s24 + $0x728] sm:$0xff]  ;;  %v5194_v52 = vld [vmem:[%s7461_s24 + $0x7a0] sm:$0xff]  ;;  %v5161_v41 = vld [vmem:[%s7461_s24 + $0x698] sm:$0xff] }
0x1291   : > { %6841 = vmatpush3.msra.mxu0 %v5157_v44  ;;  %6879 = vmatpush3.msra.mxu1 %v5189_v45  ;;  %v5178_v39 = vld [vmem:[%s7461_s24 + $0x720] sm:$0xff]  ;;  %v5145_v44 = vld [vmem:[%s7461_s24 + $0x618] sm:$0xff] }
0x1292   : > { %6842 = vmatprep.subr.mxu0 %v5172_v23  ;;  %6880 = vmatprep.subr.mxu1 %v5204_v63  ;;  %v5177_v45 = vld [vmem:[%s7461_s24 + $0x718] sm:$0xff]  ;;  %v5160_v23 = vld [vmem:[%s7461_s24 + $0x690] sm:$0xff] }
0x1293   : > { %6843 = vmatpush3.msra.mxu0 %v5156_v10  ;;  %6881 = vmatpush3.msra.mxu1 %v5188_v11  ;;  %v5192_v63 = vld [vmem:[%s7461_s24 + $0x790] sm:$0xff]  ;;  %v4915_v10 = vpop.f32.mrf.mxu1 }
0x1294   : > { %5583 = vmatmul.mubr.f32.gmra.mxu0 %v4942_v48  ;;  %5658 = vmatmul.mubr.f32.gmra.mxu1 %v4944_v49  ;;  %v5144_v11 = vld [vmem:[%s7461_s24 + $0x610] sm:$0xff]  ;;  %v5159_v48 = vld [vmem:[%s7461_s24 + $0x688] sm:$0xff] }
0x1295   : > { %6844 = vmatprep.subr.mxu0 %v5171_v58  ;;  %6882 = vmatprep.subr.mxu1 %v5203_v59  ;;  %v5191_v49 = vld [vmem:[%s7461_s24 + $0x788] sm:$0xff]  ;;  %v4831_v58 = vadd.f32 %v8561_v19, %v8356_v26  ;;  %v4908_v59 = vadd.f32 %v8567_v34, %v8361_v27 }
0x1296   : > { %6845 = vmatpush3.msra.mxu0 %v5155_v51  ;;  %5727 = vmatprep.mubr.f32.mxu0 %v4931_v53  ;;  %v5143_v51 = vld [vmem:[%s7461_s24 + $0x608] sm:$0xff] }
0x1297   : > { %6883 = vmatpush3.msra.mxu1 %v5187_v31  ;;  %5802 = vmatprep.mubr.f32.mxu1 %v4933_v54  ;;  %v5175_v53 = vld [vmem:[%s7461_s24 + $0x708] sm:$0xff]  ;;  %v4839_v31 = vadd.f32 %v4838_v57, %v8574_v30  ;;  %v4916_v54 = vadd.f32 %v4915_v10, %v8581_v37  ;;  %v4930_v19 = vmax.f32 %v4831_v58, 0.0  ;;  %v4932_v34 = vmax.f32 %v4908_v59, 0.0 }
0x1298   : > { %6846 = vmatprep.subr.mxu0 %v5170_v60  ;;  %6884 = vmatprep.subr.mxu1 %v5202_v2  ;;  %v5158_v60 = vld [vmem:[%s7461_s24 + $0x680] sm:$0xff] }
0x1299   : > { %6847 = vmatpush3.msra.mxu0 %v5154_v1  ;;  %6885 = vmatpush3.msra.mxu1 %v5186_v62  ;;  %v5190_v2 = vld [vmem:[%s7461_s24 + $0x780] sm:$0xff]  ;;  %v4947_v30 = vmax.f32 %v4839_v31, 0.0  ;;  %v4949_v37 = vmax.f32 %v4916_v54, 0.0 }
0x129a   : > { %6848 = vmatprep.subr.mxu0 %v5169_v33  ;;  %6886 = vmatprep.subr.mxu1 %v5201_v3  ;;  %v5142_v1 = vld [vmem:[%s7461_s24 + $0x600] sm:$0xff]  ;;  %v4837_v33 = vadd.f32 %v4836_v36, %v8356_v26  ;;  %v4914_v3 = vadd.f32 %v4913_v38, %v8361_v27 }
0x129b   : > { %6849 = vmatpush3.msra.mxu0 %v5153_v61  ;;  %6887 = vmatpush3.msra.mxu1 %v5185_v4  ;;  %v5174_v62 = vld [vmem:[%s7461_s24 + $0x700] sm:$0xff]  ;;  %s8783_s24 = scalar_lea.vmem %s8730_s17, %s7392_s30 }
0x129c   : > { %6850 = vmatprep.subr.mxu0 %v5168_v5  ;;  %6888 = vmatprep.subr.mxu1 %v5200_v6  ;;  %v4946_v61 = vmax.f32 %v4837_v33, 0.0  ;;  %v4948_v4 = vmax.f32 %v4914_v3, 0.0 }
0x129d   : > { %6851 = vmatpush3.msra.mxu0 %v5152_v7  ;;  %6889 = vmatpush3.msra.mxu1 %v5184_v8 }
0x129e   : > { %6852 = vmatprep.subr.mxu0 %v5167_v56  ;;  %6890 = vmatprep.subr.mxu1 %v5199_v0 }
0x129f   : > { %6853 = vmatpush3.msra.mxu0 %v5151_v9  ;;  %6891 = vmatpush3.msra.mxu1 %v5183_v12 }
0x12a0   : > { %6854 = vmatprep.subr.mxu0 %v5166_v28  ;;  %6892 = vmatprep.subr.mxu1 %v5198_v29 }
0x12a1   : > { %6855 = vmatpush3.msra.mxu0 %v5150_v13  ;;  %6893 = vmatpush3.msra.mxu1 %v5182_v14 }
0x12a2   : > { %6856 = vmatprep.subr.mxu0 %v5165_v15  ;;  %6894 = vmatprep.subr.mxu1 %v5197_v16 }
0x12a3   : > { %6857 = vmatpush3.msra.mxu0 %v5149_v17  ;;  %6895 = vmatpush3.msra.mxu1 %v5181_v18  ;;  %v6329_v17 = vld [vmem:[%s8783_s24] ss:$0 sm:$0xff] }
0x12a4   : > { %6858 = vmatprep.subr.mxu0 %v5164_v20  ;;  %6896 = vmatprep.subr.mxu1 %v5196_v21 }
0x12a5   : > { %6859 = vmatpush3.msra.mxu0 %v5148_v22  ;;  %6897 = vmatpush3.msra.mxu1 %v5180_v42 }
0x12a6   : > { %6860 = vmatprep.subr.mxu0 %v5163_v46  ;;  %6898 = vmatprep.subr.mxu1 %v5195_v35 }
0x12a7   : > { %6861 = vmatpush3.msra.mxu0 %v5147_v24  ;;  %6899 = vmatpush3.msra.mxu1 %v5179_v25 }
0x12a8   : > { %6862 = vmatprep.subr.mxu0 %v5162_v50  ;;  %6900 = vmatprep.subr.mxu1 %v5194_v52 }
0x12a9   : > { %6863 = vmatpush3.msra.mxu0 %v5146_v55  ;;  %6901 = vmatpush3.msra.mxu1 %v5178_v39 }
0x12aa   : > { %6864 = vmatprep.subr.mxu0 %v5161_v41  ;;  %6902 = vmatprep.subr.mxu1 %v5193_v43 }
0x12ab   : > { %6865 = vmatpush3.msra.mxu0 %v5145_v44  ;;  %6903 = vmatpush3.msra.mxu1 %v5177_v45 }
0x12ac   : > { %6866 = vmatprep.subr.mxu0 %v5160_v23  ;;  %6904 = vmatprep.subr.mxu1 %v5192_v63 }
0x12ad   : > { %6867 = vmatpush3.msra.mxu0 %v5144_v11  ;;  %6905 = vmatpush3.msra.mxu1 %v5176_v47 }
0x12ae   : > { %6868 = vmatprep.subr.mxu0 %v5159_v48  ;;  %6906 = vmatprep.subr.mxu1 %v5191_v49 }
0x12af   : > { %6869 = vmatpush3.msra.mxu0 %v5143_v51  ;;  %6907 = vmatpush3.msra.mxu1 %v5175_v53 }
0x12b0   : > { %6870 = vmatprep.subr.mxu0 %v5158_v60  ;;  %6908 = vmatprep.subr.mxu1 %v5190_v2 }
0x12b1   : > { %6871 = vmatpush3.msra.mxu0 %v5142_v1  ;;  %6909 = vmatpush3.msra.mxu1 %v5174_v62 }
0x12b2   : > { %5728 = vmatmul.mubr.f32.vlgmr.msra.gmra.mxu0 %v4930_v19  ;;  %5803 = vmatmul.mubr.f32.vlgmr.msra.gmra.mxu1 %v4932_v34 }
0x12b3   : > { %5732 = vmatprep.mubr.f32.mxu0 %v4947_v30  ;;  %5807 = vmatprep.mubr.f32.mxu1 %v4949_v37 }
0x12b6   : > { %5733 = vmatmul.mubr.f32.gmra.mxu0 %v4946_v61  ;;  %5808 = vmatmul.mubr.f32.gmra.mxu1 %v4948_v4 }
0x1307   : > { %v6644_v5 = vpop.f32.mrf.mxu0  ;;  %v6682_v6 = vpop.f32.mrf.mxu1 }
0x1309   : > { %v6645_v26 = vpop.f32.mrf.mxu0  ;;  %v6683_v7 = vpop.f32.mrf.mxu1 }
0x130a   : > { %v6646_v16 = vadd.f32 %v6645_v26, %v6644_v5  ;;  %v6684_v35 = vadd.f32 %v6683_v7, %v6682_v6 }
0x130c   : > { %v5280_v22 = vadd.f32 %v6646_v16, %v6329_v17 }
0x130d   : > { %v6647_v27 = vpop.f32.mrf.mxu0  ;;  %v6685_v8 = vpop.f32.mrf.mxu1 }
0x130e   : > { %v5355_v50 = vadd.f32 %v6684_v35, %v5280_v22 }
0x130f   : > { %v6648_v56 = vpop.f32.mrf.mxu0  ;;  %v6686_v0 = vpop.f32.mrf.mxu1 }
0x1310   : > { %v6649_v42 = vadd.f32 %v6648_v56, %v6647_v27  ;;  %v6687_v38 = vadd.f32 %v6686_v0, %v6685_v8 }
0x1312   : > { %v5285_v52 = vadd.f32 %v6649_v42, %v6329_v17 }
0x1314   : > { %v5360_v43 = vadd.f32 %v6687_v38, %v5285_v52 }
0x132a   : > { %v6720_v9 = vpop.f32.mrf.mxu0  ;;  %v6758_v12 = vpop.f32.mrf.mxu1 }
0x132c   : > { %v6721_v28 = vpop.f32.mrf.mxu0  ;;  %v6759_v29 = vpop.f32.mrf.mxu1 }
0x132d   : > { %v6722_v24 = vadd.f32 %v6721_v28, %v6720_v9  ;;  %v6760_v44 = vadd.f32 %v6759_v29, %v6758_v12 }
0x132f   : > { %v5430_v55 = vadd.f32 %v6722_v24, %v5355_v50  ;;  %v6331_v24 = vld [vmem:[%s944_s22] ss:$0 sm:$0xff] }
0x1330   : > { %v6723_v13 = vpop.f32.mrf.mxu0  ;;  %v6761_v14 = vpop.f32.mrf.mxu1 }
0x1331   : > { %v5505_v63 = vadd.f32 %v6760_v44, %v5430_v55 }
0x1332   : > { %v6724_v15 = vpop.f32.mrf.mxu0  ;;  %v6762_v18 = vpop.f32.mrf.mxu1 }
0x1333   : > { %v6725_v39 = vadd.f32 %v6724_v15, %v6723_v13  ;;  %v6763_v11 = vadd.f32 %v6762_v18, %v6761_v14 }
0x1335   : > { %v5435_v57 = vadd.f32 %v6725_v39, %v5360_v43 }
0x1337   : > { %v5510_v59 = vadd.f32 %v6763_v11, %v5435_v57 }
0x134e   : > { %v6796_v20 = vpop.f32.mrf.mxu0  ;;  %v6834_v21 = vpop.f32.mrf.mxu1 }
0x1350   : > { %v6797_v46 = vpop.f32.mrf.mxu0  ;;  %v6835_v25 = vpop.f32.mrf.mxu1 }
0x1351   : > { %v6798_v45 = vadd.f32 %v6797_v46, %v6796_v20  ;;  %v6836_v51 = vadd.f32 %v6835_v25, %v6834_v21  ;;  %v6330_v46 = vld [vmem:[%s941_s7] ss:$0 sm:$0xff] }
0x1353   : > { %v5580_v47 = vadd.f32 %v6798_v45, %v5505_v63 }
0x1354   : > { %v6799_v36 = vpop.f32.mrf.mxu0  ;;  %v6837_v41 = vpop.f32.mrf.mxu1 }
0x1355   : > { %v5655_v54 = vadd.f32 %v6836_v51, %v5580_v47 }
0x1356   : > { %v6800_v23 = vpop.f32.mrf.mxu0  ;;  %v6838_v10 = vpop.f32.mrf.mxu1 }
0x1357   : > { %v6801_v48 = vadd.f32 %v6800_v23, %v6799_v36  ;;  %v6839_v19 = vadd.f32 %v6838_v10, %v6837_v41 }
0x1359   : > { %v5585_v60 = vadd.f32 %v6801_v48, %v5510_v59 }
0x135b   : > { %v5660_v37 = vadd.f32 %v6839_v19, %v5585_v60 }
0x1372   : > { %v6872_v49 = vpop.f32.mrf.mxu0  ;;  %v6910_v58 = vpop.f32.mrf.mxu1 }
0x1374   : > { %v6873_v53 = vpop.f32.mrf.mxu0  ;;  %v6911_v31 = vpop.f32.mrf.mxu1 }
0x1375   : > { %v6874_v2 = vadd.f32 %v6873_v53, %v6872_v49  ;;  %v6912_v33 = vadd.f32 %v6911_v31, %v6910_v58 }
0x1376   : > { %v6875_v1 = vpop.f32.mrf.mxu0  ;;  %v6913_v62 = vpop.f32.mrf.mxu1 }
0x1377   : > { %v5730_v34 = vadd.f32 %v6874_v2, %v5655_v54 }
0x1378   : > { %v6876_v3 = vpop.f32.mrf.mxu0  ;;  %v6914_v30 = vpop.f32.mrf.mxu1 }
0x1379   : > { %v5805_v61 = vadd.f32 %v6912_v33, %v5730_v34  ;;  %v6877_v4 = vadd.f32 %v6876_v3, %v6875_v1  ;;  %v6915_v6 = vadd.f32 %v6914_v30, %v6913_v62 }
0x137b   : > { %v5735_v5 = vadd.f32 %v6877_v4, %v5660_v37  ;;  %v5813_v26 = vadd.f32 %v5805_v61, %v8184_v32 }
0x137d   : > { %v5810_v7 = vadd.f32 %v6915_v6, %v5735_v5  ;;  %v5817_v27 = vsel %vm1421_vm1, %v5813_v26, 0.0 }
0x137e   : > { %5818 = vadd.xlane.f32.xlu0 %v5817_v27 }
0x137f   : > { %v5814_v8 = vadd.f32 %v5810_v7, %v8196_v40 }
0x1381   : > { %v5820_v56 = vsel %vm1421_vm1, %v5814_v8, 0.0 }
0x1382   : > { %5821 = vadd.xlane.f32.xlu1 %v5820_v56 }
0x1407   : > { %v5819_v0 = vpop.xlane.xlu0 %5818 }
0x1408   : > { %v5823_v9 = vmul.f32 0.03125, %v5819_v0 }
0x140a   : > { %v5825_v12 = vsub.f32 %v5813_v26, %v5823_v9 }
0x140b   : > { %v5822_v28 = vpop.xlane.xlu1 %5821 }
0x140c   : > { %v5824_v29 = vmul.f32 0.03125, %v5822_v28  ;;  %v5827_v13 = vmul.f32 %v5825_v12, %v5825_v12 }
0x140e   : > { %v5826_v14 = vsub.f32 %v5814_v8, %v5824_v29  ;;  %v5829_v15 = vsel %vm1421_vm1, %v5827_v13, 0.0 }
0x140f   : > { %5830 = vadd.xlane.f32.xlu0 %v5829_v15 }
0x1410   : > { %v5828_v32 = vmul.f32 %v5826_v14, %v5826_v14 }
0x1412   : > { %v5832_v16 = vsel %vm1421_vm1, %v5828_v32, 0.0 }
0x1413   : > { %5833 = vadd.xlane.f32.xlu1 %v5832_v16 }
0x1498   : > { %v5831_v40 = vpop.xlane.xlu0 %5830 }
0x1499   : > { %v5835_v17 = vmul.f32 0.03125, %v5831_v40 }
0x149b   : > { %v5837_v18 = vadd.f32 1e-05, %v5835_v17 }
0x149c   : > { %v5834_v20 = vpop.xlane.xlu1 %5833 }
0x149d   : > { %7219 = vrsqrt.f32 %v5837_v18  ;;  %v5836_v21 = vmul.f32 0.03125, %v5834_v20 }
0x149f   : > { %v5838_v22 = vadd.f32 1e-05, %v5836_v21 }
0x14a1   : > { %7221 = vrsqrt.f32 %v5838_v22 }
0x14aa   : > { %v7220_v42 = vpop.eup %7219 }
0x14ab   : > { %v5841_v35 = vmul.f32 %v7220_v42, %v5825_v12 }
0x14ad   : > { %v5849_v25 = vmul.f32 %v6330_v46, %v5841_v35 }
0x14ae   : > { %v7222_v50 = vpop.eup %7221 }
0x14af   : > { %v5857_v52 = vadd.f32 %v6331_v24, %v5849_v25  ;;  %v5842_v36 = vmul.f32 %v7222_v50, %v5826_v14 }
0x14b1   : > { %5859 = vst.msk [vmem:[#allocation2] sm:$0xff] %vm1421_vm1, %v5857_v52  ;;  %v5850_v38 = vmul.f32 %v6330_v46, %v5842_v36  ;;  %5864 = sbr.rel (%p6332_p6) target bundleno = 5514 (0x158a), region = 116 }
0x14b3   : > { %v5858_v55 = vadd.f32 %v6331_v24, %v5850_v38 }
0x14b5   : > { %5860 = vst.msk [vmem:[#allocation2 + $0x8] sm:$0xff] %vm1421_vm1, %v5858_v55 }
0x14b6   : > { %v5885_v39 = vld [vmem:[%s8784_s12 + $0x18] sm:$0xff]  ;;  %v5865_v41 = vsel %vm1421_vm1, %v5857_v52, 0.0  ;;  %v7261_v43 = vmov 0.0   ;;  %v5884_v44 = vld [vmem:[%s8784_s12 + $0x10] sm:$0xff]  ;;  %vm7262_vm4 = vmmov 0   ;;  %v5872_v23 = vsel %vm1421_vm1, %v5858_v55, 0.0 }
0x14b7   : > { %7153 = vmatprep.subr.mxu0 %v7261_v43  ;;  %7161 = vmatprep.mubr.msk.f32.mxu0 %vm7262_vm4, %v7261_v43  ;;  %v5866_v45 = vrot.slane %v5865_v41, 4  ;;  %v5873_v63 = vrot.slane %v5872_v23, 4  ;;  %v5883_v57 = vld [vmem:[%s8784_s12 + $0x8] sm:$0xff]  ;;  %v5882_v47 = vld [vmem:[%s8784_s12] sm:$0xff]  ;;  %vm5895_vm5 = vcmask 1041409  }
0x14b8   : > { %7154 = vmatpush3.msra.mxu0 %v5885_v39  ;;  %v6333_v62 = vld [vmem:[%s8785_s3] ss:$0 sm:$0xff] }
0x14b9   : > { %7155 = vmatprep.subr.mxu0 %v7261_v43  ;;  %v5867_v10 = vadd.f32 %v5866_v45, %v5865_v41  ;;  %v5874_v11 = vadd.f32 %v5873_v63, %v5872_v23 }
0x14ba   : > { %7156 = vmatpush3.msra.mxu0 %v5884_v44 }
0x14bb   : > { %7157 = vmatprep.subr.mxu0 %v7261_v43  ;;  %v5868_v48 = vrot.slane %v5867_v10, 2  ;;  %v5875_v49 = vrot.slane %v5874_v11, 2 }
0x14bc   : > { %7158 = vmatpush3.msra.mxu0 %v5883_v57 }
0x14bd   : > { %7159 = vmatprep.subr.mxu0 %v7261_v43  ;;  %v5869_v58 = vadd.f32 %v5868_v48, %v5867_v10  ;;  %v5876_v59 = vadd.f32 %v5875_v49, %v5874_v11 }
0x14be   : > { %7160 = vmatpush3.msra.mxu0 %v5882_v47 }
0x14bf   : > { %v5870_v51 = vrot.slane %v5869_v58, 1  ;;  %v5877_v53 = vrot.slane %v5876_v59, 1 }
0x14c1   : > { %v5871_v31 = vadd.f32 %v5870_v51, %v5869_v58  ;;  %v5878_v54 = vadd.f32 %v5877_v53, %v5876_v59 }
0x14c3   : > { %v5880_v60 = vmul.f32 0.125, %v5871_v31  ;;  %v5881_v2 = vmul.f32 0.125, %v5878_v54 }
0x14c5   : > { %v5896_v1 = vsel %vm5895_vm5, %v5881_v2, %v5880_v60 }
0x14c6   : > { %7162 = vmatmul.mubr.msk.f32.vlgmr.msra.gmra.mxu0 %vm1421_vm1, %v5896_v1 }
0x1586   : > { %v5965_v19 = vpop.f32.mrf.mxu0 }
0x1587   : > { %v5966_v34 = vadd.f32 %v6333_v62, %v5965_v19 }
0x1588   : > { %v7163_v33 = vpop.f32.mrf.mxu0 }
0x1589   : > { %5969 = vst [vmem:[#allocation3] sm:$0x3] %v5966_v34 }
0x158a PF: > { %p7168_p7 = scmp.eq.s32.totalorder %s7385_s28, 1  ;;  %s7263_s8 = smov [#allocation3]  }
0x158b   : > { %s5977_s26 = sshll.u32 %s7263_s8, 4  ;;  %s5978_s26 = int_to_ptr.vmem [resolvable:$true] %s5977_s26 }
0x158c   : > { %s7223_s29 = scalar_lea.vmem %s5978_s26, 32  ;;  %p7230_p11 = scmp.lt.s32.totalorder %s5978_s26, %s5978_s26 }
0x158d   : > { %p7224_p8 = scmp.ne.s32.totalorder %s5978_s26, %s7223_s29  ;;  %p7231_p12 = scmp.lt.s32.totalorder %s7223_s29, %s7223_s29 }
0x158f   : > { %p7225_p9 = pnand %p7224_p8, %p7168_p7  ;;  %p7232_p13 = por %p7231_p12, %p7230_p11 }
0x1591   : > { %p7226_p10 = pneg %p7225_p9 }
0x1593   : > { %p7233_p0 = pnand %p7232_p13, %p7226_p10 }
0x1595   : > { %7236 = shalt.err (!%p7233_p0)
}
0x1596   : > { %s8786_s10 = sld [smem:[#allocation24_spill]] }
0x159c   : > { %7165 = dma.vmem_to_hbm [thread:$0]  (%p7168_p7), %s5978_s26, 32, %s8786_s10, [#allocation4]  }
0x159d   : > { %7252 = dma.done.wait (%p7168_p7), [#allocation4], 32  }
0x159e   : > { %7254 = vsyncadd (%p7168_p7), [#allocation4], 4294967264 }
0x159f PF: > { %s8787_s27 = sld [smem:[#allocation6_spill]] }
0x15a5   : > { %s33_s3 = sadd.s32 1, %s8787_s27  }
0x15a6   : > { %p30_p1 = scmp.ge.s32.totalorder %s33_s3, 4  }
0x15a8   :  { %32 = sbr.rel (!%p30_p1) target bundleno = 18 (0x12), region = 209 }
0x15ad   :  { %5990 = vsyncpa [#allocation4], 1 }
0x15ae   :  { %5992 = vsyncpa [#allocation4 + $0x1], 1 }

</bundles_post_ra>
